<compile_context>
chip_gen: v5e
topology: v5e:2x2
jax: 0.10.0
libtpu: 0.0.40
codegen_flags: <defaults>
</compile_context>

<pallas_src>
import functools
import math

import jax
import jax.numpy as jnp
from jax.experimental import pallas as pl
from jax.experimental.pallas import tpu as pltpu


# ----------------------------------------------------------------------------
# Fused encoder kernel: one grid step = (batch block b, layer l)
# ----------------------------------------------------------------------------
def encoder_kernel(
    x_ref, mask_ref,
    wqkv_ref, bqkv_ref, wo_ref, bo_ref,
    g1_ref, be1_ref, w1_ref, bf1_ref, w2_ref, bf2_ref, g2_ref, be2_ref,
    out_ref,
    *, heads, ff_chunk, eps=1e-5,
):
    l = pl.program_id(1)
    TB, S, H = out_ref.shape
    hd = H // heads
    FF = w1_ref.shape[2]
    inv_scale = 1.0 / math.sqrt(hd)

    # ---- first layer step: load the host-embedded activations into the resident output block ----
    @pl.when(l == 0)
    def _():
        out_ref[...] = x_ref[...]          # tok*sqrt(H)+pos embedding; dropout = identity (eval)

    x = out_ref[...].astype(jnp.float32)   # (TB, S, H) activation, resident across the layer axis
    x2 = x.reshape(TB * S, H)
    x2b = x2.astype(jnp.bfloat16)

    # Additive key-padding bias (0 keep / -1e10 pad), computed once per step, broadcast over heads.
    bias = (mask_ref[...] - 1.0) * jnp.float32(1e10)                  # (TB, 1, S)

    # ---- multi-head self-attention: fused QKV projection (bf16 MXU operands, f32 accumulation) ----
    qkv = jnp.dot(x2b, wqkv_ref[0], preferred_element_type=jnp.float32) + bqkv_ref[0]
    q = qkv[:, 0 * H:1 * H].reshape(TB, S, H)
    k = qkv[:, 1 * H:2 * H].reshape(TB, S, H)
    v = qkv[:, 2 * H:3 * H].reshape(TB, S, H)

    acc = jnp.zeros((TB * S, H), jnp.float32)
    for h in range(heads):                 # static & small; slices are lane-aligned when hd % 128 == 0
        sl = slice(h * hd, (h + 1) * hd)
        qh = q[:, :, sl].astype(jnp.bfloat16)
        kh = k[:, :, sl].astype(jnp.bfloat16)
        vh = v[:, :, sl].astype(jnp.bfloat16)
        # Batched contraction on last dims — no explicit kh.T (MXU transposed-operand path).
        e = jnp.einsum('bqd,bkd->bqk', qh, kh, preferred_element_type=jnp.float32)
        e = e * inv_scale + bias
        e = e - jnp.max(e, axis=-1, keepdims=True)
        p = jnp.exp(e)
        inv_den = pl.reciprocal(jnp.sum(p, axis=-1, keepdims=True), approx=True)   # EUP slot (~free)
        ctx = jnp.einsum('bqk,bkd->bqd', p.astype(jnp.bfloat16), vh,
                         preferred_element_type=jnp.float32)
        ctx = ctx * inv_den                # normalize AFTER p@v: (TB,S,hd) mul instead of (TB,S,S)
        # Accumulate directly through Wo: no lane-axis concat of head outputs.
        acc = acc + jnp.dot(ctx.reshape(TB * S, hd).astype(jnp.bfloat16),
                            wo_ref[0, sl, :], preferred_element_type=jnp.float32)
    attn = acc + bo_ref[0]

    # ---- residual + LayerNorm 1 (f32 statistics; dropout identity in eval) ----
    y = attn + x2
    mu = jnp.mean(y, axis=-1, keepdims=True)
    yc = y - mu
    var = jnp.mean(yc * yc, axis=-1, keepdims=True)
    y = yc * jax.lax.rsqrt(var + eps) * g1_ref[0] + be1_ref[0]

    # ---- feed-forward (Linear -> ReLU -> Linear), chunked over the hidden axis so the live
    #      ReLU intermediate stays bounded (vreg pressure) ----
    yb = y.astype(jnp.bfloat16)
    ff_acc = jnp.zeros((TB * S, H), jnp.float32)
    C = min(ff_chunk, FF)
    for c0 in range(0, FF, C):
        hdn = jnp.dot(yb, w1_ref[0, :, c0:c0 + C],
                      preferred_element_type=jnp.float32) + bf1_ref[0, :, c0:c0 + C]
        hdn = jnp.maximum(hdn, 0.0).astype(jnp.bfloat16)
        ff_acc = ff_acc + jnp.dot(hdn, w2_ref[0, c0:c0 + C, :],
                                  preferred_element_type=jnp.float32)
    ff = ff_acc + bf2_ref[0]

    # ---- residual + LayerNorm 2 ----
    z = ff + y
    mu2 = jnp.mean(z, axis=-1, keepdims=True)
    zc = z - mu2
    var2 = jnp.mean(zc * zc, axis=-1, keepdims=True)
    z = zc * jax.lax.rsqrt(var2 + eps) * g2_ref[0] + be2_ref[0]

    out_ref[...] = z.reshape(TB, S, H).astype(out_ref.dtype)


# ----------------------------------------------------------------------------
# Host wrapper
# ----------------------------------------------------------------------------
def encoder_forward(ids, tok_tab, pos_tab, stacked_params, heads, pad_idx,
                    *, block_b=None, ff_chunk=512):
    """ids: (B,S) int32; tok_tab: (V,H); pos_tab: (M,H); stacked_params: 12 arrays, leading L dim."""
    B, S = ids.shape
    V, H = tok_tab.shape
    L = stacked_params[0].shape[0]
    TB = B if block_b is None else block_b
    assert B % TB == 0, "block_b must divide batch"

    # Embedding gather hoisted OUT of the fused kernel (plain XLA gather): no (V,H) table in VMEM,
    # no one-hot matmul.  sqrt(H) scale folded in here; dropout = identity (eval).
    emb = jnp.take(tok_tab, ids, axis=0) * jnp.float32(math.sqrt(float(H)))
    emb = (emb + pos_tab[:S][None, :, :]).astype(jnp.float32)
    key_mask = (ids != pad_idx).astype(jnp.float32).reshape(B, 1, S)   # 1 = keep, 0 = pad

    kernel = functools.partial(encoder_kernel, heads=heads, ff_chunk=ff_chunk)

    def layer_spec(arr):
        # Stream layer l's slice each step; only one layer's weights live in VMEM at a time.
        return pl.BlockSpec((1,) + arr.shape[1:], lambda b, l: (l, 0, 0))

    in_specs = [
        pl.BlockSpec((TB, S, H), lambda b, l: (b, 0, 0)),   # pre-embedded activations
        pl.BlockSpec((TB, 1, S), lambda b, l: (b, 0, 0)),   # key-padding mask
    ] + [layer_spec(p) for p in stacked_params]

    # Per-generation VMEM budget: stay under v7x's 64 MiB physical, use the headroom on v5e/v6e.
    try:
        cap = pltpu.get_tpu_info().vmem_capacity_bytes
        vmem_limit = min(96 * 1024 * 1024, int(cap * 0.85))
    except Exception:
        vmem_limit = 32 * 1024 * 1024

    return pl.pallas_call(
        kernel,
        out_shape=jax.ShapeDtypeStruct((B, S, H), jnp.float32),
        grid=(B // TB, L),
        in_specs=in_specs,
        out_specs=pl.BlockSpec((TB, S, H), lambda b, l: (b, 0, 0)),   # resident across layer axis
        compiler_params=pltpu.CompilerParams(
            dimension_semantics=("parallel", "arbitrary"),
            vmem_limit_bytes=vmem_limit,
        ),
    )(emb, key_mask, *stacked_params)


# ----------------------------------------------------------------------------
# Deterministic synthetic parameter init (shapes from the module __init__).
# Linear weights stored as (in, out), i.e. already transposed vs. PyTorch; QKV pre-fused.
# ----------------------------------------------------------------------------
PARAM_ORDER = ("wqkv", "bqkv", "wo", "bo", "g1", "be1",
               "w1", "bf1", "w2", "bf2", "g2", "be2")
BF16_PARAMS = {"wqkv", "wo", "w1", "w2"}   # matmul weights go to bf16 (MXU-native); biases/LN stay f32


def init_layer_params(key, H, E):
    ks = jax.random.split(key, 6)
    w = lambda kk, i, o: jax.random.normal(kk, (i, o), jnp.float32) * 0.02
    zeros = lambda n: jnp.zeros((1, n), jnp.float32)
    ones = lambda n: jnp.ones((1, n), jnp.float32)
    wq, wk, wv = w(ks[0], H, H), w(ks[1], H, H), w(ks[2], H, H)
    return dict(
        wqkv=jnp.concatenate([wq, wk, wv], axis=1),   # fused (H, 3H)
        bqkv=jnp.zeros((1, 3 * H), jnp.float32),
        wo=w(ks[3], H, H), bo=zeros(H),
        g1=ones(H), be1=zeros(H),                     # LayerNorm1 gamma, beta
        w1=w(ks[4], H, H * E), bf1=zeros(H * E),      # FF linear 1
        w2=w(ks[5], H * E, H), bf2=zeros(H),          # FF linear 2
        g2=ones(H), be2=zeros(H),                     # LayerNorm2 gamma, beta
    )


def stack_layer_params(per_layer):
    stacked = []
    for name in PARAM_ORDER:
        arr = jnp.stack([lp[name] for lp in per_layer], axis=0)   # leading layer dim
        if name in BF16_PARAMS:
            arr = arr.astype(jnp.bfloat16)
        stacked.append(arr)
    return stacked


if __name__ == "__main__":
    key = jax.random.PRNGKey(0)

    # Small but lane-dense demo shapes: H and FF multiples of 128, head_dim = 128.
    B, S, H = 4, 8, 256
    heads, num_layers, ff_exp = 2, 2, 4
    input_dim, max_size = 16, 16          # vocab size / max sentence length
    pad_idx = 0                           # vocab['<pad>'] = 0
    TB = 2                                # batch block -> grid (B//TB=2, L): even parallel extent (v7x)

    k_ids, k_tok, k_pos, *k_layers = jax.random.split(key, 3 + num_layers)

    ids = jax.random.randint(k_ids, (B, S), 1, input_dim).astype(jnp.int32)
    ids = ids.at[0, S - 2:].set(pad_idx)  # give the first sentence some padding

    tok_tab = jax.random.normal(k_tok, (input_dim, H), jnp.float32) * 0.02
    tok_tab = tok_tab.at[pad_idx].set(0.0)  # nn.Embedding(padding_idx=...) zero row
    pos_tab = jax.random.normal(k_pos, (max_size, H), jnp.float32) * 0.02

    per_layer = [init_layer_params(k_layers[i], H, ff_exp) for i in range(num_layers)]
    stacked = stack_layer_params(per_layer)

    out = encoder_forward(ids, tok_tab, pos_tab, stacked, heads, pad_idx, block_b=TB)
    out = jax.block_until_ready(out)
    assert out.shape == (B, S, H)
    assert bool(jnp.all(jnp.isfinite(out)))
    print("KERNEL_OK")
</pallas_src>

<mosaic_0001>
module attributes {stable_mosaic.version = 11 : i64} {
  func.func @encoder_kernel(%arg0: i32, %arg1: i32, %arg2: memref<2x8x256xf32, #tpu.memory_space<vmem>>, %arg3: memref<2x1x8xf32, #tpu.memory_space<vmem>>, %arg4: memref<1x256x768xbf16, #tpu.memory_space<vmem>>, %arg5: memref<1x1x768xf32, #tpu.memory_space<vmem>>, %arg6: memref<1x256x256xbf16, #tpu.memory_space<vmem>>, %arg7: memref<1x1x256xf32, #tpu.memory_space<vmem>>, %arg8: memref<1x1x256xf32, #tpu.memory_space<vmem>>, %arg9: memref<1x1x256xf32, #tpu.memory_space<vmem>>, %arg10: memref<1x256x1024xbf16, #tpu.memory_space<vmem>>, %arg11: memref<1x1x1024xf32, #tpu.memory_space<vmem>>, %arg12: memref<1x1024x256xbf16, #tpu.memory_space<vmem>>, %arg13: memref<1x1x256xf32, #tpu.memory_space<vmem>>, %arg14: memref<1x1x256xf32, #tpu.memory_space<vmem>>, %arg15: memref<1x1x256xf32, #tpu.memory_space<vmem>>, %arg16: memref<2x8x256xf32, #tpu.memory_space<vmem>>) attributes {dimension_semantics = [#tpu.dimension_semantics<parallel>, #tpu.dimension_semantics<arbitrary>], iteration_bounds = array<i64: 2, 2>, scalar_prefetch = 0 : i64, scratch_operands = 0 : i64, tpu.core_type = #tpu.core_type<tc>, window_params = [{transform_indices = @transform_0, window_bounds = array<i64: 2, 8, 256>}, {transform_indices = @transform_1, window_bounds = array<i64: 2, 1, 8>}, {transform_indices = @transform_2, window_bounds = array<i64: 1, 256, 768>}, {transform_indices = @transform_3, window_bounds = array<i64: 1, 1, 768>}, {transform_indices = @transform_4, window_bounds = array<i64: 1, 256, 256>}, {transform_indices = @transform_5, window_bounds = array<i64: 1, 1, 256>}, {transform_indices = @transform_6, window_bounds = array<i64: 1, 1, 256>}, {transform_indices = @transform_7, window_bounds = array<i64: 1, 1, 256>}, {transform_indices = @transform_8, window_bounds = array<i64: 1, 256, 1024>}, {transform_indices = @transform_9, window_bounds = array<i64: 1, 1, 1024>}, {transform_indices = @transform_10, window_bounds = array<i64: 1, 1024, 256>}, {transform_indices = @transform_11, window_bounds = array<i64: 1, 1, 256>}, {transform_indices = @transform_12, window_bounds = array<i64: 1, 1, 256>}, {transform_indices = @transform_13, window_bounds = array<i64: 1, 1, 256>}, {transform_indices = @transform_14, window_bounds = array<i64: 2, 8, 256>}]} {
    %c0_i32 = arith.constant 0 : i32
    %0 = arith.cmpi eq, %arg1, %c0_i32 : i32
    %1 = arith.extui %0 : i1 to i32
    %c0_i32_0 = arith.constant 0 : i32
    %2 = arith.cmpi ne, %1, %c0_i32_0 : i32
    scf.if %2 {
      %c0_87 = arith.constant 0 : index
      %c0_88 = arith.constant 0 : index
      %c0_89 = arith.constant 0 : index
      %173 = vector.load %arg2[%c0_87, %c0_88, %c0_89] : memref<2x8x256xf32, #tpu.memory_space<vmem>>, vector<2x8x256xf32>
      %c0_90 = arith.constant 0 : index
      %c0_91 = arith.constant 0 : index
      %c0_92 = arith.constant 0 : index
      %174 = vector.load %arg16[%c0_90, %c0_91, %c0_92] : memref<2x8x256xf32, #tpu.memory_space<vmem>>, vector<2x8x256xf32>
      tpu.vector_store %arg16[%c0_90, %c0_91, %c0_92], %173 {strides = array<i32>} : memref<2x8x256xf32, #tpu.memory_space<vmem>>, vector<2x8x256xf32>,
    } else {
    }
    %c0 = arith.constant 0 : index
    %c0_1 = arith.constant 0 : index
    %c0_2 = arith.constant 0 : index
    %3 = vector.load %arg16[%c0, %c0_1, %c0_2] : memref<2x8x256xf32, #tpu.memory_space<vmem>>, vector<2x8x256xf32>
    %4 = vector.shape_cast %3 : vector<2x8x256xf32> to vector<16x256xf32>
    %5 = arith.truncf %4 : vector<16x256xf32> to vector<16x256xbf16>
    %c0_3 = arith.constant 0 : index
    %c0_4 = arith.constant 0 : index
    %c0_5 = arith.constant 0 : index
    %6 = vector.load %arg3[%c0_3, %c0_4, %c0_5] : memref<2x1x8xf32, #tpu.memory_space<vmem>>, vector<2x1x8xf32>
    %cst = arith.constant 1.000000e+00 : f32
    %7 = vector.broadcast %cst : f32 to vector<2x1x8xf32>
    %8 = arith.subf %6, %7 : vector<2x1x8xf32>
    %cst_6 = arith.constant 1.000000e+10 : f32
    %9 = vector.broadcast %cst_6 : f32 to vector<2x1x8xf32>
    %10 = arith.mulf %8, %9 : vector<2x1x8xf32>
    %c0_7 = arith.constant 0 : index
    %c0_8 = arith.constant 0 : index
    %c0_9 = arith.constant 0 : index
    %11 = vector.load %arg4[%c0_7, %c0_8, %c0_9] : memref<1x256x768xbf16, #tpu.memory_space<vmem>>, vector<1x256x768xbf16>
    %12 = vector.shape_cast %11 : vector<1x256x768xbf16> to vector<256x768xbf16>
    %cst_10 = arith.constant dense<0.000000e+00> : vector<16x768xf32>
    %13 = tpu.matmul %5, %12, %cst_10 {dimension_numbers = #tpu.dot_dimension_numbers<[1], [0], [0], [1], [0, 0, 1, 1], [], []>} : vector<16x256xbf16>, vector<256x768xbf16>, vector<16x768xf32> -> vector<16x768xf32>
    %c0_11 = arith.constant 0 : index
    %c0_12 = arith.constant 0 : index
    %c0_13 = arith.constant 0 : index
    %14 = vector.load %arg5[%c0_11, %c0_12, %c0_13] : memref<1x1x768xf32, #tpu.memory_space<vmem>>, vector<1x1x768xf32>
    %15 = vector.shape_cast %14 : vector<1x1x768xf32> to vector<1x768xf32>
    %16 = vector.broadcast %15 : vector<1x768xf32> to vector<16x768xf32>
    %17 = arith.addf %13, %16 : vector<16x768xf32>
    %18 = vector.extract_strided_slice %17 {offsets = [0, 0], sizes = [16, 256], strides = [1, 1]} : vector<16x768xf32> to vector<16x256xf32>
    %19 = vector.shape_cast %18 : vector<16x256xf32> to vector<2x8x256xf32>
    %20 = vector.extract_strided_slice %17 {offsets = [0, 256], sizes = [16, 256], strides = [1, 1]} : vector<16x768xf32> to vector<16x256xf32>
    %21 = vector.shape_cast %20 : vector<16x256xf32> to vector<2x8x256xf32>
    %22 = vector.extract_strided_slice %17 {offsets = [0, 512], sizes = [16, 256], strides = [1, 1]} : vector<16x768xf32> to vector<16x256xf32>
    %23 = vector.shape_cast %22 : vector<16x256xf32> to vector<2x8x256xf32>
    %cst_14 = arith.constant 0.000000e+00 : f32
    %24 = vector.broadcast %cst_14 : f32 to vector<16x256xf32>
    %25 = vector.extract_strided_slice %19 {offsets = [0, 0, 0], sizes = [2, 8, 128], strides = [1, 1, 1]} : vector<2x8x256xf32> to vector<2x8x128xf32>
    %26 = arith.truncf %25 : vector<2x8x128xf32> to vector<2x8x128xbf16>
    %27 = vector.extract_strided_slice %21 {offsets = [0, 0, 0], sizes = [2, 8, 128], strides = [1, 1, 1]} : vector<2x8x256xf32> to vector<2x8x128xf32>
    %28 = arith.truncf %27 : vector<2x8x128xf32> to vector<2x8x128xbf16>
    %29 = vector.extract_strided_slice %23 {offsets = [0, 0, 0], sizes = [2, 8, 128], strides = [1, 1, 1]} : vector<2x8x256xf32> to vector<2x8x128xf32>
    %30 = arith.truncf %29 : vector<2x8x128xf32> to vector<2x8x128xbf16>
    "tpu.trace_start"() <{level = 10 : i32, message = "bqd,bkd->bqk"}> : () -> ()
    %cst_15 = arith.constant dense<0.000000e+00> : vector<2x8x8xf32>
    %31 = tpu.matmul %26, %28, %cst_15 {dimension_numbers = #tpu.dot_dimension_numbers<[2], [2], [1], [1], [0, 0, 0, 1, 1, 1], [0], [0]>} : vector<2x8x128xbf16>, vector<2x8x128xbf16>, vector<2x8x8xf32> -> vector<2x8x8xf32>
    "tpu.trace_stop"() : () -> ()
    %cst_16 = arith.constant 0.0883883461 : f32
    %32 = vector.broadcast %cst_16 : f32 to vector<2x8x8xf32>
    %33 = arith.mulf %31, %32 : vector<2x8x8xf32>
    %34 = vector.broadcast %10 : vector<2x1x8xf32> to vector<2x8x8xf32>
    %35 = arith.addf %33, %34 : vector<2x8x8xf32>
    %cst_17 = arith.constant dense<0xFF800000> : vector<2x8xf32>
    %36 = vector.multi_reduction <maximumf>, %35, %cst_17 [2] : vector<2x8x8xf32> to vector<2x8xf32>
    %37 = vector.shape_cast %36 : vector<2x8xf32> to vector<2x8x1xf32>
    %38 = vector.broadcast %37 : vector<2x8x1xf32> to vector<2x8x8xf32>
    %39 = arith.subf %35, %38 : vector<2x8x8xf32>
    %40 = math.exp %39 : vector<2x8x8xf32>
    %cst_18 = arith.constant dense<0.000000e+00> : vector<2x8xf32>
    %41 = vector.multi_reduction <add>, %40, %cst_18 [2] : vector<2x8x8xf32> to vector<2x8xf32>
    %42 = vector.shape_cast %41 : vector<2x8xf32> to vector<2x8x1xf32>
    %43 = tpu.reciprocal %42 {approx = true} : vector<2x8x1xf32> -> vector<2x8x1xf32>
    %44 = arith.truncf %40 : vector<2x8x8xf32> to vector<2x8x8xbf16>
    "tpu.trace_start"() <{level = 10 : i32, message = "bqk,bkd->bqd"}> : () -> ()
    %cst_19 = arith.constant dense<0.000000e+00> : vector<2x8x128xf32>
    %45 = tpu.matmul %44, %30, %cst_19 {dimension_numbers = #tpu.dot_dimension_numbers<[2], [1], [1], [2], [0, 0, 0, 1, 1, 2], [0], [0]>} : vector<2x8x8xbf16>, vector<2x8x128xbf16>, vector<2x8x128xf32> -> vector<2x8x128xf32>
    "tpu.trace_stop"() : () -> ()
    %46 = vector.broadcast %43 : vector<2x8x1xf32> to vector<2x8x128xf32>
    %47 = arith.mulf %45, %46 : vector<2x8x128xf32>
    %48 = vector.shape_cast %47 : vector<2x8x128xf32> to vector<16x128xf32>
    %49 = arith.truncf %48 : vector<16x128xf32> to vector<16x128xbf16>
    %c0_20 = arith.constant 0 : index
    %c0_21 = arith.constant 0 : index
    %c0_22 = arith.constant 0 : index
    %50 = vector.load %arg6[%c0_20, %c0_21, %c0_22] : memref<1x256x256xbf16, #tpu.memory_space<vmem>>, vector<1x128x256xbf16>
    %51 = vector.shape_cast %50 : vector<1x128x256xbf16> to vector<128x256xbf16>
    %cst_23 = arith.constant dense<0.000000e+00> : vector<16x256xf32>
    %52 = tpu.matmul %49, %51, %cst_23 {dimension_numbers = #tpu.dot_dimension_numbers<[1], [0], [0], [1], [0, 0, 1, 1], [], []>} : vector<16x128xbf16>, vector<128x256xbf16>, vector<16x256xf32> -> vector<16x256xf32>
    %53 = arith.addf %24, %52 : vector<16x256xf32>
    %54 = vector.extract_strided_slice %19 {offsets = [0, 0, 128], sizes = [2, 8, 128], strides = [1, 1, 1]} : vector<2x8x256xf32> to vector<2x8x128xf32>
    %55 = arith.truncf %54 : vector<2x8x128xf32> to vector<2x8x128xbf16>
    %56 = vector.extract_strided_slice %21 {offsets = [0, 0, 128], sizes = [2, 8, 128], strides = [1, 1, 1]} : vector<2x8x256xf32> to vector<2x8x128xf32>
    %57 = arith.truncf %56 : vector<2x8x128xf32> to vector<2x8x128xbf16>
    %58 = vector.extract_strided_slice %23 {offsets = [0, 0, 128], sizes = [2, 8, 128], strides = [1, 1, 1]} : vector<2x8x256xf32> to vector<2x8x128xf32>
    %59 = arith.truncf %58 : vector<2x8x128xf32> to vector<2x8x128xbf16>
    "tpu.trace_start"() <{level = 10 : i32, message = "bqd,bkd->bqk"}> : () -> ()
    %cst_24 = arith.constant dense<0.000000e+00> : vector<2x8x8xf32>
    %60 = tpu.matmul %55, %57, %cst_24 {dimension_numbers = #tpu.dot_dimension_numbers<[2], [2], [1], [1], [0, 0, 0, 1, 1, 1], [0], [0]>} : vector<2x8x128xbf16>, vector<2x8x128xbf16>, vector<2x8x8xf32> -> vector<2x8x8xf32>
    "tpu.trace_stop"() : () -> ()
    %cst_25 = arith.constant 0.0883883461 : f32
    %61 = vector.broadcast %cst_25 : f32 to vector<2x8x8xf32>
    %62 = arith.mulf %60, %61 : vector<2x8x8xf32>
    %63 = vector.broadcast %10 : vector<2x1x8xf32> to vector<2x8x8xf32>
    %64 = arith.addf %62, %63 : vector<2x8x8xf32>
    %cst_26 = arith.constant dense<0xFF800000> : vector<2x8xf32>
    %65 = vector.multi_reduction <maximumf>, %64, %cst_26 [2] : vector<2x8x8xf32> to vector<2x8xf32>
    %66 = vector.shape_cast %65 : vector<2x8xf32> to vector<2x8x1xf32>
    %67 = vector.broadcast %66 : vector<2x8x1xf32> to vector<2x8x8xf32>
    %68 = arith.subf %64, %67 : vector<2x8x8xf32>
    %69 = math.exp %68 : vector<2x8x8xf32>
    %cst_27 = arith.constant dense<0.000000e+00> : vector<2x8xf32>
    %70 = vector.multi_reduction <add>, %69, %cst_27 [2] : vector<2x8x8xf32> to vector<2x8xf32>
    %71 = vector.shape_cast %70 : vector<2x8xf32> to vector<2x8x1xf32>
    %72 = tpu.reciprocal %71 {approx = true} : vector<2x8x1xf32> -> vector<2x8x1xf32>
    %73 = arith.truncf %69 : vector<2x8x8xf32> to vector<2x8x8xbf16>
    "tpu.trace_start"() <{level = 10 : i32, message = "bqk,bkd->bqd"}> : () -> ()
    %cst_28 = arith.constant dense<0.000000e+00> : vector<2x8x128xf32>
    %74 = tpu.matmul %73, %59, %cst_28 {dimension_numbers = #tpu.dot_dimension_numbers<[2], [1], [1], [2], [0, 0, 0, 1, 1, 2], [0], [0]>} : vector<2x8x8xbf16>, vector<2x8x128xbf16>, vector<2x8x128xf32> -> vector<2x8x128xf32>
    "tpu.trace_stop"() : () -> ()
    %75 = vector.broadcast %72 : vector<2x8x1xf32> to vector<2x8x128xf32>
    %76 = arith.mulf %74, %75 : vector<2x8x128xf32>
    %77 = vector.shape_cast %76 : vector<2x8x128xf32> to vector<16x128xf32>
    %78 = arith.truncf %77 : vector<16x128xf32> to vector<16x128xbf16>
    %c0_29 = arith.constant 0 : index
    %c128 = arith.constant 128 : index
    %c0_30 = arith.constant 0 : index
    %79 = vector.load %arg6[%c0_29, %c128, %c0_30] : memref<1x256x256xbf16, #tpu.memory_space<vmem>>, vector<1x128x256xbf16>
    %80 = vector.shape_cast %79 : vector<1x128x256xbf16> to vector<128x256xbf16>
    %cst_31 = arith.constant dense<0.000000e+00> : vector<16x256xf32>
    %81 = tpu.matmul %78, %80, %cst_31 {dimension_numbers = #tpu.dot_dimension_numbers<[1], [0], [0], [1], [0, 0, 1, 1], [], []>} : vector<16x128xbf16>, vector<128x256xbf16>, vector<16x256xf32> -> vector<16x256xf32>
    %82 = arith.addf %53, %81 : vector<16x256xf32>
    %c0_32 = arith.constant 0 : index
    %c0_33 = arith.constant 0 : index
    %c0_34 = arith.constant 0 : index
    %83 = vector.load %arg7[%c0_32, %c0_33, %c0_34] : memref<1x1x256xf32, #tpu.memory_space<vmem>>, vector<1x1x256xf32>
    %84 = vector.shape_cast %83 : vector<1x1x256xf32> to vector<1x256xf32>
    %85 = vector.broadcast %84 : vector<1x256xf32> to vector<16x256xf32>
    %86 = arith.addf %82, %85 : vector<16x256xf32>
    %87 = arith.addf %86, %4 : vector<16x256xf32>
    %cst_35 = arith.constant dense<0.000000e+00> : vector<16xf32>
    %88 = vector.multi_reduction <add>, %87, %cst_35 [1] : vector<16x256xf32> to vector<16xf32>
    %89 = vector.shape_cast %88 : vector<16xf32> to vector<16x1xf32>
    %cst_36 = arith.constant 2.560000e+02 : f32
    %90 = vector.broadcast %cst_36 : f32 to vector<16x1xf32>
    %91 = arith.divf %89, %90 : vector<16x1xf32>
    %92 = vector.broadcast %91 : vector<16x1xf32> to vector<16x256xf32>
    %93 = arith.subf %87, %92 : vector<16x256xf32>
    %94 = arith.mulf %93, %93 : vector<16x256xf32>
    %cst_37 = arith.constant dense<0.000000e+00> : vector<16xf32>
    %95 = vector.multi_reduction <add>, %94, %cst_37 [1] : vector<16x256xf32> to vector<16xf32>
    %96 = vector.shape_cast %95 : vector<16xf32> to vector<16x1xf32>
    %cst_38 = arith.constant 2.560000e+02 : f32
    %97 = vector.broadcast %cst_38 : f32 to vector<16x1xf32>
    %98 = arith.divf %96, %97 : vector<16x1xf32>
    %cst_39 = arith.constant 9.99999974E-6 : f32
    %99 = vector.broadcast %cst_39 : f32 to vector<16x1xf32>
    %100 = arith.addf %98, %99 : vector<16x1xf32>
    %101 = math.rsqrt %100 : vector<16x1xf32>
    %102 = vector.broadcast %101 : vector<16x1xf32> to vector<16x256xf32>
    %103 = arith.mulf %93, %102 : vector<16x256xf32>
    %c0_40 = arith.constant 0 : index
    %c0_41 = arith.constant 0 : index
    %c0_42 = arith.constant 0 : index
    %104 = vector.load %arg8[%c0_40, %c0_41, %c0_42] : memref<1x1x256xf32, #tpu.memory_space<vmem>>, vector<1x1x256xf32>
    %105 = vector.shape_cast %104 : vector<1x1x256xf32> to vector<1x256xf32>
    %106 = vector.broadcast %105 : vector<1x256xf32> to vector<16x256xf32>
    %107 = arith.mulf %103, %106 : vector<16x256xf32>
    %c0_43 = arith.constant 0 : index
    %c0_44 = arith.constant 0 : index
    %c0_45 = arith.constant 0 : index
    %108 = vector.load %arg9[%c0_43, %c0_44, %c0_45] : memref<1x1x256xf32, #tpu.memory_space<vmem>>, vector<1x1x256xf32>
    %109 = vector.shape_cast %108 : vector<1x1x256xf32> to vector<1x256xf32>
    %110 = vector.broadcast %109 : vector<1x256xf32> to vector<16x256xf32>
    %111 = arith.addf %107, %110 : vector<16x256xf32>
    %112 = arith.truncf %111 : vector<16x256xf32> to vector<16x256xbf16>
    %cst_46 = arith.constant 0.000000e+00 : f32
    %113 = vector.broadcast %cst_46 : f32 to vector<16x256xf32>
    %c0_47 = arith.constant 0 : index
    %c0_48 = arith.constant 0 : index
    %c0_49 = arith.constant 0 : index
    %114 = vector.load %arg10[%c0_47, %c0_48, %c0_49] : memref<1x256x1024xbf16, #tpu.memory_space<vmem>>, vector<1x256x512xbf16>
    %115 = vector.shape_cast %114 : vector<1x256x512xbf16> to vector<256x512xbf16>
    %cst_50 = arith.constant dense<0.000000e+00> : vector<16x512xf32>
    %116 = tpu.matmul %112, %115, %cst_50 {dimension_numbers = #tpu.dot_dimension_numbers<[1], [0], [0], [1], [0, 0, 1, 1], [], []>} : vector<16x256xbf16>, vector<256x512xbf16>, vector<16x512xf32> -> vector<16x512xf32>
    %c0_51 = arith.constant 0 : index
    %c0_52 = arith.constant 0 : index
    %c0_53 = arith.constant 0 : index
    %117 = vector.load %arg11[%c0_51, %c0_52, %c0_53] : memref<1x1x1024xf32, #tpu.memory_space<vmem>>, vector<1x1x512xf32>
    %118 = vector.shape_cast %117 : vector<1x1x512xf32> to vector<1x512xf32>
    %119 = vector.broadcast %118 : vector<1x512xf32> to vector<16x512xf32>
    %120 = arith.addf %116, %119 : vector<16x512xf32>
    %cst_54 = arith.constant 0.000000e+00 : f32
    %121 = vector.broadcast %cst_54 : f32 to vector<16x512xf32>
    %122 = arith.maximumf %120, %121 : vector<16x512xf32>
    %123 = arith.truncf %122 : vector<16x512xf32> to vector<16x512xbf16>
    %c0_55 = arith.constant 0 : index
    %c0_56 = arith.constant 0 : index
    %c0_57 = arith.constant 0 : index
    %124 = vector.load %arg12[%c0_55, %c0_56, %c0_57] : memref<1x1024x256xbf16, #tpu.memory_space<vmem>>, vector<1x512x256xbf16>
    %125 = vector.shape_cast %124 : vector<1x512x256xbf16> to vector<512x256xbf16>
    %cst_58 = arith.constant dense<0.000000e+00> : vector<16x256xf32>
    %126 = tpu.matmul %123, %125, %cst_58 {dimension_numbers = #tpu.dot_dimension_numbers<[1], [0], [0], [1], [0, 0, 1, 1], [], []>} : vector<16x512xbf16>, vector<512x256xbf16>, vector<16x256xf32> -> vector<16x256xf32>
    %127 = arith.addf %113, %126 : vector<16x256xf32>
    %c0_59 = arith.constant 0 : index
    %c0_60 = arith.constant 0 : index
    %c512 = arith.constant 512 : index
    %128 = vector.load %arg10[%c0_59, %c0_60, %c512] : memref<1x256x1024xbf16, #tpu.memory_space<vmem>>, vector<1x256x512xbf16>
    %129 = vector.shape_cast %128 : vector<1x256x512xbf16> to vector<256x512xbf16>
    %cst_61 = arith.constant dense<0.000000e+00> : vector<16x512xf32>
    %130 = tpu.matmul %112, %129, %cst_61 {dimension_numbers = #tpu.dot_dimension_numbers<[1], [0], [0], [1], [0, 0, 1, 1], [], []>} : vector<16x256xbf16>, vector<256x512xbf16>, vector<16x512xf32> -> vector<16x512xf32>
    %c0_62 = arith.constant 0 : index
    %c0_63 = arith.constant 0 : index
    %c512_64 = arith.constant 512 : index
    %131 = vector.load %arg11[%c0_62, %c0_63, %c512_64] : memref<1x1x1024xf32, #tpu.memory_space<vmem>>, vector<1x1x512xf32>
    %132 = vector.shape_cast %131 : vector<1x1x512xf32> to vector<1x512xf32>
    %133 = vector.broadcast %132 : vector<1x512xf32> to vector<16x512xf32>
    %134 = arith.addf %130, %133 : vector<16x512xf32>
    %cst_65 = arith.constant 0.000000e+00 : f32
    %135 = vector.broadcast %cst_65 : f32 to vector<16x512xf32>
    %136 = arith.maximumf %134, %135 : vector<16x512xf32>
    %137 = arith.truncf %136 : vector<16x512xf32> to vector<16x512xbf16>
    %c0_66 = arith.constant 0 : index
    %c512_67 = arith.constant 512 : index
    %c0_68 = arith.constant 0 : index
    %138 = vector.load %arg12[%c0_66, %c512_67, %c0_68] : memref<1x1024x256xbf16, #tpu.memory_space<vmem>>, vector<1x512x256xbf16>
    %139 = vector.shape_cast %138 : vector<1x512x256xbf16> to vector<512x256xbf16>
    %cst_69 = arith.constant dense<0.000000e+00> : vector<16x256xf32>
    %140 = tpu.matmul %137, %139, %cst_69 {dimension_numbers = #tpu.dot_dimension_numbers<[1], [0], [0], [1], [0, 0, 1, 1], [], []>} : vector<16x512xbf16>, vector<512x256xbf16>, vector<16x256xf32> -> vector<16x256xf32>
    %141 = arith.addf %127, %140 : vector<16x256xf32>
    %c0_70 = arith.constant 0 : index
    %c0_71 = arith.constant 0 : index
    %c0_72 = arith.constant 0 : index
    %142 = vector.load %arg13[%c0_70, %c0_71, %c0_72] : memref<1x1x256xf32, #tpu.memory_space<vmem>>, vector<1x1x256xf32>
    %143 = vector.shape_cast %142 : vector<1x1x256xf32> to vector<1x256xf32>
    %144 = vector.broadcast %143 : vector<1x256xf32> to vector<16x256xf32>
    %145 = arith.addf %141, %144 : vector<16x256xf32>
    %146 = arith.addf %145, %111 : vector<16x256xf32>
    %cst_73 = arith.constant dense<0.000000e+00> : vector<16xf32>
    %147 = vector.multi_reduction <add>, %146, %cst_73 [1] : vector<16x256xf32> to vector<16xf32>
    %148 = vector.shape_cast %147 : vector<16xf32> to vector<16x1xf32>
    %cst_74 = arith.constant 2.560000e+02 : f32
    %149 = vector.broadcast %cst_74 : f32 to vector<16x1xf32>
    %150 = arith.divf %148, %149 : vector<16x1xf32>
    %151 = vector.broadcast %150 : vector<16x1xf32> to vector<16x256xf32>
    %152 = arith.subf %146, %151 : vector<16x256xf32>
    %153 = arith.mulf %152, %152 : vector<16x256xf32>
    %cst_75 = arith.constant dense<0.000000e+00> : vector<16xf32>
    %154 = vector.multi_reduction <add>, %153, %cst_75 [1] : vector<16x256xf32> to vector<16xf32>
    %155 = vector.shape_cast %154 : vector<16xf32> to vector<16x1xf32>
    %cst_76 = arith.constant 2.560000e+02 : f32
    %156 = vector.broadcast %cst_76 : f32 to vector<16x1xf32>
    %157 = arith.divf %155, %156 : vector<16x1xf32>
    %cst_77 = arith.constant 9.99999974E-6 : f32
    %158 = vector.broadcast %cst_77 : f32 to vector<16x1xf32>
    %159 = arith.addf %157, %158 : vector<16x1xf32>
    %160 = math.rsqrt %159 : vector<16x1xf32>
    %161 = vector.broadcast %160 : vector<16x1xf32> to vector<16x256xf32>
    %162 = arith.mulf %152, %161 : vector<16x256xf32>
    %c0_78 = arith.constant 0 : index
    %c0_79 = arith.constant 0 : index
    %c0_80 = arith.constant 0 : index
    %163 = vector.load %arg14[%c0_78, %c0_79, %c0_80] : memref<1x1x256xf32, #tpu.memory_space<vmem>>, vector<1x1x256xf32>
    %164 = vector.shape_cast %163 : vector<1x1x256xf32> to vector<1x256xf32>
    %165 = vector.broadcast %164 : vector<1x256xf32> to vector<16x256xf32>
    %166 = arith.mulf %162, %165 : vector<16x256xf32>
    %c0_81 = arith.constant 0 : index
    %c0_82 = arith.constant 0 : index
    %c0_83 = arith.constant 0 : index
    %167 = vector.load %arg15[%c0_81, %c0_82, %c0_83] : memref<1x1x256xf32, #tpu.memory_space<vmem>>, vector<1x1x256xf32>
    %168 = vector.shape_cast %167 : vector<1x1x256xf32> to vector<1x256xf32>
    %169 = vector.broadcast %168 : vector<1x256xf32> to vector<16x256xf32>
    %170 = arith.addf %166, %169 : vector<16x256xf32>
    %171 = vector.shape_cast %170 : vector<16x256xf32> to vector<2x8x256xf32>
    %c0_84 = arith.constant 0 : index
    %c0_85 = arith.constant 0 : index
    %c0_86 = arith.constant 0 : index
    %172 = vector.load %arg16[%c0_84, %c0_85, %c0_86] : memref<2x8x256xf32, #tpu.memory_space<vmem>>, vector<2x8x256xf32>
    tpu.vector_store %arg16[%c0_84, %c0_85, %c0_86], %171 {strides = array<i32>} : memref<2x8x256xf32, #tpu.memory_space<vmem>>, vector<2x8x256xf32>,
    return
  }
  func.func @transform_0(%arg0: i32, %arg1: i32) -> (i32, i32, i32) {
    %c0_i32 = arith.constant 0 : i32
    %c0_i32_0 = arith.constant 0 : i32
    %c0_i32_1 = arith.constant 0 : i32
    return %arg0, %c0_i32, %c0_i32_0 : i32, i32, i32
  }
  func.func @transform_1(%arg0: i32, %arg1: i32) -> (i32, i32, i32) {
    %c0_i32 = arith.constant 0 : i32
    %c0_i32_0 = arith.constant 0 : i32
    %c0_i32_1 = arith.constant 0 : i32
    return %arg0, %c0_i32, %c0_i32_0 : i32, i32, i32
  }
  func.func @transform_2(%arg0: i32, %arg1: i32) -> (i32, i32, i32) {
    %c0_i32 = arith.constant 0 : i32
    %c0_i32_0 = arith.constant 0 : i32
    %c0_i32_1 = arith.constant 0 : i32
    return %arg1, %c0_i32, %c0_i32_0 : i32, i32, i32
  }
  func.func @transform_3(%arg0: i32, %arg1: i32) -> (i32, i32, i32) {
    %c0_i32 = arith.constant 0 : i32
    %c0_i32_0 = arith.constant 0 : i32
    %c0_i32_1 = arith.constant 0 : i32
    return %arg1, %c0_i32, %c0_i32_0 : i32, i32, i32
  }
  func.func @transform_4(%arg0: i32, %arg1: i32) -> (i32, i32, i32) {
    %c0_i32 = arith.constant 0 : i32
    %c0_i32_0 = arith.constant 0 : i32
    %c0_i32_1 = arith.constant 0 : i32
    return %arg1, %c0_i32, %c0_i32_0 : i32, i32, i32
  }
  func.func @transform_5(%arg0: i32, %arg1: i32) -> (i32, i32, i32) {
    %c0_i32 = arith.constant 0 : i32
    %c0_i32_0 = arith.constant 0 : i32
    %c0_i32_1 = arith.constant 0 : i32
    return %arg1, %c0_i32, %c0_i32_0 : i32, i32, i32
  }
  func.func @transform_6(%arg0: i32, %arg1: i32) -> (i32, i32, i32) {
    %c0_i32 = arith.constant 0 : i32
    %c0_i32_0 = arith.constant 0 : i32
    %c0_i32_1 = arith.constant 0 : i32
    return %arg1, %c0_i32, %c0_i32_0 : i32, i32, i32
  }
  func.func @transform_7(%arg0: i32, %arg1: i32) -> (i32, i32, i32) {
    %c0_i32 = arith.constant 0 : i32
    %c0_i32_0 = arith.constant 0 : i32
    %c0_i32_1 = arith.constant 0 : i32
    return %arg1, %c0_i32, %c0_i32_0 : i32, i32, i32
  }
  func.func @transform_8(%arg0: i32, %arg1: i32) -> (i32, i32, i32) {
    %c0_i32 = arith.constant 0 : i32
    %c0_i32_0 = arith.constant 0 : i32
    %c0_i32_1 = arith.constant 0 : i32
    return %arg1, %c0_i32, %c0_i32_0 : i32, i32, i32
  }
  func.func @transform_9(%arg0: i32, %arg1: i32) -> (i32, i32, i32) {
    %c0_i32 = arith.constant 0 : i32
    %c0_i32_0 = arith.constant 0 : i32
    %c0_i32_1 = arith.constant 0 : i32
    return %arg1, %c0_i32, %c0_i32_0 : i32, i32, i32
  }
  func.func @transform_10(%arg0: i32, %arg1: i32) -> (i32, i32, i32) {
    %c0_i32 = arith.constant 0 : i32
    %c0_i32_0 = arith.constant 0 : i32
    %c0_i32_1 = arith.constant 0 : i32
    return %arg1, %c0_i32, %c0_i32_0 : i32, i32, i32
  }
  func.func @transform_11(%arg0: i32, %arg1: i32) -> (i32, i32, i32) {
    %c0_i32 = arith.constant 0 : i32
    %c0_i32_0 = arith.constant 0 : i32
    %c0_i32_1 = arith.constant 0 : i32
    return %arg1, %c0_i32, %c0_i32_0 : i32, i32, i32
  }
  func.func @transform_12(%arg0: i32, %arg1: i32) -> (i32, i32, i32) {
    %c0_i32 = arith.constant 0 : i32
    %c0_i32_0 = arith.constant 0 : i32
    %c0_i32_1 = arith.constant 0 : i32
    return %arg1, %c0_i32, %c0_i32_0 : i32, i32, i32
  }
  func.func @transform_13(%arg0: i32, %arg1: i32) -> (i32, i32, i32) {
    %c0_i32 = arith.constant 0 : i32
    %c0_i32_0 = arith.constant 0 : i32
    %c0_i32_1 = arith.constant 0 : i32
    return %arg1, %c0_i32, %c0_i32_0 : i32, i32, i32
  }
  func.func @transform_14(%arg0: i32, %arg1: i32) -> (i32, i32, i32) {
    %c0_i32 = arith.constant 0 : i32
    %c0_i32_0 = arith.constant 0 : i32
    %c0_i32_1 = arith.constant 0 : i32
    return %arg0, %c0_i32, %c0_i32_0 : i32, i32, i32
  }
}

</mosaic_0001>

<bundles_post_ra>
// kernel: tpu_custom_call.1
= control target key start
LH: loop header
LB: loop body
LE: loop exit
PB: predicated region body
PF: predicated region fallthrough
CT: control target
= control target key end

     0   :  { %s8835_s0 = inlined_call_operand.hbm [shape: f32[4,8,256], index: 0, kind: input, shape index: {}]   ;;  %s8836_s1 = inlined_call_operand.hbm [shape: f32[4,1,8], index: 1, kind: input, shape index: {}]   ;;  %s8837_s2 = inlined_call_operand.hbm [shape: bf16[2,256,768], index: 2, kind: input, shape index: {}]   ;;  %s8838_s3 = inlined_call_operand.hbm [shape: f32[2,1,768], index: 3, kind: input, shape index: {}]   ;;  %s8839_s4 = inlined_call_operand.hbm [shape: bf16[2,256,256], index: 4, kind: input, shape index: {}]   ;;  %s8840_s5 = inlined_call_operand.vmem [shape: f32[2,1,256], index: 5, kind: input, shape index: {}]   ;;  %s8841_s6 = inlined_call_operand.hbm [shape: f32[2,1,256], index: 6, kind: input, shape index: {}]   ;;  %s8842_s7 = inlined_call_operand.hbm [shape: f32[2,1,256], index: 7, kind: input, shape index: {}]   ;;  %s8843_s8 = inlined_call_operand.hbm [shape: bf16[2,256,1024], index: 8, kind: input, shape index: {}]   ;;  %s8844_s9 = inlined_call_operand.hbm [shape: f32[2,1,1024], index: 9, kind: input, shape index: {}]   ;;  %s8845_s10 = inlined_call_operand.hbm [shape: bf16[2,1024,256], index: 10, kind: input, shape index: {}]   ;;  %s8846_s11 = inlined_call_operand.vmem [shape: f32[2,1,256], index: 11, kind: input, shape index: {}]   ;;  %s8847_s12 = inlined_call_operand.hbm [shape: f32[2,1,256], index: 12, kind: input, shape index: {}]   ;;  %s8848_s13 = inlined_call_operand.vmem [shape: f32[2,1,256], index: 13, kind: input, shape index: {}]   ;;  %s8849_s14 = inlined_call_operand.hbm [shape: f32[4,8,256], index: 14, kind: output, shape index: {}]  }
   0x1   :  { %8877 = sst [smem:[#allocation45_spill]] %s8835_s0 }
   0x2   :  { %8878 = sst [smem:[#allocation46_spill]] %s8836_s1 }
   0x3   :  { %8879 = sst [smem:[#allocation47_spill]] %s8837_s2 }
   0x4   :  { %8880 = sst [smem:[#allocation48_spill]] %s8838_s3 }
   0x5   :  { %8881 = sst [smem:[#allocation49_spill]] %s8839_s4 }
   0x6   :  { %8882 = sst [smem:[#allocation50_spill]] %s8840_s5 }
   0x7   :  { %8883 = sst [smem:[#allocation51_spill]] %s8841_s6 }
   0x8   :  { %8884 = sst [smem:[#allocation52_spill]] %s8842_s7 }
   0x9   :  { %8885 = sst [smem:[#allocation53_spill]] %s8843_s8 }
   0xa   :  { %8886 = sst [smem:[#allocation54_spill]] %s8844_s9 }
   0xb   :  { %8887 = sst [smem:[#allocation55_spill]] %s8845_s10 }
   0xc   :  { %8888 = sst [smem:[#allocation56_spill]] %s8846_s11 }
   0xd   :  { %8889 = sst [smem:[#allocation57_spill]] %s8847_s12 }
   0xe   :  { %8890 = sst [smem:[#allocation58_spill]] %s8848_s13 }
   0xf   :  { %8891 = sst [smem:[#allocation59_spill]] %s8849_s14 }
  0x10   :  { %19 = vsyncpa [#allocation3], 0 }
  0x11   :  { %21 = vsyncpa [#allocation3 + $0x1], 0 }
  0x12   :  { %22 = vsyncpa [#allocation6], 0 }
  0x13   :  { %24 = vsyncpa [#allocation6 + $0x1], 0 }
  0x14   :  { %25 = vsyncpa [#allocation9], 0 }
  0x15   :  { %27 = vsyncpa [#allocation9 + $0x1], 0 }
  0x16   :  { %28 = vsyncpa [#allocation12], 0 }
  0x17   :  { %30 = vsyncpa [#allocation12 + $0x1], 0 }
  0x18   :  { %31 = vsyncpa [#allocation15], 0 }
  0x19   :  { %33 = vsyncpa [#allocation15 + $0x1], 0 }
  0x1a   :  { %34 = vsyncpa [#allocation18], 0 }
  0x1b   :  { %36 = vsyncpa [#allocation18 + $0x1], 0 }
  0x1c   :  { %37 = vsyncpa [#allocation4], 0 }
  0x1d   :  { %39 = vsyncpa [#allocation4 + $0x1], 0  ;;  %s7432_s29 = smov 0   ;;  %s7434_s30 = smov 0  }
  0x1e   :  { %s7436_s15 = smov 0   ;;  %s7438_s16 = smov 0  }
  0x1f   :  { %s7440_s17 = smov 0   ;;  %s7442_s18 = smov 0  }
  0x20   :  { %s7444_s19 = smov 0   ;;  %s7446_s20 = smov 0  }
  0x21   :  { %s7448_s21 = smov 0   ;;  %s7450_s22 = smov 0  }
  0x22   :  { %s7452_s23 = smov 0  }
  0x23 LB: > { %8892 = sst [smem:[#allocation29_spill]] %s7307_s30  ;;  %s7488_s24 = sadd.s32 4294967295, %s7343_s23   ;;  %s7343_s23 = sphi %s7452_s23, %s45_s23   ;;  %s7339_s22 = sphi %s7450_s22, %s8965_s22   ;;  %s7335_s21 = sphi %s7448_s21, %s8964_s21   ;;  %s7331_s20 = sphi %s7446_s20, %s8963_s20   ;;  %s7327_s19 = sphi %s7444_s19, %s8962_s19   ;;  %s7323_s18 = sphi %s7442_s18, %s8959_s18   ;;  %s7319_s17 = sphi %s7440_s17, %s8958_s17   ;;  %s7315_s16 = sphi %s7438_s16, %s8957_s16   ;;  %s7311_s15 = sphi %s7436_s15, %s8956_s15   ;;  %s7307_s30 = sphi %s7434_s30, %s8955_s30   ;;  %s7303_s29 = sphi %s7432_s29, %s8954_s29  }
  0x24   : > { %8893 = sst [smem:[#allocation30_spill]] %s7311_s15  ;;  %s4743_s25 = sadd.s32 4294967294, %s7343_s23  }
  0x25   : > { %8894 = sst [smem:[#allocation31_spill]] %s7315_s16  ;;  %s54_s26 = sadd.s32 1, %s7335_s21 }
  0x26   : > { %8895 = sst [smem:[#allocation32_spill]] %s7319_s17  ;;  %s57_s27 = sadd.s32 1, %s7339_s22 }
  0x27   : > { %8896 = sst [smem:[#allocation33_spill]] %s7323_s18  ;;  %p55_p0 = scmp.ge.s32.totalorder %s54_s26, 2 }
  0x28   : > { %8897 = sst [smem:[#allocation34_spill]] %s7327_s19  ;;  %s64_s28 = sadd.s32 1, %s7323_s18 }
  0x29   : > { %8898 = sst [smem:[#allocation35_spill]] %s7331_s20  ;;  %p71_p1 = scmp.ne.s32.totalorder %s7323_s18, %s7319_s17 }
  0x2a   : > { %8899 = sst [smem:[#allocation36_spill]] %s7488_s24  ;;  %p72_p2 = scmp.eq.s32.totalorder %s7343_s23, 0 }
  0x2b   : > { %s8967_s26 = smov (%p55_p0, %s54_s26), 0  ;;  %s8969_s27 = smov (!%p55_p0, %s57_s27), %s7339_s22 }
  0x2c   : > { %8900 = sst [smem:[#allocation37_spill]] %s8967_s26  ;;  %p7505_p3 = por %p72_p2, %p71_p1 }
  0x2d   : > { %p8853_p4 = scmp.ne.s32.totalorder %s7319_s17, %s7315_s16  ;;  %p59_p5 = scmp.ge.s32.totalorder %s8969_s27, 2 }
  0x2e   : > { %p78_p6 = scmp.eq.s32.totalorder %s7488_s24, 0  ;;  %s113_s20 = ssub.s32 %s7335_s21, %s8967_s26 }
  0x2f   : > { %s116_s13 = sadd.s32 1, %s7311_s15  ;;  %s8971_s27 = smov (%p59_p5, %s8969_s27), 0 }
  0x30   : > { %8902 = sst [smem:[#allocation38_spill]] %s8971_s27  ;;  %p7522_p7 = por %p78_p6, %p8853_p4 }
  0x31   : > { %p114_p8 = scmp.eq.s32.totalorder %s113_s20, 0  ;;  %s61_s5 = ssub.s32 %s7339_s22, %s8971_s27 }
  0x32   : > { %s8903_s11 = scalar_select %p7522_p7, 1, 0 }
  0x33   : > { %p123_p9 = scmp.ne.s32.totalorder %s7311_s15, %s7307_s30  ;;  %p62_p10 = scmp.eq.s32.totalorder %s61_s5, 0 }
  0x34   : > { %8904 = sst [smem:[#allocation39_spill]] %s8903_s11  ;;  %p129_p11 = scmp.ne.s32.totalorder %s7307_s30, %s7303_s29 }
  0x35   : > { %s7533_s19 = scalar_select %p114_p8, %s7311_s15, %s116_s13  }
  0x36   : > { %s7536_s26 = scalar_select %p62_p10, %s7323_s18, %s64_s28  }
  0x37   : > { %8905 = sst [smem:[#allocation40_spill]] %s7533_s19  ;;  %p7540_p12 = por %p123_p9, %p72_p2 }
  0x38   : > { %8906 = sst [smem:[#allocation41_spill]] %s7536_s26  ;;  %p7546_p13 = por %p129_p11, %p78_p6 }
  0x39   : > { %p439_p0 = scmp.eq.s32.totalorder %s7488_s24, 3  ;;  %p445_p5 = scmp.eq.s32.totalorder %s4743_s25, 3 }
  0x3a   : > { %s8908_s9 = scalar_select %p7546_p13, 1, 0 }
  0x3b   : > { %p7554_p4 = por %p439_p0, %p71_p1  ;;  %p8912_p8 = scmp.ne.s32.totalorder %s7319_s17, %s7315_s16 }
  0x3c   : > { %8909 = sst [smem:[#allocation42_spill]] %s8908_s9  ;;  %p4745_p2 = scmp.ge.s32.totalorder %s7343_s23, 4 }
  0x3d   : > { %s8910_s5 = scalar_select %p7554_p4, 1, 0 }
  0x3e   : > { %p7561_p10 = por %p445_p5, %p8912_p8  ;;  %461 = sbr.rel (%p4745_p2) target bundleno = 128 (0x80), region = 16 }
  0x3f   : > { %8911 = sst [smem:[#allocation43_spill]] %s8910_s5  ;;  %s7567_s29 = sand.u32 (!%p4745_p2), 1, %s7323_s18  }
  0x40   : > { %s8913_s13 = scalar_select %p7561_p10, 1, 0 }
  0x41   : > { %s7570_s20 = sand.u32 (!%p4745_p2), 1, %s7343_s23   ;;  %s4750_s25 = sshll.u32 (!%p4745_p2), %s7567_s29, 1 }
  0x42   : > { %8914 = sst [smem:[#allocation44_spill]] %s8913_s13  ;;  %s4751_s28 = sshll.u32 (!%p4745_p2), %s7339_s22, 1 }
  0x43   : > { %s492_s27 = scalar_lea.vmem [#allocation5], %s4750_s25  ;;  %s8915_s1 = sld [smem:[#allocation46_spill]] }
  0x44   : > { %s499_s26 = sshll.u32 %s492_s27, 4  ;;  %s7578_s18 = sand.u32 1, %s7311_s15   ;;  %s500_s26 = int_to_ptr.vmem [resolvable:$true] %s499_s26 }
  0x45   : > { %s8867_s9 = scalar_lea.sflag [#allocation6], %s7570_s20  ;;  %s8869_s30 = smov 16  }
  0x46   : > { %s7346_s24 = smov 1   ;;  %s6726_s19 = smul.u32 6, %s7578_s18 }
  0x47   : > { %s6727_s27 = smul.u32 6, %s7335_s21  ;;  %s8916_s3 = sld [smem:[#allocation48_spill]] }
  0x48   : > { %s8917_s6 = sld [smem:[#allocation51_spill]]  ;;  %s8872_s25 = scalar_lea.sflag [#allocation15], %s7570_s20 }
  0x49   : > { %s496_s16 = scalar_lea.hbm %s8915_s1, %s4751_s28  ;;  %s535_s1 = scalar_lea.vmem [#allocation8], %s6726_s19 }
  0x4a   : > { %s497_s5 = sshll.u32 %s496_s16, 4  ;;  %s7590_s16 = sshll.u32 %s7578_s18, 1  ;;  %s498_s5 = int_to_ptr.hbm [resolvable:$true] %s497_s5 }
  0x4b   : > { %6731 = dma.hbm_to_vmem [thread:$0]  (%p7505_p3), %s498_s5, 32, %s500_s26, %s8867_s9, %s8869_s30, %s8869_s30, %s7346_s24  }
  0x4c   : > { %s543_s15 = sshll.u32 %s535_s1, 4  ;;  %s8868_s24 = scalar_lea.sflag [#allocation9], %s7570_s20  ;;  %s544_s15 = int_to_ptr.vmem [resolvable:$true] %s543_s15 }
  0x4d   : > { %s539_s28 = scalar_lea.hbm %s8916_s3, %s6727_s27  ;;  %s7601_s26 = sshll.u32 %s7335_s21, 1 }
  0x4e   : > { %s541_s11 = sshll.u32 %s539_s28, 4  ;;  %s583_s5 = scalar_lea.vmem [#allocation11], %s7590_s16  ;;  %s542_s11 = int_to_ptr.hbm [resolvable:$true] %s541_s11 }
  0x4f   : > { %6733 = dma.hbm_to_vmem [thread:$0]  (%p7540_p12), %s542_s11, 96, %s544_s15, %s8868_s24  }
  0x50   : > { %s591_s13 = sshll.u32 %s583_s5, 4  ;;  %s587_s19 = scalar_lea.hbm %s8917_s6, %s7601_s26  ;;  %s592_s13 = int_to_ptr.vmem [resolvable:$true] %s591_s13 }
  0x51   : > { %s589_s1 = sshll.u32 %s587_s19, 4  ;;  %s4760_s28 = sshll.u32 %s7578_s18, 10  ;;  %s590_s1 = int_to_ptr.hbm [resolvable:$true] %s589_s1 }
  0x52   : > { %s8870_s9 = scalar_lea.sflag [#allocation12], %s7570_s20  ;;  %s6336_s11 = sshll.u32 %s7335_s21, 10 }
  0x53   : > { %6735 = dma.hbm_to_vmem [thread:$0]  (%p7540_p12), %s590_s1, 32, %s592_s13, %s8870_s9  }
  0x54   : > { %s8918_s8 = sld [smem:[#allocation53_spill]]  ;;  %s621_s5 = scalar_lea.vmem [#allocation14], %s4760_s28 }
  0x55   : > { %s629_s3 = sshll.u32 %s621_s5, 4  ;;  %s7347_s19 = smov 512   ;;  %s630_s3 = int_to_ptr.vmem [resolvable:$true] %s629_s3 }
  0x56   : > { %s7348_s6 = smov 32   ;;  %s8919_s10 = sld [smem:[#allocation55_spill]] }
  0x57   : > { %s662_s9 = scalar_lea.vmem [#allocation17], %s4760_s28  ;;  %s8873_s5 = scalar_lea.sflag [#allocation18], %s7570_s20 }
  0x58   : > { %s8875_s17 = smov 8   ;;  %s8920_s0 = sld [smem:[#allocation45_spill]] }
  0x59   : > { %s466_s1 = scalar_lea.sflag [#allocation3], %s7567_s29  ;;  %s8922_s2 = sld [smem:[#allocation47_spill]] }
  0x5a   : > { %s626_s30 = scalar_lea.hbm %s8918_s8, %s6336_s11  ;;  %s8874_s8 = smov 128  }
  0x5b   : > { %s627_s27 = sshll.u32 %s626_s30, 4  ;;  %s670_s30 = sshll.u32 %s662_s9, 4  ;;  %s628_s27 = int_to_ptr.hbm [resolvable:$true] %s627_s27  ;;  %s671_s30 = int_to_ptr.vmem [resolvable:$true] %s670_s30 }
  0x5c   : > { %6737 = dma.hbm_to_vmem [thread:$0]  (%p7540_p12), %s628_s27, 16384, %s630_s3, %s8872_s25, %s7347_s19, %s7347_s19, %s7348_s6  }
  0x5d   : > { %s667_s24 = scalar_lea.hbm %s8919_s10, %s6336_s11  ;;  %s4746_s3 = sshll.u32 %s7567_s29, 5 }
  0x5e   : > { %s668_s15 = sshll.u32 %s667_s24, 4  ;;  %s6334_s6 = sshll.u32 %s7339_s22, 5  ;;  %s669_s15 = int_to_ptr.hbm [resolvable:$true] %s668_s15 }
  0x5f   : > { %6739 = dma.hbm_to_vmem [thread:$0]  (%p7540_p12), %s669_s15, 16384, %s671_s30, %s8873_s5, %s8874_s8, %s8874_s8, %s8875_s17  }
  0x60   : > { %s475_s9 = scalar_lea.hbm %s8920_s0, %s6334_s6  ;;  %s469_s27 = scalar_lea.vmem [#allocation2], %s4746_s3 }
  0x61   : > { %s478_s19 = sshll.u32 %s469_s27, 4  ;;  %s476_s13 = sshll.u32 %s475_s9, 4  ;;  %s479_s19 = int_to_ptr.vmem [resolvable:$true] %s478_s19  ;;  %s477_s13 = int_to_ptr.hbm [resolvable:$true] %s476_s13 }
  0x62   : > { %s7351_s24 = smov 256   ;;  %s8921_s25 = smov 16  }
  0x63   : > { %6730 = dma.hbm_to_vmem [thread:$0]  (%p7505_p3), %s477_s13, 512, %s479_s19, %s466_s1, %s7351_s24, %s7351_s24, %s8921_s25  }
  0x64   : > { %s6724_s15 = smul.u32 768, %s7578_s18  ;;  %s4753_s5 = sshll.u32 %s7578_s18, 8 }
  0x65   : > { %s6725_s30 = smul.u32 768, %s7335_s21  ;;  %s7352_s29 = smov 384  }
  0x66   : > { %s513_s3 = scalar_lea.vmem [#allocation7], %s6724_s15  ;;  %s7353_s14 = smov 24  }
  0x67   : > { %s518_s6 = scalar_lea.hbm %s8922_s2, %s6725_s30  ;;  %s521_s28 = sshll.u32 %s513_s3, 4  ;;  %s522_s28 = int_to_ptr.vmem [resolvable:$true] %s521_s28 }
  0x68   : > { %s519_s11 = sshll.u32 %s518_s6, 4  ;;  %s8923_s25 = scalar_lea.sflag [#allocation6], %s7570_s20  ;;  %s520_s11 = int_to_ptr.hbm [resolvable:$true] %s519_s11 }
  0x69   : > { %6732 = dma.hbm_to_vmem [thread:$0]  (%p7540_p12), %s520_s11, 12288, %s522_s28, %s8923_s25, %s7352_s29, %s7352_s29, %s7353_s14  }
  0x6a   : > { %s6335_s9 = sshll.u32 %s7335_s21, 8  ;;  %s554_s8 = scalar_lea.vmem [#allocation10], %s4753_s5 }
  0x6b   : > { %s562_s17 = sshll.u32 %s554_s8, 4  ;;  %s8924_s4 = sld [smem:[#allocation49_spill]]  ;;  %s563_s17 = int_to_ptr.vmem [resolvable:$true] %s562_s17 }
  0x6c   : > { %s8925_s7 = sld [smem:[#allocation52_spill]]  ;;  %s8926_s6 = smov 8  }
  0x6d   : > { %s8927_s3 = smov 128   ;;  %s8928_s28 = scalar_lea.sflag [#allocation9], %s7570_s20 }
  0x6e   : > { %s602_s11 = scalar_lea.vmem [#allocation13], %s7590_s16  ;;  %s8929_s14 = scalar_lea.sflag [#allocation12], %s7570_s20 }
  0x6f   : > { %s610_s29 = sshll.u32 %s602_s11, 4  ;;  %s4763_s25 = sshll.u32 %s7578_s18, 3  ;;  %s611_s29 = int_to_ptr.vmem [resolvable:$true] %s610_s29 }
  0x70   : > { %s8930_s19 = sld [smem:[#allocation54_spill]]  ;;  %s8931_s15 = scalar_lea.sflag [#allocation15], %s7570_s20 }
  0x71   : > { %s559_s13 = scalar_lea.hbm %s8924_s4, %s6335_s9  ;;  %s4764_s9 = sshll.u32 %s7335_s21, 3 }
  0x72   : > { %s560_s1 = sshll.u32 %s559_s13, 4  ;;  %s606_s30 = scalar_lea.hbm %s8925_s7, %s7601_s26  ;;  %s561_s1 = int_to_ptr.hbm [resolvable:$true] %s560_s1 }
  0x73   : > { %6734 = dma.hbm_to_vmem [thread:$0]  (%p7540_p12), %s561_s1, 4096, %s563_s17, %s8928_s28, %s8927_s3, %s8927_s3, %s8926_s6  }
  0x74   : > { %s608_s5 = sshll.u32 %s606_s30, 4  ;;  %s643_s17 = scalar_lea.vmem [#allocation16], %s4763_s25  ;;  %s609_s5 = int_to_ptr.hbm [resolvable:$true] %s608_s5 }
  0x75   : > { %6736 = dma.hbm_to_vmem [thread:$0]  (%p7540_p12), %s609_s5, 32, %s611_s29, %s8929_s14  }
  0x76   : > { %s647_s13 = scalar_lea.hbm %s8930_s19, %s4764_s9  ;;  %s651_s1 = sshll.u32 %s643_s17, 4  ;;  %s652_s1 = int_to_ptr.vmem [resolvable:$true] %s651_s1 }
  0x77   : > { %s649_s24 = sshll.u32 %s647_s13, 4  ;;  %s8932_s3 = sld [smem:[#allocation57_spill]]  ;;  %s650_s24 = int_to_ptr.hbm [resolvable:$true] %s649_s24 }
  0x78   : > { %6738 = dma.hbm_to_vmem [thread:$0]  (%p7540_p12), %s650_s24, 128, %s652_s1, %s8931_s15  }
  0x79   : > { %s691_s11 = scalar_lea.vmem [#allocation19], %s7590_s16  ;;  %s8933_s29 = scalar_lea.sflag [#allocation18], %s7570_s20 }
  0x7a   : > { %s699_s18 = sshll.u32 %s691_s11, 4  ;;  %s700_s18 = int_to_ptr.vmem [resolvable:$true] %s699_s18 }
  0x7d   : > { %s695_s28 = scalar_lea.hbm %s8932_s3, %s7601_s26 }
  0x7e   : > { %s697_s5 = sshll.u32 %s695_s28, 4  ;;  %s698_s5 = int_to_ptr.hbm [resolvable:$true] %s697_s5 }
  0x7f   : > { %6740 = dma.hbm_to_vmem [thread:$0]  (%p7540_p12), %s698_s5, 32, %s700_s18, %s8933_s29  }
  0x80 PF: > { %p4770_p1 = scmp.ge.s32.totalorder %s7343_s23, 1  ;;  %p711_p3 = scmp.lt.s32.totalorder %s7343_s23, 5 }
  0x82   : > { %p712_p6 = pnand %p4770_p1, %p711_p3 }
  0x83   : > { %s8934_s14 = sld [smem:[#allocation32_spill]] (!%p712_p6) }
  0x84   : > { %715 = sbr.rel (%p712_p6) target bundleno = 1930 (0x78a), region = 76 }
  0x89   : > { %s7694_s9 = sand.u32 1, %s8934_s14  }
  0x8a   : > { %s8876_s16 = sshll.u32 %s7694_s9, 5  ;;  %s718_s26 = scalar_lea.sflag [#allocation3], %s7694_s9 }
  0x8b   : > { %s7700_s12 = scalar_lea.vmem [#allocation2], %s8876_s16 }
  0x8c   : > { %7270 = dma.done.wait (%p7522_p7), %s718_s26, 512  }
  0x8d   : > { %7272 = vsyncadd (%p7522_p7), %s718_s26, 4294966784  ;;  %s8936_s20 = sld [smem:[#allocation36_spill]]  ;;  %s4772_s27 = sshll.u32 %s7694_s9, 1 }
  0x8e   : > { %s7711_s13 = scalar_lea.vmem [#allocation5], %s4772_s27 }
  0x93   : > { %s7707_s8 = sand.u32 1, %s8936_s20  }
  0x94   : > { %s728_s19 = scalar_lea.sflag [#allocation6], %s7707_s8 }
  0x95   : > { %7274 = dma.done.wait (%p7522_p7), %s728_s19, 32  }
  0x96   : > { %7276 = vsyncadd (%p7522_p7), %s728_s19, 4294967264  ;;  %s8937_s24 = sld [smem:[#allocation29_spill]] }
  0x9c   : > { %s739_s1 = sand.u32 1, %s8937_s24  }
  0x9d   : > { %s6728_s15 = smul.u32 768, %s739_s1 }
  0x9f   : > { %s7718_s30 = scalar_lea.vmem [#allocation7], %s6728_s15 }
  0xa0   : > { %7278 = dma.done.wait (%p7546_p13), %s728_s19, 12288  }
  0xa1   : > { %7280 = vsyncadd (%p7546_p13), %s728_s19, 4294955008  ;;  %s6729_s6 = smul.u32 6, %s739_s1  ;;  %s748_s3 = scalar_lea.sflag [#allocation9], %s7707_s8 }
  0xa3   : > { %s7725_s28 = scalar_lea.vmem [#allocation8], %s6729_s6 }
  0xa4   : > { %7282 = dma.done.wait (%p7546_p13), %s748_s3, 4192  }
  0xa5   : > { %7284 = vsyncadd (%p7546_p13), %s748_s3, 4294963104  ;;  %s4773_s5 = sshll.u32 %s739_s1, 8  ;;  %s7731_s11 = sshll.u32 %s739_s1, 1 }
  0xa6   : > { %s7733_s18 = scalar_lea.vmem [#allocation10], %s4773_s5  ;;  %s768_s29 = scalar_lea.sflag [#allocation12], %s7707_s8 }
  0xa7   : > { %7286 = dma.done.wait (%p7546_p13), %s768_s29, 64  }
  0xa8   : > { %7288 = vsyncadd (%p7546_p13), %s768_s29, 4294967232  ;;  %s4776_s25 = sshll.u32 %s739_s1, 10  ;;  %s788_s20 = scalar_lea.sflag [#allocation15], %s7707_s8 }
  0xa9   : > { %s7743_s27 = scalar_lea.vmem [#allocation14], %s4776_s25 }
  0xaa   : > { %7290 = dma.done.wait (%p7546_p13), %s788_s20, 16512  }
  0xab   : > { %7292 = vsyncadd (%p7546_p13), %s788_s20, 4294950784  ;;  %s4777_s19 = sshll.u32 %s739_s1, 3  ;;  %s808_s15 = scalar_lea.sflag [#allocation18], %s7707_s8 }
  0xac   : > { %s7749_s24 = scalar_lea.vmem [#allocation16], %s4777_s19  ;;  %s7752_s6 = scalar_lea.vmem [#allocation17], %s4776_s25 }
  0xad   : > { %7294 = dma.done.wait (%p7546_p13), %s808_s15, 16416  }
  0xae   : > { %7296 = vsyncadd (%p7546_p13), %s808_s15, 4294950880  ;;  %s8939_s3 = sld [smem:[#allocation34_spill]]  ;;  %s821_s4 = scalar_lea.vmem [#allocation19], %s7731_s11 }
  0xaf   : > { %s8940_s19 = sld [smem:[#allocation50_spill]]  ;;  %s8943_s7 = sshll.u32 %s7694_s9, 5 }
  0xb0   : > { %s8941_s14 = sld [smem:[#allocation56_spill]]  ;;  %s7777_s10 = scalar_lea.vmem [#allocation20], %s8943_s7 }
  0xb1   : > { %s8942_s0 = sld [smem:[#allocation58_spill]] }
  0xb4   : > { %p931_p7 = scmp.lt.s32.totalorder %s8939_s3, 1  ;;  %p4784_p9 = scmp.ne.s32.totalorder %s8939_s3, 0 }
  0xb6   : > { %s932_s5 = scalar_select %p931_p7, %s8939_s3, 1 }
  0xb7   : > { %948 = sbr.rel (%p4784_p9) target bundleno = 193 (0xc1), region = 124 }
  0xb8   : > { %s7760_s29 = sshll.u32 %s932_s5, 1 }
  0xb9   : > { %s934_s8 = scalar_lea.vmem %s8940_s19, %s7760_s29  ;;  %s938_s17 = scalar_lea.vmem %s8941_s14, %s7760_s29 }
  0xba   : > { %s942_s2 = scalar_lea.vmem %s8942_s0, %s7760_s29 }
  0xbc   : > { %v949_v0 = vld [vmem:[%s7700_s12] sm:$0xff]  ;;  %v950_v1 = vld [vmem:[%s7700_s12 + $0x8] sm:$0xff]  ;;  %v951_v2 = vld [vmem:[%s7700_s12 + $0x10] sm:$0xff] }
  0xbd   : > { %953 = vst [vmem:[%s7777_s10] sm:$0xff] %v949_v0  ;;  %v952_v3 = vld [vmem:[%s7700_s12 + $0x18] sm:$0xff] }
  0xbe   : > { %954 = vst [vmem:[%s7777_s10 + $0x8] sm:$0xff] %v950_v1 }
  0xbf   : > { %955 = vst [vmem:[%s7777_s10 + $0x10] sm:$0xff] %v951_v2 }
  0xc0   : > { %956 = vst [vmem:[%s7777_s10 + $0x18] sm:$0xff] %v952_v3 }
  0xc1 PF: > { %v4957_v4 = vld [vmem:[%s7718_s30 + $0x150] sm:$0xf]  ;;  %v6383_v5 = vld [vmem:[%s7718_s30 + $0x164] sm:$0xf0]  ;;  %v6380_v9 = vld [vmem:[%s7718_s30 + $0x154] sm:$0xf] }
  0xc2   : > { %v5149_v6 = vld [vmem:[%s7718_s30 + $0x2d0] sm:$0xf]  ;;  %v4958_v7 = vor.u32 %v6383_v5, %v4957_v4  ;;  %v6431_v8 = vld [vmem:[%s7718_s30 + $0x2e4] sm:$0xf0]  ;;  %v4959_v10 = vld [vmem:[%s7718_s30 + $0x168] sm:$0xf0] }
  0xc3   : > { %v5150_v11 = vor.u32 %v6431_v8, %v5149_v6  ;;  %v4962_v12 = vor.u32 %v6380_v9, %v4959_v10  ;;  %v4933_v13 = vld [vmem:[%s7718_s30 + $0x120] sm:$0xf]  ;;  %v6377_v14 = vld [vmem:[%s7718_s30 + $0x134] sm:$0xf0]  ;;  %v6428_v18 = vld [vmem:[%s7718_s30 + $0x2d4] sm:$0xf] }
  0xc4   : > { %v5125_v15 = vld [vmem:[%s7718_s30 + $0x2a0] sm:$0xf]  ;;  %1559 = vmatpush.bf16.msra.mxu0 %v4958_v7  ;;  %v4934_v16 = vor.u32 %v6377_v14, %v4933_v13  ;;  %v6425_v17 = vld [vmem:[%s7718_s30 + $0x2b4] sm:$0xf0]  ;;  %v5151_v19 = vld [vmem:[%s7718_s30 + $0x2e8] sm:$0xf0] }
  0xc5   : > { %1573 = vmatpush.bf16.msra.mxu1 %v5150_v11  ;;  %1587 = vmatpush.bf16.msra.mxu2 %v4962_v12  ;;  %v5126_v20 = vor.u32 %v6425_v17, %v5125_v15  ;;  %v5154_v21 = vor.u32 %v6428_v18, %v5151_v19  ;;  %v6374_v22 = vld [vmem:[%s7718_s30 + $0x124] sm:$0xf]  ;;  %v4935_v23 = vld [vmem:[%s7718_s30 + $0x138] sm:$0xf0]  ;;  %v4909_v24 = vld [vmem:[%s7718_s30 + $0xf0] sm:$0xf] }
  0xc6   : > { %v4938_v25 = vor.u32 %v6374_v22, %v4935_v23  ;;  %v6371_v26 = vld [vmem:[%s7718_s30 + $0x104] sm:$0xf0]  ;;  %v5101_v27 = vld [vmem:[%s7718_s30 + $0x270] sm:$0xf]  ;;  %v6422_v29 = vld [vmem:[%s7718_s30 + $0x2a4] sm:$0xf] }
  0xc7   : > { %v6419_v28 = vld [vmem:[%s7718_s30 + $0x284] sm:$0xf0]  ;;  %1601 = vmatpush.bf16.msra.mxu3 %v5154_v21  ;;  %v5127_v30 = vld [vmem:[%s7718_s30 + $0x2b8] sm:$0xf0]  ;;  %v6368_v31 = vld [vmem:[%s7718_s30 + $0xf4] sm:$0xf]  ;;  %v4910_v32 = vor.u32 %v6371_v26, %v4909_v24 }
  0xc8   : > { %1560 = vmatpush.bf16.msra.mxu0 %v4934_v16  ;;  %v5130_v33 = vor.u32 %v6422_v29, %v5127_v30  ;;  %v4911_v34 = vld [vmem:[%s7718_s30 + $0x108] sm:$0xf0]  ;;  %v4885_v35 = vld [vmem:[%s7718_s30 + $0xc0] sm:$0xf]  ;;  %v6365_v36 = vld [vmem:[%s7718_s30 + $0xd4] sm:$0xf0]  ;;  %v5102_v37 = vor.u32 %v6419_v28, %v5101_v27 }
  0xc9   : > { %1574 = vmatpush.bf16.msra.mxu1 %v5126_v20  ;;  %1588 = vmatpush.bf16.msra.mxu2 %v4938_v25  ;;  %v4914_v38 = vor.u32 %v6368_v31, %v4911_v34  ;;  %v5077_v39 = vld [vmem:[%s7718_s30 + $0x240] sm:$0xf]  ;;  %v6413_v40 = vld [vmem:[%s7718_s30 + $0x254] sm:$0xf0]  ;;  %v6416_v41 = vld [vmem:[%s7718_s30 + $0x274] sm:$0xf]  ;;  %v4886_v46 = vor.u32 %v6365_v36, %v4885_v35 }
  0xca   : > { %v5103_v42 = vld [vmem:[%s7718_s30 + $0x288] sm:$0xf0]  ;;  %v6362_v43 = vld [vmem:[%s7718_s30 + $0xc4] sm:$0xf]  ;;  %v4887_v44 = vld [vmem:[%s7718_s30 + $0xd8] sm:$0xf0]  ;;  %v5078_v49 = vor.u32 %v6413_v40, %v5077_v39 }
  0xcb   : > { %1602 = vmatpush.bf16.msra.mxu3 %v5130_v33  ;;  %v5106_v45 = vor.u32 %v6416_v41, %v5103_v42  ;;  %v6410_v47 = vld [vmem:[%s7718_s30 + $0x244] sm:$0xf]  ;;  %v5079_v48 = vld [vmem:[%s7718_s30 + $0x258] sm:$0xf0]  ;;  %v4890_v50 = vor.u32 %v6362_v43, %v4887_v44  ;;  %v4861_v51 = vld [vmem:[%s7718_s30 + $0x90] sm:$0xf] }
  0xcc   : > { %1561 = vmatpush.bf16.msra.mxu0 %v4910_v32  ;;  %v6359_v52 = vld [vmem:[%s7718_s30 + $0xa4] sm:$0xf0]  ;;  %v5053_v53 = vld [vmem:[%s7718_s30 + $0x210] sm:$0xf]  ;;  %v6356_v55 = vld [vmem:[%s7718_s30 + $0x94] sm:$0xf]  ;;  %v5082_v57 = vor.u32 %v6410_v47, %v5079_v48 }
  0xcd   : > { %1575 = vmatpush.bf16.msra.mxu1 %v5102_v37  ;;  %1589 = vmatpush.bf16.msra.mxu2 %v4914_v38  ;;  %v6407_v54 = vld [vmem:[%s7718_s30 + $0x224] sm:$0xf0]  ;;  %v4863_v56 = vld [vmem:[%s7718_s30 + $0xa8] sm:$0xf0]  ;;  %v4862_v58 = vor.u32 %v6359_v52, %v4861_v51  ;;  %v6404_v59 = vld [vmem:[%s7718_s30 + $0x214] sm:$0xf] }
  0xce   : > { %v5055_v60 = vld [vmem:[%s7718_s30 + $0x228] sm:$0xf0]  ;;  %v5054_v61 = vor.u32 %v6407_v54, %v5053_v53  ;;  %v4866_v62 = vor.u32 %v6356_v55, %v4863_v56  ;;  %v4837_v63 = vld [vmem:[%s7718_s30 + $0x60] sm:$0xf]  ;;  %v6353_v0 = vld [vmem:[%s7718_s30 + $0x74] sm:$0xf0] }
  0xcf   : > { %1603 = vmatpush.bf16.msra.mxu3 %v5106_v45  ;;  %v5029_v1 = vld [vmem:[%s7718_s30 + $0x1e0] sm:$0xf]  ;;  %v6401_v2 = vld [vmem:[%s7718_s30 + $0x1f4] sm:$0xf0]  ;;  %v6350_v3 = vld [vmem:[%s7718_s30 + $0x64] sm:$0xf]  ;;  %v5058_v5 = vor.u32 %v6404_v59, %v5055_v60  ;;  %v4838_v6 = vor.u32 %v6353_v0, %v4837_v63 }
  0xd0   : > { %1562 = vmatpush.bf16.msra.mxu0 %v4886_v46  ;;  %v4839_v4 = vld [vmem:[%s7718_s30 + $0x78] sm:$0xf0]  ;;  %v6398_v7 = vld [vmem:[%s7718_s30 + $0x1e4] sm:$0xf]  ;;  %v5030_v9 = vor.u32 %v6401_v2, %v5029_v1  ;;  %v4813_v11 = vld [vmem:[%s7718_s30 + $0x30] sm:$0xf] }
  0xd1   : > { %1576 = vmatpush.bf16.msra.mxu1 %v5078_v49  ;;  %1590 = vmatpush.bf16.msra.mxu2 %v4890_v50  ;;  %v5031_v8 = vld [vmem:[%s7718_s30 + $0x1f8] sm:$0xf0]  ;;  %v4842_v10 = vor.u32 %v6350_v3, %v4839_v4  ;;  %v6347_v12 = vld [vmem:[%s7718_s30 + $0x44] sm:$0xf0]  ;;  %v5005_v13 = vld [vmem:[%s7718_s30 + $0x1b0] sm:$0xf] }
  0xd2   : > { %v6395_v14 = vld [vmem:[%s7718_s30 + $0x1c4] sm:$0xf0]  ;;  %v6344_v15 = vld [vmem:[%s7718_s30 + $0x34] sm:$0xf]  ;;  %v4815_v16 = vld [vmem:[%s7718_s30 + $0x48] sm:$0xf0]  ;;  %v5034_v17 = vor.u32 %v6398_v7, %v5031_v8  ;;  %v4814_v20 = vor.u32 %v6347_v12, %v4813_v11 }
  0xd3   : > { %1604 = vmatpush.bf16.msra.mxu3 %v5082_v57  ;;  %v4789_v18 = vld [vmem:[%s7718_s30] sm:$0xf]  ;;  %v6341_v19 = vld [vmem:[%s7718_s30 + $0x14] sm:$0xf0]  ;;  %v6392_v23 = vld [vmem:[%s7718_s30 + $0x1b4] sm:$0xf]  ;;  %v5006_v25 = vor.u32 %v6395_v14, %v5005_v13  ;;  %v4818_v26 = vor.u32 %v6344_v15, %v4815_v16 }
  0xd4   : > { %1563 = vmatpush.bf16.msra.mxu0 %v4862_v58  ;;  %v4981_v21 = vld [vmem:[%s7718_s30 + $0x180] sm:$0xf]  ;;  %v6389_v22 = vld [vmem:[%s7718_s30 + $0x194] sm:$0xf0]  ;;  %v5007_v24 = vld [vmem:[%s7718_s30 + $0x1c8] sm:$0xf0]  ;;  %v4790_v37 = vor.u32 %v6341_v19, %v4789_v18 }
  0xd5   : > { %1577 = vmatpush.bf16.msra.mxu1 %v5054_v61  ;;  %1591 = vmatpush.bf16.msra.mxu2 %v4866_v62  ;;  %v4965_v27 = vld [vmem:[%s7718_s30 + $0x158] sm:$0xf]  ;;  %v6384_v28 = vld [vmem:[%s7718_s30 + $0x16c] sm:$0xf0]  ;;  %v6338_v31 = vld [vmem:[%s7718_s30 + $0x4] sm:$0xf]  ;;  %v5010_v33 = vor.u32 %v6392_v23, %v5007_v24  ;;  %v4982_v41 = vor.u32 %v6389_v22, %v4981_v21 }
  0xd6   : > { %v5157_v29 = vld [vmem:[%s7718_s30 + $0x2d8] sm:$0xf]  ;;  %v6432_v30 = vld [vmem:[%s7718_s30 + $0x2ec] sm:$0xf0]  ;;  %v4791_v32 = vld [vmem:[%s7718_s30 + $0x18] sm:$0xf0]  ;;  %v4966_v42 = vor.u32 %v6384_v28, %v4965_v27 }
  0xd7   : > { %1605 = vmatpush.bf16.msra.mxu3 %v5058_v5  ;;  %v6381_v34 = vld [vmem:[%s7718_s30 + $0x15c] sm:$0xf]  ;;  %v4967_v35 = vld [vmem:[%s7718_s30 + $0x170] sm:$0xf0]  ;;  %v6386_v36 = vld [vmem:[%s7718_s30 + $0x184] sm:$0xf]  ;;  %v5158_v46 = vor.u32 %v6432_v30, %v5157_v29  ;;  %v4794_v47 = vor.u32 %v6338_v31, %v4791_v32 }
  0xd8   : > { %1564 = vmatpush.bf16.msra.mxu0 %v4838_v6  ;;  %v4983_v38 = vld [vmem:[%s7718_s30 + $0x198] sm:$0xf0]  ;;  %v4941_v39 = vld [vmem:[%s7718_s30 + $0x128] sm:$0xf]  ;;  %v5159_v43 = vld [vmem:[%s7718_s30 + $0x2f0] sm:$0xf0]  ;;  %v4970_v51 = vor.u32 %v6381_v34, %v4967_v35 }
  0xd9   : > { %1578 = vmatpush.bf16.msra.mxu1 %v5030_v9  ;;  %1592 = vmatpush.bf16.msra.mxu2 %v4842_v10  ;;  %v6429_v40 = vld [vmem:[%s7718_s30 + $0x2dc] sm:$0xf]  ;;  %v957_v44 = vld [vmem:[%s7777_s10] sm:$0xff]  ;;  %v6378_v48 = vld [vmem:[%s7718_s30 + $0x13c] sm:$0xf0]  ;;  %v4986_v52 = vor.u32 %v6386_v36, %v4983_v38  ;;  %vm1795_vm0 = vcmask 1043456  }
  0xda   : > { %v959_v45 = vld [vmem:[%s7777_s10 + $0x10] sm:$0xff]  ;;  %v958_v49 = vld [vmem:[%s7777_s10 + $0x8] sm:$0xff]  ;;  %v960_v50 = vld [vmem:[%s7777_s10 + $0x18] sm:$0xff]  ;;  %v5162_v55 = vor.u32 %v6429_v40, %v5159_v43  ;;  %v4942_v59 = vor.u32 %v6378_v48, %v4941_v39  ;;  %vm1769_vm1 = vcmask 64512   ;;  %s8945_s12 = scalar_lea.vmem [#allocation11], %s7731_s11  ;;  %s4404_s29 = sshll.u32 %s7777_s10, 4  ;;  %s4405_s29 = int_to_ptr.vmem [resolvable:$true] %s4404_s29 }
  0xdb   : > { %1606 = vmatpush.bf16.msra.mxu3 %v5034_v17  ;;  %v5133_v53 = vld [vmem:[%s7718_s30 + $0x2a8] sm:$0xf]  ;;  %v6426_v54 = vld [vmem:[%s7718_s30 + $0x2bc] sm:$0xf0]  ;;  %v6375_v56 = vld [vmem:[%s7718_s30 + $0x12c] sm:$0xf]  ;;  %v7870_v58 = vpack.c.bf16 %v959_v45, %v957_v44  ;;  %v7874_v62 = vpack.c.bf16 %v960_v50, %v958_v49 }
  0xdc   : > { %1565 = vmatpush.bf16.msra.mxu0 %v4814_v20  ;;  %v4943_v57 = vld [vmem:[%s7718_s30 + $0x140] sm:$0xf0]  ;;  %v6423_v60 = vld [vmem:[%s7718_s30 + $0x2ac] sm:$0xf]  ;;  %v5134_v63 = vor.u32 %v6426_v54, %v5133_v53  ;;  %v4917_v0 = vld [vmem:[%s7718_s30 + $0xf8] sm:$0xf] }
  0xdd   : > { %1579 = vmatpush.bf16.msra.mxu1 %v5006_v25  ;;  %1593 = vmatpush.bf16.msra.mxu2 %v4818_v26  ;;  %v5135_v61 = vld [vmem:[%s7718_s30 + $0x2c0] sm:$0xf0]  ;;  %v6372_v1 = vld [vmem:[%s7718_s30 + $0x10c] sm:$0xf0]  ;;  %v4946_v2 = vor.u32 %v6375_v56, %v4943_v57  ;;  %v5109_v3 = vld [vmem:[%s7718_s30 + $0x278] sm:$0xf] }
  0xde   : > { %v6420_v4 = vld [vmem:[%s7718_s30 + $0x28c] sm:$0xf0]  ;;  %v5138_v5 = vor.u32 %v6423_v60, %v5135_v61  ;;  %v6369_v6 = vld [vmem:[%s7718_s30 + $0xfc] sm:$0xf]  ;;  %v4919_v7 = vld [vmem:[%s7718_s30 + $0x110] sm:$0xf0]  ;;  %v4918_v8 = vor.u32 %v6372_v1, %v4917_v0 }
  0xdf   : > { %1607 = vmatpush.bf16.msra.mxu3 %v5010_v33  ;;  %v6417_v9 = vld [vmem:[%s7718_s30 + $0x27c] sm:$0xf]  ;;  %v5111_v10 = vld [vmem:[%s7718_s30 + $0x290] sm:$0xf0]  ;;  %v5110_v11 = vor.u32 %v6420_v4, %v5109_v3  ;;  %v4893_v12 = vld [vmem:[%s7718_s30 + $0xc8] sm:$0xf]  ;;  %v4922_v14 = vor.u32 %v6369_v6, %v4919_v7 }
  0xe0   : > { %1566 = vmatpush.bf16.msra.mxu0 %v4790_v37  ;;  %v6366_v13 = vld [vmem:[%s7718_s30 + $0xdc] sm:$0xf0]  ;;  %v5085_v15 = vld [vmem:[%s7718_s30 + $0x248] sm:$0xf]  ;;  %v5114_v17 = vor.u32 %v6417_v9, %v5111_v10  ;;  %v6363_v18 = vld [vmem:[%s7718_s30 + $0xcc] sm:$0xf] }
  0xe1   : > { %1580 = vmatpush.bf16.msra.mxu1 %v4982_v41  ;;  %1594 = vmatpush.bf16.msra.mxu2 %v4794_v47  ;;  %v6414_v16 = vld [vmem:[%s7718_s30 + $0x25c] sm:$0xf0]  ;;  %v4895_v19 = vld [vmem:[%s7718_s30 + $0xe0] sm:$0xf0]  ;;  %v4894_v20 = vor.u32 %v6366_v13, %v4893_v12  ;;  %v6411_v21 = vld [vmem:[%s7718_s30 + $0x24c] sm:$0xf] }
  0xe2   : > { %v5087_v22 = vld [vmem:[%s7718_s30 + $0x260] sm:$0xf0]  ;;  %v5086_v23 = vor.u32 %v6414_v16, %v5085_v15  ;;  %v4869_v24 = vld [vmem:[%s7718_s30 + $0x98] sm:$0xf]  ;;  %v6360_v25 = vld [vmem:[%s7718_s30 + $0xac] sm:$0xf0]  ;;  %v4898_v26 = vor.u32 %v6363_v18, %v4895_v19 }
  0xe3   : > { %1608 = vmatpush.bf16.msra.mxu3 %v4986_v52  ;;  %1567 = vmatmul.bf16.vlgmr.msra.gmra.mxu0 %v7870_v58  ;;  %v5061_v27 = vld [vmem:[%s7718_s30 + $0x218] sm:$0xf]  ;;  %v6408_v28 = vld [vmem:[%s7718_s30 + $0x22c] sm:$0xf0]  ;;  %v5090_v29 = vor.u32 %v6411_v21, %v5087_v22  ;;  %v6357_v30 = vld [vmem:[%s7718_s30 + $0x9c] sm:$0xf]  ;;  %v4870_v32 = vor.u32 %v6360_v25, %v4869_v24 }
  0xe4   : > { %1615 = vmatpush.bf16.msrb.mxu0 %v4966_v42  ;;  %1581 = vmatmul.bf16.vlgmr.msra.gmra.mxu1 %v7874_v62  ;;  %v4871_v31 = vld [vmem:[%s7718_s30 + $0xb0] sm:$0xf0]  ;;  %v6405_v33 = vld [vmem:[%s7718_s30 + $0x21c] sm:$0xf]  ;;  %v5062_v35 = vor.u32 %v6408_v28, %v5061_v27  ;;  %v4845_v36 = vld [vmem:[%s7718_s30 + $0x68] sm:$0xf] }
  0xe5   : > { %1629 = vmatpush.bf16.msrb.mxu1 %v5158_v46  ;;  %1643 = vmatpush.bf16.msrb.mxu2 %v4970_v51  ;;  %v5063_v34 = vld [vmem:[%s7718_s30 + $0x230] sm:$0xf0]  ;;  %v6354_v37 = vld [vmem:[%s7718_s30 + $0x7c] sm:$0xf0]  ;;  %v4874_v38 = vor.u32 %v6357_v30, %v4871_v31  ;;  %v5037_v39 = vld [vmem:[%s7718_s30 + $0x1e8] sm:$0xf] }
  0xe6   : > { %1595 = vmatmul.bf16.vlgmr.msra.gmra.mxu2 %v7870_v58  ;;  %1609 = vmatmul.bf16.vlgmr.msra.gmra.mxu3 %v7874_v62  ;;  %v6402_v40 = vld [vmem:[%s7718_s30 + $0x1fc] sm:$0xf0]  ;;  %v5066_v41 = vor.u32 %v6405_v33, %v5063_v34  ;;  %v6351_v42 = vld [vmem:[%s7718_s30 + $0x6c] sm:$0xf]  ;;  %v4847_v43 = vld [vmem:[%s7718_s30 + $0x80] sm:$0xf0]  ;;  %v4846_v44 = vor.u32 %v6354_v37, %v4845_v36 }
  0xe7   : > { %1657 = vmatpush.bf16.msrb.mxu3 %v5162_v55  ;;  %v6399_v45 = vld [vmem:[%s7718_s30 + $0x1ec] sm:$0xf]  ;;  %v5039_v46 = vld [vmem:[%s7718_s30 + $0x200] sm:$0xf0]  ;;  %v5038_v47 = vor.u32 %v6402_v40, %v5037_v39  ;;  %v4821_v48 = vld [vmem:[%s7718_s30 + $0x38] sm:$0xf]  ;;  %v4850_v50 = vor.u32 %v6351_v42, %v4847_v43 }
  0xe8   : > { %1616 = vmatpush.bf16.msrb.mxu0 %v4942_v59  ;;  %v6348_v49 = vld [vmem:[%s7718_s30 + $0x4c] sm:$0xf0]  ;;  %v5013_v51 = vld [vmem:[%s7718_s30 + $0x1b8] sm:$0xf]  ;;  %v5042_v53 = vor.u32 %v6399_v45, %v5039_v46  ;;  %v6345_v54 = vld [vmem:[%s7718_s30 + $0x3c] sm:$0xf] }
  0xe9   : > { %1630 = vmatpush.bf16.msrb.mxu1 %v5134_v63  ;;  %1644 = vmatpush.bf16.msrb.mxu2 %v4946_v2  ;;  %v6396_v52 = vld [vmem:[%s7718_s30 + $0x1cc] sm:$0xf0]  ;;  %v4823_v55 = vld [vmem:[%s7718_s30 + $0x50] sm:$0xf0]  ;;  %v4822_v56 = vor.u32 %v6348_v49, %v4821_v48  ;;  %v4797_v57 = vld [vmem:[%s7718_s30 + $0x8] sm:$0xf] }
  0xea   : > { %v6393_v59 = vld [vmem:[%s7718_s30 + $0x1bc] sm:$0xf]  ;;  %v5015_v60 = vld [vmem:[%s7718_s30 + $0x1d0] sm:$0xf0]  ;;  %v5014_v61 = vor.u32 %v6396_v52, %v5013_v51  ;;  %v6342_v63 = vld [vmem:[%s7718_s30 + $0x1c] sm:$0xf0]  ;;  %v4826_v2 = vor.u32 %v6345_v54, %v4823_v55 }
  0xeb   : > { %1658 = vmatpush.bf16.msrb.mxu3 %v5138_v5  ;;  %v4989_v0 = vld [vmem:[%s7718_s30 + $0x188] sm:$0xf]  ;;  %v6390_v1 = vld [vmem:[%s7718_s30 + $0x19c] sm:$0xf0]  ;;  %v6339_v3 = vld [vmem:[%s7718_s30 + $0xc] sm:$0xf]  ;;  %v5018_v6 = vor.u32 %v6393_v59, %v5015_v60  ;;  %v4798_v10 = vor.u32 %v6342_v63, %v4797_v57 }
  0xec   : > { %1617 = vmatpush.bf16.msrb.mxu0 %v4918_v8  ;;  %v4973_v4 = vld [vmem:[%s7718_s30 + $0x160] sm:$0xf]  ;;  %v6385_v5 = vld [vmem:[%s7718_s30 + $0x174] sm:$0xf0]  ;;  %v4799_v7 = vld [vmem:[%s7718_s30 + $0x20] sm:$0xf0]  ;;  %v4990_v13 = vor.u32 %v6390_v1, %v4989_v0 }
  0xed   : > { %1631 = vmatpush.bf16.msrb.mxu1 %v5110_v11  ;;  %1645 = vmatpush.bf16.msrb.mxu2 %v4922_v14  ;;  %v5165_v8 = vld [vmem:[%s7718_s30 + $0x2e0] sm:$0xf]  ;;  %v6433_v9 = vld [vmem:[%s7718_s30 + $0x2f4] sm:$0xf0]  ;;  %v6387_v11 = vld [vmem:[%s7718_s30 + $0x18c] sm:$0xf]  ;;  %v4974_v14 = vor.u32 %v6385_v5, %v4973_v4  ;;  %v4802_v15 = vor.u32 %v6339_v3, %v4799_v7 }
  0xee   : > { %v4991_v12 = vld [vmem:[%s7718_s30 + $0x1a0] sm:$0xf0]  ;;  %v5166_v16 = vor.u32 %v6433_v9, %v5165_v8  ;;  %v6379_v18 = vld [vmem:[%s7718_s30 + $0x144] sm:$0xf0]  ;;  %v4925_v24 = vld [vmem:[%s7718_s30 + $0x100] sm:$0xf] }
  0xef   : > { %1659 = vmatpush.bf16.msrb.mxu3 %v5114_v17  ;;  %v4949_v17 = vld [vmem:[%s7718_s30 + $0x130] sm:$0xf]  ;;  %v4994_v19 = vor.u32 %v6387_v11, %v4991_v12  ;;  %v6427_v21 = vld [vmem:[%s7718_s30 + $0x2c4] sm:$0xf0]  ;;  %v6373_v25 = vld [vmem:[%s7718_s30 + $0x114] sm:$0xf0] }
  0xf0   : > { %1618 = vmatpush.bf16.msrb.mxu0 %v4894_v20  ;;  %v5141_v20 = vld [vmem:[%s7718_s30 + $0x2b0] sm:$0xf]  ;;  %v4950_v22 = vor.u32 %v6379_v18, %v4949_v17  ;;  %v6421_v27 = vld [vmem:[%s7718_s30 + $0x294] sm:$0xf0]  ;;  %v4926_v28 = vor.u32 %v6373_v25, %v4925_v24  ;;  %v6367_v31 = vld [vmem:[%s7718_s30 + $0xe4] sm:$0xf0] }
  0xf1   : > { %1632 = vmatpush.bf16.msrb.mxu1 %v5086_v23  ;;  %1646 = vmatpush.bf16.msrb.mxu2 %v4898_v26  ;;  %v5142_v23 = vor.u32 %v6427_v21, %v5141_v20  ;;  %v5117_v26 = vld [vmem:[%s7718_s30 + $0x280] sm:$0xf]  ;;  %v4901_v30 = vld [vmem:[%s7718_s30 + $0xd0] sm:$0xf]  ;;  %v6415_v33 = vld [vmem:[%s7718_s30 + $0x264] sm:$0xf0] }
  0xf2   : > { %v4902_v34 = vor.u32 %v6367_v31, %v4901_v30  ;;  %v4877_v36 = vld [vmem:[%s7718_s30 + $0xa0] sm:$0xf]  ;;  %v6361_v37 = vld [vmem:[%s7718_s30 + $0xb4] sm:$0xf0]  ;;  %v4853_v42 = vld [vmem:[%s7718_s30 + $0x70] sm:$0xf] }
  0xf3   : > { %1660 = vmatpush.bf16.msrb.mxu3 %v5090_v29  ;;  %v5118_v29 = vor.u32 %v6421_v27, %v5117_v26  ;;  %v5069_v39 = vld [vmem:[%s7718_s30 + $0x220] sm:$0xf]  ;;  %v6409_v40 = vld [vmem:[%s7718_s30 + $0x234] sm:$0xf0]  ;;  %v6355_v43 = vld [vmem:[%s7718_s30 + $0x84] sm:$0xf0] }
  0xf4   : > { %1619 = vmatpush.bf16.msrb.mxu0 %v4870_v32  ;;  %v5093_v32 = vld [vmem:[%s7718_s30 + $0x250] sm:$0xf]  ;;  %v4854_v45 = vor.u32 %v6355_v43, %v4853_v42  ;;  %v6403_v46 = vld [vmem:[%s7718_s30 + $0x204] sm:$0xf0]  ;;  %v6349_v48 = vld [vmem:[%s7718_s30 + $0x54] sm:$0xf0] }
  0xf5   : > { %1633 = vmatpush.bf16.msrb.mxu1 %v5062_v35  ;;  %1647 = vmatpush.bf16.msrb.mxu2 %v4874_v38  ;;  %v5094_v35 = vor.u32 %v6415_v33, %v5093_v32  ;;  %v4878_v38 = vor.u32 %v6361_v37, %v4877_v36  ;;  %v5021_v51 = vld [vmem:[%s7718_s30 + $0x1c0] sm:$0xf]  ;;  %v6397_v52 = vld [vmem:[%s7718_s30 + $0x1d4] sm:$0xf0]  ;;  %v4805_v54 = vld [vmem:[%s7718_s30 + $0x10] sm:$0xf] }
  0xf6   : > { %v6343_v55 = vld [vmem:[%s7718_s30 + $0x24] sm:$0xf0]  ;;  %v4975_v17 = vld [vmem:[%s7718_s30 + $0x178] sm:$0xf0]  ;;  %v6430_v18 = vld [vmem:[%s7718_s30 + $0x2e4] sm:$0xf] }
  0xf7   : > { %1661 = vmatpush.bf16.msrb.mxu3 %v5066_v41  ;;  %v5070_v41 = vor.u32 %v6409_v40, %v5069_v39  ;;  %v4806_v57 = vor.u32 %v6343_v55, %v4805_v54  ;;  %v6391_v59 = vld [vmem:[%s7718_s30 + $0x1a4] sm:$0xf0]  ;;  %v5167_v20 = vld [vmem:[%s7718_s30 + $0x2f8] sm:$0xf0]  ;;  %v6376_v21 = vld [vmem:[%s7718_s30 + $0x134] sm:$0xf] }
  0xf8   : > { %1620 = vmatpush.bf16.msrb.mxu0 %v4846_v44  ;;  %v5045_v44 = vld [vmem:[%s7718_s30 + $0x1f0] sm:$0xf]  ;;  %v7971_v4 = vld [vmem:[%s7725_s28] sm:$0x3f]  ;;  %v5170_v26 = vor.u32 %v6430_v18, %v5167_v20  ;;  %v6424_v27 = vld [vmem:[%s7718_s30 + $0x2b4] sm:$0xf] }
  0xf9   : > { %1634 = vmatpush.bf16.msrb.mxu1 %v5038_v47  ;;  %1648 = vmatpush.bf16.msrb.mxu2 %v4850_v50  ;;  %v4829_v47 = vld [vmem:[%s7718_s30 + $0x40] sm:$0xf]  ;;  %v5046_v49 = vor.u32 %v6403_v46, %v5045_v44  ;;  %v1069_v5 = vperm.slane %v7971_v4, 2  ;;  %v1067_v8 = vperm.slane %v7971_v4, 0  ;;  %v4927_v36 = vld [vmem:[%s7718_s30 + $0x118] sm:$0xf0] }
  0xfa   : > { %v4830_v50 = vor.u32 %v6349_v48, %v4829_v47  ;;  %v6418_v39 = vld [vmem:[%s7718_s30 + $0x284] sm:$0xf]  ;;  %v5119_v40 = vld [vmem:[%s7718_s30 + $0x298] sm:$0xf0]  ;;  %v6364_v47 = vld [vmem:[%s7718_s30 + $0xd4] sm:$0xf] }
  0xfb   : > { %1662 = vmatpush.bf16.msrb.mxu3 %v5042_v53  ;;  %v5022_v53 = vor.u32 %v6397_v52, %v5021_v51  ;;  %v5122_v46 = vor.u32 %v6418_v39, %v5119_v40  ;;  %v4903_v48 = vld [vmem:[%s7718_s30 + $0xe8] sm:$0xf0]  ;;  %v1068_v52 = vperm.slane %v7971_v4, 1  ;;  %v6346_v18 = vld [vmem:[%s7718_s30 + $0x44] sm:$0xf]  ;;  %s4391_s20 = scalar_lea.sflag [#allocation4], %s7694_s9 }
  0xfc   : > { %1621 = vmatpush.bf16.msrb.mxu0 %v4822_v56  ;;  %v4997_v56 = vld [vmem:[%s7718_s30 + $0x190] sm:$0xf]  ;;  %v6394_v20 = vld [vmem:[%s7718_s30 + $0x1c4] sm:$0xf] }
  0xfd   : > { %1635 = vmatpush.bf16.msrb.mxu1 %v5014_v61  ;;  %1649 = vmatpush.bf16.msrb.mxu2 %v4826_v2  ;;  %v4998_v60 = vor.u32 %v6391_v59, %v4997_v56  ;;  %v4906_v56 = vor.u32 %v6364_v47, %v4903_v48 }
  0xff   : > { %1663 = vmatpush.bf16.msrb.mxu3 %v5018_v6 }
 0x100   : > { %1622 = vmatpush.bf16.msrb.mxu0 %v4798_v10 }
 0x101   : > { %1636 = vmatpush.bf16.msrb.mxu1 %v4990_v13  ;;  %1650 = vmatpush.bf16.msrb.mxu2 %v4802_v15  ;;  %v1070_v15 = vperm.slane %v7971_v4, 3 }
 0x103   : > { %1623 = vmatmul.bf16.vlgmr.msrb.gmra.mxu0 %v7870_v58  ;;  %1664 = vmatpush.bf16.msrb.mxu3 %v4994_v19 }
 0x104   : > { %1671 = vmatpush.bf16.msra.mxu0 %v4974_v14  ;;  %1637 = vmatmul.bf16.vlgmr.msrb.gmra.mxu1 %v7874_v62 }
 0x105   : > { %1685 = vmatpush.bf16.msra.mxu1 %v5166_v16  ;;  %1651 = vmatmul.bf16.vlgmr.msrb.gmra.mxu2 %v7870_v58  ;;  %v6382_v16 = vld [vmem:[%s7718_s30 + $0x164] sm:$0xf] }
 0x106   : > { %1665 = vmatmul.bf16.vlgmr.msrb.gmra.mxu3 %v7874_v62  ;;  %v4978_v19 = vor.u32 %v6382_v16, %v4975_v17  ;;  %v5047_v16 = vld [vmem:[%s7718_s30 + $0x208] sm:$0xf0] }
 0x107   : > { %1713 = vmatpush.bf16.msra.mxu3 %v5170_v26  ;;  %v6388_v26 = vld [vmem:[%s7718_s30 + $0x194] sm:$0xf] }
 0x108   : > { %1672 = vmatpush.bf16.msra.mxu0 %v4950_v22  ;;  %v4951_v22 = vld [vmem:[%s7718_s30 + $0x148] sm:$0xf0]  ;;  %1699 = vmatpush.bf16.msra.mxu2 %v4978_v19  ;;  %v4831_v19 = vld [vmem:[%s7718_s30 + $0x58] sm:$0xf0] }
 0x109   : > { %1686 = vmatpush.bf16.msra.mxu1 %v5142_v23  ;;  %v4954_v32 = vor.u32 %v6376_v21, %v4951_v22  ;;  %v4834_v21 = vor.u32 %v6346_v18, %v4831_v19  ;;  %v5023_v22 = vld [vmem:[%s7718_s30 + $0x1d8] sm:$0xf0] }
 0x10c   : > { %1673 = vmatpush.bf16.msra.mxu0 %v4926_v28  ;;  %v5143_v28 = vld [vmem:[%s7718_s30 + $0x2c8] sm:$0xf0]  ;;  %1700 = vmatpush.bf16.msra.mxu2 %v4954_v32 }
 0x10d   : > { %1687 = vmatpush.bf16.msra.mxu1 %v5118_v29 }
 0x110   : > { %1674 = vmatpush.bf16.msra.mxu0 %v4902_v34  ;;  %v5146_v34 = vor.u32 %v6424_v27, %v5143_v28  ;;  %v4999_v27 = vld [vmem:[%s7718_s30 + $0x1a8] sm:$0xf0] }
 0x111   : > { %1688 = vmatpush.bf16.msra.mxu1 %v5094_v35  ;;  %v6370_v35 = vld [vmem:[%s7718_s30 + $0x104] sm:$0xf] }
 0x112   : > { %1714 = vmatpush.bf16.msra.mxu3 %v5146_v34 }
 0x114   : > { %1675 = vmatpush.bf16.msra.mxu0 %v4878_v38 }
 0x115   : > { %1689 = vmatpush.bf16.msra.mxu1 %v5070_v41 }
 0x116   : > { %1715 = vmatpush.bf16.msra.mxu3 %v5122_v46 }
 0x118   : > { %1676 = vmatpush.bf16.msra.mxu0 %v4854_v45  ;;  %v4930_v45 = vor.u32 %v6370_v35, %v4927_v36 }
 0x119   : > { %1690 = vmatpush.bf16.msra.mxu1 %v5046_v49  ;;  %v6412_v49 = vld [vmem:[%s7718_s30 + $0x254] sm:$0xf] }
 0x11a   : > { %1701 = vmatpush.bf16.msra.mxu2 %v4930_v45 }
 0x11c   : > { %1677 = vmatpush.bf16.msra.mxu0 %v4830_v50  ;;  %v5095_v50 = vld [vmem:[%s7718_s30 + $0x268] sm:$0xf0] }
 0x11d   : > { %1691 = vmatpush.bf16.msra.mxu1 %v5022_v53 }
 0x11e   : > { %1702 = vmatpush.bf16.msra.mxu2 %v4906_v56 }
 0x120   : > { %1678 = vmatpush.bf16.msra.mxu0 %v4806_v57  ;;  %v5098_v57 = vor.u32 %v6412_v49, %v5095_v50 }
 0x121   : > { %1692 = vmatpush.bf16.msra.mxu1 %v4998_v60 }
 0x122   : > { %1716 = vmatpush.bf16.msra.mxu3 %v5098_v57 }
 0x123   : > { %1679 = vmatmul.bf16.vlgmr.msra.gmra.mxu0 %v7870_v58 }
 0x124   : > { %1693 = vmatmul.bf16.vlgmr.msra.gmra.mxu1 %v7874_v62 }
 0x160   : > { %v1568_v61 = vpop.f32.mrf.mxu0 }
 0x161   : > { %v1582_v63 = vpop.f32.mrf.mxu1  ;;  %v1569_v13 = vadd.f32 %v1568_v61, %v1067_v8 }
 0x163   : > { %v1583_v23 = vadd.f32 %v1582_v63, %v1569_v13  ;;  %v5071_v13 = vld [vmem:[%s7718_s30 + $0x238] sm:$0xf0] }
 0x165   : > { %v1727_v41 = vpack.c.bf16 %v1583_v23, %v1583_v23  ;;  %v6340_v23 = vld [vmem:[%s7718_s30 + $0x14] sm:$0xf] }
 0x168   : > { %v1570_v2 = vpop.f32.mrf.mxu0 }
 0x169   : > { %v7966_v0 = vpop.f32.mrf.mxu2  ;;  %v7968_v1 = vpop.f32.mrf.mxu3  ;;  %v1571_v42 = vadd.f32 %v1570_v2, %v1067_v8 }
 0x16a   : > { %v1584_v3 = vpop.f32.mrf.mxu1  ;;  %v1597_v61 = vadd.f32 %v7966_v0, %v1068_v52  ;;  %v6358_v0 = vld [vmem:[%s7718_s30 + $0xa4] sm:$0xf] }
 0x16b   : > { %v1585_v51 = vadd.f32 %v1584_v3, %v1571_v42 }
 0x16c   : > { %v1611_v2 = vadd.f32 %v7968_v1, %v1597_v61  ;;  %v4855_v1 = vld [vmem:[%s7718_s30 + $0x88] sm:$0xf0] }
 0x16d   : > { %v1728_v60 = vpack.c.bf16 %v1585_v51, %v1585_v51 }
 0x16e   : > { %v1850_v3 = vpack.c.bf16 %v1611_v2, %v1611_v2 }
 0x171   : > { %v7974_v6 = vpop.f32.mrf.mxu2  ;;  %v7976_v7 = vpop.f32.mrf.mxu3 }
 0x180   : > { %v1624_v9 = vpop.f32.mrf.mxu0 }
 0x181   : > { %v1625_v10 = vadd.f32 %v1624_v9, %v1069_v5  ;;  %v1638_v11 = vpop.f32.mrf.mxu1 }
 0x183   : > { %v1639_v12 = vadd.f32 %v1638_v11, %v1625_v10  ;;  %v4879_v10 = vld [vmem:[%s7718_s30 + $0xb8] sm:$0xf0]  ;;  %v6406_v11 = vld [vmem:[%s7718_s30 + $0x224] sm:$0xf] }
 0x185   : > { %v1729_v14 = vpack.c.bf16 %v1639_v12, %v1639_v12  ;;  %v4882_v12 = vor.u32 %v6358_v0, %v4879_v10 }
 0x187   : > { %1740 = vmatpush.bf16.xpose.msrb.mxu0 %v1729_v14  ;;  %v6352_v14 = vld [vmem:[%s7718_s30 + $0x74] sm:$0xf]  ;;  %1703 = vmatpush.bf16.msra.mxu2 %v4882_v12 }
 0x188   : > { %v1626_v24 = vpop.f32.mrf.mxu0  ;;  %v1652_v25 = vpop.f32.mrf.mxu2 }
 0x189   : > { %v1627_v29 = vadd.f32 %v1626_v24, %v1069_v5  ;;  %v1653_v30 = vadd.f32 %v1652_v25, %v1070_v15  ;;  %v1666_v31 = vpop.f32.mrf.mxu3  ;;  %v1640_v33 = vpop.f32.mrf.mxu1  ;;  %v1599_v5 = vadd.f32 %v7974_v6, %v1068_v52  ;;  %v6400_v6 = vld [vmem:[%s7718_s30 + $0x1f4] sm:$0xf]  ;;  %v4807_v24 = vld [vmem:[%s7718_s30 + $0x28] sm:$0xf0]  ;;  %v5026_v25 = vor.u32 %v6394_v20, %v5023_v22 }
 0x18a   : > { %v5050_v17 = vor.u32 %v6400_v6, %v5047_v16  ;;  %v4810_v28 = vor.u32 %v6340_v23, %v4807_v24  ;;  %v5297_v24 = vld [vmem:[%s7733_s18 + $0x70] sm:$0xf] }
 0x18b   : > { %v1641_v37 = vadd.f32 %v1640_v33, %v1627_v29  ;;  %v1667_v38 = vadd.f32 %v1666_v31, %v1653_v30  ;;  %v1613_v8 = vadd.f32 %v7976_v7, %v1599_v5  ;;  %v4858_v7 = vor.u32 %v6352_v14, %v4855_v1 }
 0x18c   : > { %v5002_v29 = vor.u32 %v6388_v26, %v4999_v27  ;;  %v1071_v30 = vperm.slane %v7971_v4, 4 }
 0x18d   : > { %v1730_v43 = vpack.c.bf16 %v1641_v37, %v1641_v37  ;;  %v1852_v44 = vpack.c.bf16 %v1667_v38, %v1667_v38  ;;  %v1851_v9 = vpack.c.bf16 %v1613_v8, %v1613_v8  ;;  %1704 = vmatpush.bf16.msra.mxu2 %v4858_v7 }
 0x18e   : > { %1741 = vmatmul.bf16.vlgmr.msrb.gmra.mxu0 %v1727_v41  ;;  %v963_v41 = vld [vmem:[%s7711_s13] sm:$0x1] }
 0x18f   : > { %1753 = vmatpush.bf16.xpose.msrb.mxu1 %v1730_v43  ;;  %1863 = vmatpush.bf16.xpose.msra.mxu0 %v1852_v44  ;;  %v4785_v42 = vadd.f32 -1.0, %v963_v41  ;;  %v964_v44 = vld [vmem:[%s7711_s13 + $0x1] sm:$0x1]  ;;  %s8946_s13 = scalar_lea.vmem [#allocation13], %s7731_s11 }
 0x190   : > { %v1654_v53 = vpop.f32.mrf.mxu2  ;;  %v4786_v46 = vadd.f32 -1.0, %v964_v44 }
 0x191   : > { %v1655_v54 = vadd.f32 %v1654_v53, %v1070_v15  ;;  %v1668_v55 = vpop.f32.mrf.mxu3  ;;  %v5074_v15 = vor.u32 %v6406_v11, %v5071_v13  ;;  %1705 = vmatpush.bf16.msra.mxu2 %v4834_v21  ;;  %v967_v43 = vmul.f32 1e+10, %v4785_v42  ;;  %v1072_v13 = vperm.slane %v7971_v4, 5 }
 0x192   : > { %v968_v50 = vmul.f32 1e+10, %v4786_v46 }
 0x193   : > { %v1669_v59 = vadd.f32 %v1668_v55, %v1655_v54  ;;  %1717 = vmatpush.bf16.msra.mxu3 %v5074_v15  ;;  %v1763_v45 = vperm.slane %v967_v43, 0 }
 0x194   : > { %v1764_v52 = vperm.slane %v968_v50, 0  ;;  %v6446_v50 = vld [vmem:[%s7733_s18 + $0x64] sm:$0xf] }
 0x195   : > { %v1853_v63 = vpack.c.bf16 %v1669_v59, %v1669_v59  ;;  %1706 = vmatpush.bf16.msra.mxu2 %v4810_v28 }
 0x196   : > { %1754 = vmatmul.bf16.vlgmr.msrb.gmra.mxu1 %v1728_v60 }
 0x197   : > { %1876 = vmatpush.bf16.xpose.msra.mxu1 %v1853_v63  ;;  %1718 = vmatpush.bf16.msra.mxu3 %v5050_v17 }
 0x198   : > { %1707 = vmatmul.bf16.vlgmr.msra.gmra.mxu2 %v7870_v58 }
 0x19b   : > { %1719 = vmatpush.bf16.msra.mxu3 %v5026_v25  ;;  %v6449_v25 = vld [vmem:[%s7733_s18 + $0x74] sm:$0xf0] }
 0x19e   : > { %1864 = vmatmul.bf16.vlgmr.msra.gmra.mxu0 %v1850_v3 }
 0x19f   : > { %1720 = vmatpush.bf16.msra.mxu3 %v5002_v29  ;;  %v5298_v29 = vor.u32 %v6449_v25, %v5297_v24  ;;  %v6438_v25 = vld [vmem:[%s7733_s18 + $0x24] sm:$0xf] }
 0x1a0   : > { %v1680_v31 = vpop.f32.mrf.mxu0 }
 0x1a1   : > { %v1681_v32 = vadd.f32 %v1680_v31, %v1071_v30  ;;  %v1694_v33 = vpop.f32.mrf.mxu1 }
 0x1a2   : > { %1721 = vmatmul.bf16.vlgmr.msra.gmra.mxu3 %v7874_v62 }
 0x1a3   : > { %v1695_v34 = vadd.f32 %v1694_v33, %v1681_v32  ;;  %v6448_v33 = vld [vmem:[%s7733_s18 + $0x74] sm:$0xf] }
 0x1a5   : > { %v1731_v35 = vpack.c.bf16 %v1695_v34, %v1695_v34  ;;  %v5299_v34 = vld [vmem:[%s7733_s18 + $0x78] sm:$0xf0] }
 0x1a6   : > { %1877 = vmatmul.bf16.vlgmr.msra.gmra.mxu1 %v1851_v9 }
 0x1a7   : > { %v1797_v36 = vsel %vm1795_vm0, %v1731_v35, 0 }
 0x1a8   : > { %v1682_v37 = vpop.f32.mrf.mxu0  ;;  %1806 = vmatpush.bf16.msrb.mxu2 %v1797_v36 }
 0x1a9   : > { %v1683_v38 = vadd.f32 %v1682_v37, %v1071_v30  ;;  %v1696_v39 = vpop.f32.mrf.mxu1 }
 0x1ab   : > { %v1697_v40 = vadd.f32 %v1696_v39, %v1683_v38  ;;  %v5302_v38 = vor.u32 %v6448_v33, %v5299_v34  ;;  %v5249_v34 = vld [vmem:[%s7733_s18 + $0x10] sm:$0xf] }
 0x1ad   : > { %v1732_v58 = vpack.c.bf16 %v1697_v40, %v1697_v40 }
 0x1af   : > { %v1816_v62 = vsel %vm1795_vm0, %v1732_v58, 0 }
 0x1b0   : > { %1825 = vmatpush.bf16.msrb.mxu3 %v1816_v62 }
 0x20b   : > { %v1742_v47 = vpop.f32.mrf.mxu0 }
 0x20c   : > { %v1759_v48 = vmul.f32 0.088388346, %v1742_v47 }
 0x20e   : > { %v1767_v49 = vadd.f32 %v1763_v45, %v1759_v48  ;;  %v5289_v48 = vld [vmem:[%s7733_s18 + $0x60] sm:$0xf] }
 0x210   : > { %v1770_v51 = vsel %vm1769_vm1, %v1767_v49, -inf }
 0x211   : > { %1771 = vmax.xlane.f32.xlu0 %v1770_v51 }
 0x213   : > { %v1744_v53 = vpop.f32.mrf.mxu0  ;;  %v1755_v54 = vpop.f32.mrf.mxu1 }
 0x214   : > { %v1760_v55 = vmul.f32 0.088388346, %v1755_v54  ;;  %v5281_v53 = vld [vmem:[%s7733_s18 + $0x50] sm:$0xf]  ;;  %v6445_v54 = vld [vmem:[%s7733_s18 + $0x54] sm:$0xf0] }
 0x216   : > { %v1768_v56 = vadd.f32 %v1764_v52, %v1760_v55 }
 0x218   : > { %v1773_v57 = vsel %vm1769_vm1, %v1768_v56, -inf }
 0x219   : > { %1774 = vmax.xlane.f32.xlu0 %v1773_v57  ;;  %v5283_v57 = vld [vmem:[%s7733_s18 + $0x58] sm:$0xf0] }
 0x21b   : > { %v1757_v59 = vpop.f32.mrf.mxu1  ;;  %v1865_v60 = vpop.f32.mrf.mxu0 }
 0x21c   : > { %v1882_v61 = vmul.f32 0.088388346, %v1865_v60  ;;  %v1708_v11 = vpop.f32.mrf.mxu2  ;;  %v5282_v59 = vor.u32 %v6445_v54, %v5281_v53  ;;  %v5203_v54 = vld [vmem:[%s7733_s18 + $0xb8] sm:$0xf0] }
 0x21d   : > { %v1709_v1 = vadd.f32 %v1708_v11, %v1072_v13  ;;  %v6464_v11 = vld [vmem:[%s7733_s18 + $0xf4] sm:$0xf] }
 0x21e   : > { %v1884_v63 = vadd.f32 %v1882_v61, %v1763_v45  ;;  %v5273_v61 = vld [vmem:[%s7733_s18 + $0x40] sm:$0xf] }
 0x220   : > { %v1886_v2 = vsel %vm1769_vm1, %v1884_v63, -inf }
 0x221   : > { %1887 = vmax.xlane.f32.xlu1 %v1886_v2  ;;  %v6442_v2 = vld [vmem:[%s7733_s18 + $0x44] sm:$0xf] }
 0x223   : > { %v1867_v3 = vpop.f32.mrf.mxu0  ;;  %v1878_v5 = vpop.f32.mrf.mxu1 }
 0x224   : > { %v1883_v8 = vmul.f32 0.088388346, %v1878_v5  ;;  %v1710_v14 = vpop.f32.mrf.mxu2  ;;  %v5275_v5 = vld [vmem:[%s7733_s18 + $0x48] sm:$0xf0] }
 0x225   : > { %v1722_v12 = vpop.f32.mrf.mxu3  ;;  %v1711_v15 = vadd.f32 %v1710_v14, %v1072_v13  ;;  %v5265_v13 = vld [vmem:[%s7733_s18 + $0x30] sm:$0xf] }
 0x226   : > { %v1885_v9 = vadd.f32 %v1883_v8, %v1764_v52  ;;  %v1723_v16 = vadd.f32 %v1722_v12, %v1709_v1  ;;  %v5291_v52 = vld [vmem:[%s7733_s18 + $0x68] sm:$0xf0]  ;;  %v5233_v8 = vld [vmem:[%s7733_s18 + $0xf0] sm:$0xf]  ;;  %v5235_v12 = vld [vmem:[%s7733_s18 + $0xf8] sm:$0xf0] }
 0x227   : > { %v5294_v55 = vor.u32 %v6446_v50, %v5291_v52  ;;  %v5238_v14 = vor.u32 %v6464_v11, %v5235_v12  ;;  %v6441_v1 = vld [vmem:[%s7733_s18 + $0x34] sm:$0xf0]  ;;  %v5201_v50 = vld [vmem:[%s7733_s18 + $0xb0] sm:$0xf]  ;;  %v6456_v52 = vld [vmem:[%s7733_s18 + $0xb4] sm:$0xf] }
 0x228   : > { %v1889_v0 = vsel %vm1769_vm1, %v1885_v9, -inf  ;;  %v1854_v17 = vpack.c.bf16 %v1723_v16, %v1723_v16  ;;  %v5266_v16 = vor.u32 %v6441_v1, %v5265_v13  ;;  %v5177_v11 = vld [vmem:[%s7733_s18 + $0x80] sm:$0xf]  ;;  %v6451_v12 = vld [vmem:[%s7733_s18 + $0x84] sm:$0xf0] }
 0x229   : > { %1890 = vmax.xlane.f32.xlu1 %v1889_v0  ;;  %v5278_v0 = vor.u32 %v6442_v2, %v5275_v5  ;;  %2059 = vmatpush.bf16.msrb.mxu1 %v5238_v14  ;;  %v6453_v2 = vld [vmem:[%s7733_s18 + $0x94] sm:$0xf0]  ;;  %v6452_v5 = vld [vmem:[%s7733_s18 + $0x94] sm:$0xf]  ;;  %v6450_v13 = vld [vmem:[%s7733_s18 + $0x84] sm:$0xf]  ;;  %v5178_v14 = vor.u32 %v6451_v12, %v5177_v11 }
 0x22a   : > { %v1912_v19 = vsel %vm1795_vm0, %v1854_v17, 0  ;;  %v5225_v17 = vld [vmem:[%s7733_s18 + $0xe0] sm:$0xf]  ;;  %v5179_v1 = vld [vmem:[%s7733_s18 + $0x88] sm:$0xf0] }
 0x22b   : > { %v1880_v10 = vpop.f32.mrf.mxu1  ;;  %1921 = vmatpush.bf16.msra.mxu2 %v1912_v19  ;;  %v6462_v19 = vld [vmem:[%s7733_s18 + $0xe4] sm:$0xf]  ;;  %v6528_v11 = vld [vmem:[%s7743_s27 + $0x3dc] sm:$0xf0]  ;;  %v6494_v12 = vld [vmem:[%s7743_s27 + $0x1c4] sm:$0xf] }
 0x22d   : > { %v1724_v6 = vpop.f32.mrf.mxu3 }
 0x22e   : > { %v1725_v7 = vadd.f32 %v1724_v6, %v1711_v15  ;;  %v6440_v15 = vld [vmem:[%s7733_s18 + $0x34] sm:$0xf]  ;;  %v5267_v6 = vld [vmem:[%s7733_s18 + $0x38] sm:$0xf0] }
 0x230   : > { %v1855_v18 = vpack.c.bf16 %v1725_v7, %v1725_v7  ;;  %v5270_v7 = vor.u32 %v6440_v15, %v5267_v6  ;;  %v5182_v15 = vor.u32 %v6450_v13, %v5179_v1  ;;  %v5419_v13 = vld [vmem:[%s7743_s27 + $0x1e0] sm:$0xf0] }
 0x231   : > { %v5422_v1 = vor.u32 %v6494_v12, %v5419_v13 }
 0x232   : > { %v1931_v20 = vsel %vm1795_vm0, %v1855_v18, 0  ;;  %v6463_v18 = vld [vmem:[%s7733_s18 + $0xe4] sm:$0xf0] }
 0x233   : > { %1940 = vmatpush.bf16.msra.mxu3 %v1931_v20  ;;  %v5226_v20 = vor.u32 %v6463_v18, %v5225_v17 }
 0x284   : > { %v1772_v21 = vpop.xlane.xlu0 %1771 }
 0x285   : > { %v1776_v22 = vsub.f32 %v1767_v49, %v1772_v21  ;;  %v6447_v49 = vld [vmem:[%s7733_s18 + $0x64] sm:$0xf0]  ;;  %v5227_v21 = vld [vmem:[%s7733_s18 + $0xe8] sm:$0xf0] }
 0x286   : > { %v5290_v51 = vor.u32 %v6447_v49, %v5289_v48  ;;  %v5243_v48 = vld [vmem:[%s7733_s18 + $0x8] sm:$0xf0] }
 0x287   : > { %v1778_v23 = vmul.f32 1.442695, %v1776_v22  ;;  %v5257_v22 = vld [vmem:[%s7733_s18 + $0x20] sm:$0xf] }
 0x289   : > { %6859 = vpow2.f32 %v1778_v23  ;;  %v6439_v23 = vld [vmem:[%s7733_s18 + $0x24] sm:$0xf0] }
 0x28a   : > { %v5258_v24 = vor.u32 %v6439_v23, %v5257_v22 }
 0x28c   : > { %v1775_v4 = vpop.xlane.xlu0 %1774 }
 0x28d   : > { %v1777_v26 = vsub.f32 %v1768_v56, %v1775_v4  ;;  %v6444_v56 = vld [vmem:[%s7733_s18 + $0x54] sm:$0xf]  ;;  %v5230_v4 = vor.u32 %v6462_v19, %v5227_v21 }
 0x28e   : > { %v5286_v60 = vor.u32 %v6444_v56, %v5283_v57  ;;  %v5193_v56 = vld [vmem:[%s7733_s18 + $0xa0] sm:$0xf]  ;;  %v6455_v57 = vld [vmem:[%s7733_s18 + $0xa4] sm:$0xf0] }
 0x28f   : > { %v6860_v27 = vpop.eup %6859  ;;  %v1780_v28 = vmul.f32 1.442695, %v1777_v26  ;;  %v5259_v26 = vld [vmem:[%s7733_s18 + $0x28] sm:$0xf0]  ;;  %2060 = vmatpush.bf16.msrb.mxu1 %v5230_v4 }
 0x290   : > { %v1790_v30 = vpack.c.bf16 %v6860_v27, %v6860_v27  ;;  %v1782_v31 = vsel %vm1769_vm1, %v6860_v27, 0.0  ;;  %v5217_v27 = vld [vmem:[%s7733_s18 + $0xd0] sm:$0xf] }
 0x291   : > { %6861 = vpow2.f32 %v1780_v28  ;;  %1783 = vadd.xlane.f32.xlu2 %v1782_v31  ;;  %v5262_v28 = vor.u32 %v6438_v25, %v5259_v26  ;;  %v5219_v31 = vld [vmem:[%s7733_s18 + $0xd8] sm:$0xf0] }
 0x292   : > { %5171 = vmatmul.msk.bf16.vlgmr.msrb.gmra.mxu2 %vm1769_vm1, %v1790_v30  ;;  %v6460_v30 = vld [vmem:[%s7733_s18 + $0xd4] sm:$0xf] }
 0x293   : > { %2153 = vmatpush.bf16.msrb.mxu2 %v5298_v29  ;;  %v6461_v29 = vld [vmem:[%s7733_s18 + $0xd4] sm:$0xf0]  ;;  %v5222_v33 = vor.u32 %v6460_v30, %v5219_v31 }
 0x294   : > { %v1888_v32 = vpop.xlane.xlu1 %1887 }
 0x295   : > { %v1892_v35 = vsub.f32 %v1884_v63, %v1888_v32  ;;  %v6443_v63 = vld [vmem:[%s7733_s18 + $0x44] sm:$0xf0]  ;;  %v5218_v32 = vor.u32 %v6461_v29, %v5217_v27  ;;  %2061 = vmatpush.bf16.msrb.mxu1 %v5222_v33 }
 0x296   : > { %v5274_v3 = vor.u32 %v6443_v63, %v5273_v61  ;;  %v5195_v61 = vld [vmem:[%s7733_s18 + $0xa8] sm:$0xf0]  ;;  %v5185_v63 = vld [vmem:[%s7733_s18 + $0x90] sm:$0xf] }
 0x297   : > { %v6862_v36 = vpop.eup %6861  ;;  %v1894_v37 = vmul.f32 1.442695, %v1892_v35  ;;  %2154 = vmatpush.bf16.msrb.mxu2 %v5290_v51  ;;  %v6437_v35 = vld [vmem:[%s7733_s18 + $0x14] sm:$0xf0] }
 0x298   : > { %v1791_v39 = vpack.c.bf16 %v6862_v36, %v6862_v36  ;;  %v1785_v40 = vsel %vm1769_vm1, %v6862_v36, 0.0  ;;  %v6436_v36 = vld [vmem:[%s7733_s18 + $0x14] sm:$0xf]  ;;  %v6457_v51 = vld [vmem:[%s7733_s18 + $0xb4] sm:$0xf0] }
 0x299   : > { %6863 = vpow2.f32 %v1894_v37  ;;  %1786 = vadd.xlane.f32.xlu2 %v1785_v40  ;;  %v5250_v37 = vor.u32 %v6437_v35, %v5249_v34  ;;  %v5209_v40 = vld [vmem:[%s7733_s18 + $0xc0] sm:$0xf]  ;;  %v5202_v53 = vor.u32 %v6457_v51, %v5201_v50  ;;  %v2181_v34 = vld [vmem:[%s934_s8] sm:$0x3] }
 0x29a   : > { %5172 = vmatmul.msk.bf16.vlgmr.msrb.gmra.mxu3 %vm1769_vm1, %v1791_v39 }
 0x29b   : > { %2167 = vmatpush.bf16.msrb.mxu3 %v5302_v38  ;;  %2155 = vmatpush.bf16.msrb.mxu2 %v5282_v59  ;;  %v5251_v38 = vld [vmem:[%s7733_s18 + $0x18] sm:$0xf0]  ;;  %v6454_v59 = vld [vmem:[%s7733_s18 + $0xa4] sm:$0xf] }
 0x29c   : > { %v1891_v58 = vpop.xlane.xlu1 %1890  ;;  %v5254_v39 = vor.u32 %v6436_v36, %v5251_v38  ;;  %v2184_v38 = vperm.slane %v2181_v34, 1 }
 0x29d   : > { %v1893_v62 = vsub.f32 %v1885_v9, %v1891_v58  ;;  %v6465_v9 = vld [vmem:[%s7733_s18 + $0xf4] sm:$0xf0]  ;;  %v6459_v58 = vld [vmem:[%s7733_s18 + $0xc4] sm:$0xf0] }
 0x29e   : > { %v5234_v10 = vor.u32 %v6465_v9, %v5233_v8  ;;  %v5187_v8 = vld [vmem:[%s7733_s18 + $0x98] sm:$0xf0]  ;;  %v5186_v9 = vor.u32 %v6453_v2, %v5185_v63  ;;  %v7354_v63 = vmov 256.0  }
 0x29f   : > { %v6864_v41 = vpop.eup %6863  ;;  %v1896_v42 = vmul.f32 1.442695, %v1893_v62  ;;  %2168 = vmatpush.bf16.msrb.mxu3 %v5294_v55  ;;  %2156 = vmatpush.bf16.msrb.mxu2 %v5274_v3  ;;  %v6458_v62 = vld [vmem:[%s7733_s18 + $0xc4] sm:$0xf]  ;;  %v5206_v55 = vor.u32 %v6456_v52, %v5203_v54  ;;  %v5198_v3 = vor.u32 %v6454_v59, %v5195_v61  ;;  %v6888_v59 = vld [vmem:[%s7777_s10 + $0x18] sm:$0xff] }
 0x2a0   : > { %v1906_v43 = vpack.c.bf16 %v6864_v41, %v6864_v41  ;;  %v1898_v44 = vsel %vm1769_vm1, %v6864_v41, 0.0  ;;  %2045 = vmatpush.bf16.msrb.mxu0 %v5234_v10  ;;  %v5210_v41 = vor.u32 %v6459_v58, %v5209_v40 }
 0x2a1   : > { %6865 = vpow2.f32 %v1896_v42  ;;  %1899 = vadd.xlane.f32.xlu0 %v1898_v44  ;;  %v5211_v42 = vld [vmem:[%s7733_s18 + $0xc8] sm:$0xf0]  ;;  %v6435_v44 = vld [vmem:[%s7733_s18 + $0x4] sm:$0xf0] }
 0x2a2   : > { %5173 = vmatmul.msk.bf16.vlgmr.msra.gmra.mxu2 %vm1769_vm1, %v1906_v43  ;;  %v5241_v43 = vld [vmem:[%s7733_s18] sm:$0xf] }
 0x2a3   : > { %2169 = vmatpush.bf16.msrb.mxu3 %v5286_v60  ;;  %2157 = vmatpush.bf16.msrb.mxu2 %v5266_v16  ;;  %v5194_v60 = vor.u32 %v6455_v57, %v5193_v56  ;;  %v6887_v56 = vld [vmem:[%s7777_s10 + $0x10] sm:$0xff] }
 0x2a4   : > { %2046 = vmatpush.bf16.msrb.mxu0 %v5226_v20 }
 0x2a7   : > { %v6866_v45 = vpop.eup %6865  ;;  %2170 = vmatpush.bf16.msrb.mxu3 %v5278_v0  ;;  %2158 = vmatpush.bf16.msrb.mxu2 %v5258_v24  ;;  %v5190_v0 = vor.u32 %v6452_v5, %v5187_v8  ;;  %v5417_v8 = vld [vmem:[%s7743_s27 + $0x1c0] sm:$0xf] }
 0x2a8   : > { %v1907_v46 = vpack.c.bf16 %v6866_v45, %v6866_v45  ;;  %v1901_v47 = vsel %vm1769_vm1, %v6866_v45, 0.0  ;;  %2047 = vmatpush.bf16.msrb.mxu0 %v5218_v32  ;;  %v5214_v45 = vor.u32 %v6458_v62, %v5211_v42 }
 0x2a9   : > { %1902 = vadd.xlane.f32.xlu1 %v1901_v47  ;;  %v6434_v47 = vld [vmem:[%s7733_s18 + $0x4] sm:$0xf] }
 0x2aa   : > { %5174 = vmatmul.msk.bf16.vlgmr.msra.gmra.mxu3 %vm1769_vm1, %v1907_v46  ;;  %v5242_v46 = vor.u32 %v6435_v44, %v5241_v43  ;;  %v5246_v49 = vor.u32 %v6434_v47, %v5243_v48  ;;  %2062 = vmatpush.bf16.msrb.mxu1 %v5214_v45  ;;  %v6885_v43 = vld [vmem:[%s7777_s10] sm:$0xff]  ;;  %v6886_v45 = vld [vmem:[%s7777_s10 + $0x8] sm:$0xff] }
 0x2ab   : > { %2171 = vmatpush.bf16.msrb.mxu3 %v5270_v7  ;;  %2159 = vmatpush.bf16.msrb.mxu2 %v5250_v37  ;;  %v2183_v37 = vperm.slane %v2181_v34, 0  ;;  %v5387_v34 = vld [vmem:[%s7743_s27 + $0x160] sm:$0xf0] }
 0x2ac   : > { %2048 = vmatpush.bf16.msrb.mxu0 %v5210_v41 }
 0x2ae   : > { %2063 = vmatpush.bf16.msrb.mxu1 %v5206_v55 }
 0x2af   : > { %2172 = vmatpush.bf16.msrb.mxu3 %v5262_v28  ;;  %2160 = vmatpush.bf16.msrb.mxu2 %v5242_v46 }
 0x2b0   : > { %2049 = vmatpush.bf16.msrb.mxu0 %v5202_v53 }
 0x2b2   : > { %2064 = vmatpush.bf16.msrb.mxu1 %v5198_v3 }
 0x2b3   : > { %2173 = vmatpush.bf16.msrb.mxu3 %v5254_v39  ;;  %2696 = vmatpush.bf16.msra.mxu2 %v5422_v1 }
 0x2b4   : > { %2050 = vmatpush.bf16.msrb.mxu0 %v5194_v60 }
 0x2b6   : > { %2065 = vmatpush.bf16.msrb.mxu1 %v5190_v0  ;;  %v5545_v0 = vld [vmem:[%s7743_s27 + $0x3c0] sm:$0xf] }
 0x2b7   : > { %2174 = vmatpush.bf16.msrb.mxu3 %v5246_v49 }
 0x2b8   : > { %2051 = vmatpush.bf16.msrb.mxu0 %v5186_v9  ;;  %v6496_v9 = vld [vmem:[%s7743_s27 + $0x1dc] sm:$0xf0] }
 0x2ba   : > { %2066 = vmatpush.bf16.msrb.mxu1 %v5182_v15  ;;  %v6526_v15 = vld [vmem:[%s7743_s27 + $0x3c4] sm:$0xf] }
 0x2bc   : > { %2052 = vmatpush.bf16.msrb.mxu0 %v5178_v14  ;;  %v5546_v14 = vor.u32 %v6528_v11, %v5545_v0 }
 0x2be   : > { %2682 = vmatpush.bf16.msra.mxu1 %v5546_v14 }
 0x304   : > { %v1784_v10 = vpop.xlane.xlu2 %1783 }
 0x305   : > { %6867 = vrcp.f32 %v1784_v10  ;;  %v5418_v10 = vor.u32 %v6496_v9, %v5417_v8 }
 0x307   : > { %2668 = vmatpush.bf16.msra.mxu0 %v5418_v10 }
 0x30b   : > { %v6868_v7 = vpop.eup %6867 }
 0x30c   : > { %v1787_v6 = vpop.xlane.xlu2 %1786 }
 0x30d   : > { %6869 = vrcp.f32 %v1787_v6  ;;  %v5547_v6 = vld [vmem:[%s7743_s27 + $0x3e0] sm:$0xf0] }
 0x313   : > { %v6870_v17 = vpop.eup %6869 }
 0x314   : > { %v1900_v23 = vpop.xlane.xlu0 %1899 }
 0x315   : > { %v1808_v16 = vpop.f32.mrf.mxu2  ;;  %6871 = vrcp.f32 %v1900_v23  ;;  %v5403_v23 = vld [vmem:[%s7743_s27 + $0x1a0] sm:$0xf0] }
 0x316   : > { %v1831_v20 = vmul.f32 %v6868_v7, %v1808_v16  ;;  %v5401_v16 = vld [vmem:[%s7743_s27 + $0x180] sm:$0xf]  ;;  %v5550_v7 = vor.u32 %v6526_v15, %v5547_v6 }
 0x318   : > { %2710 = vmatpush.bf16.msra.mxu3 %v5550_v7 }
 0x31b   : > { %v6872_v26 = vpop.eup %6871 }
 0x31c   : > { %v1903_v4 = vpop.xlane.xlu1 %1902 }
 0x31d   : > { %v1810_v18 = vpop.f32.mrf.mxu2  ;;  %v1827_v19 = vpop.f32.mrf.mxu3  ;;  %6873 = vrcp.f32 %v1903_v4  ;;  %v6522_v4 = vld [vmem:[%s7743_s27 + $0x384] sm:$0xf] }
 0x31e   : > { %v1832_v21 = vmul.f32 %v6870_v17, %v1827_v19  ;;  %6875 = vrcp.f32 %v7354_v63  ;;  %v6492_v17 = vld [vmem:[%s7743_s27 + $0x19c] sm:$0xf0]  ;;  %v5355_v63 = vld [vmem:[%s7743_s27 + $0xe0] sm:$0xf0] }
 0x31f   : > { %v5529_v18 = vld [vmem:[%s7743_s27 + $0x380] sm:$0xf] }
 0x320   : > { %v1833_v22 = vpack.c.bf16 %v1832_v21, %v1831_v20  ;;  %v6524_v19 = vld [vmem:[%s7743_s27 + $0x39c] sm:$0xf0]  ;;  %v5402_v20 = vor.u32 %v6492_v17, %v5401_v16 }
 0x321   : > { %v5530_v21 = vor.u32 %v6524_v19, %v5529_v18  ;;  %v5337_v19 = vld [vmem:[%s7743_s27 + $0x80] sm:$0xf] }
 0x322   : > { %2161 = vmatmul.bf16.vlgmr.msrb.gmra.mxu2 %v1833_v22  ;;  %2175 = vmatmul.bf16.vlgmr.msrb.gmra.mxu3 %v1833_v22  ;;  %v6490_v22 = vld [vmem:[%s7743_s27 + $0x184] sm:$0xf] }
 0x323   : > { %v6874_v27 = vpop.eup %6873  ;;  %2669 = vmatpush.bf16.msra.mxu0 %v5402_v20  ;;  %2683 = vmatpush.bf16.msra.mxu1 %v5530_v21  ;;  %v6476_v20 = vld [vmem:[%s7743_s27 + $0x9c] sm:$0xf0] }
 0x324   : > { %v8124_v2 = vpop.eup %6875  ;;  %v5465_v21 = vld [vmem:[%s7743_s27 + $0x280] sm:$0xf] }
 0x325   : > { %v1829_v24 = vpop.f32.mrf.mxu3  ;;  %v1923_v25 = vpop.f32.mrf.mxu2  ;;  %v2202_v3 = vmul.f32 256.0, %v8124_v2  ;;  %vm2206_vm2 = vweird.f32 %v8124_v2 }
 0x326   : > { %v1946_v30 = vmul.f32 %v6872_v26, %v1923_v25  ;;  %v5406_v25 = vor.u32 %v6490_v22, %v5403_v23  ;;  %v5531_v26 = vld [vmem:[%s7743_s27 + $0x3a0] sm:$0xf0]  ;;  %v6508_v22 = vld [vmem:[%s7743_s27 + $0x29c] sm:$0xf0] }
 0x327   : > { %v2203_v5 = vsub.f32 1.0, %v2202_v3  ;;  %v6510_v3 = vld [vmem:[%s7743_s27 + $0x2c4] sm:$0xf] }
 0x328   : > { %2697 = vmatpush.bf16.msra.mxu2 %v5406_v25  ;;  %v6474_v23 = vld [vmem:[%s7743_s27 + $0x84] sm:$0xf] }
 0x329   : > { %v2204_v24 = vmul.f32 %v8124_v2, %v2203_v5  ;;  %v5483_v5 = vld [vmem:[%s7743_s27 + $0x2e0] sm:$0xf0] }
 0x32a   : > { %v5486_v12 = vor.u32 %v6510_v3, %v5483_v5  ;;  %v6506_v25 = vld [vmem:[%s7743_s27 + $0x284] sm:$0xf]  ;;  %v5427_v3 = vld [vmem:[%s7743_s27 + $0x1e8] sm:$0xf0] }
 0x32b   : > { %v6527_v5 = vld [vmem:[%s7743_s27 + $0x3cc] sm:$0xf] }
 0x32d   : > { %v1925_v28 = vpop.f32.mrf.mxu2  ;;  %v1942_v29 = vpop.f32.mrf.mxu3 }
 0x32e   : > { %v1947_v31 = vmul.f32 %v6874_v27, %v1942_v29  ;;  %v5385_v27 = vld [vmem:[%s7743_s27 + $0x140] sm:$0xf]  ;;  %v5534_v29 = vor.u32 %v6522_v4, %v5531_v26  ;;  %v5466_v4 = vor.u32 %v6508_v22, %v5465_v21  ;;  %v5467_v26 = vld [vmem:[%s7743_s27 + $0x2a0] sm:$0xf0]  ;;  %v6489_v21 = vld [vmem:[%s7743_s27 + $0x164] sm:$0xf0] }
 0x32f   : > { %v6488_v28 = vld [vmem:[%s7743_s27 + $0x15c] sm:$0xf0] }
 0x330   : > { %v1948_v32 = vpack.c.bf16 %v1947_v31, %v1946_v30  ;;  %v5513_v30 = vld [vmem:[%s7743_s27 + $0x340] sm:$0xf]  ;;  %2711 = vmatpush.bf16.msra.mxu3 %v5534_v29 }
 0x331   : > { %v6520_v31 = vld [vmem:[%s7743_s27 + $0x35c] sm:$0xf0] }
 0x332   : > { %2053 = vmatmul.bf16.vlgmr.msrb.gmra.mxu0 %v1948_v32  ;;  %2067 = vmatmul.bf16.vlgmr.msrb.gmra.mxu1 %v1948_v32  ;;  %v6486_v32 = vld [vmem:[%s7743_s27 + $0x144] sm:$0xf]  ;;  %v6472_v29 = vld [vmem:[%s7743_s27 + $0x5c] sm:$0xf0] }
 0x335   : > { %v1944_v33 = vpop.f32.mrf.mxu3 }
 0x336   : > { %v5386_v33 = vor.u32 %v6488_v28, %v5385_v27  ;;  %v5470_v27 = vor.u32 %v6506_v25, %v5467_v26  ;;  %v5321_v28 = vld [vmem:[%s7743_s27 + $0x40] sm:$0xf]  ;;  %v6519_v26 = vld [vmem:[%s7743_s27 + $0x34c] sm:$0xf] }
 0x338   : > { %2670 = vmatpush.bf16.msra.mxu0 %v5386_v33  ;;  %v6470_v33 = vld [vmem:[%s7743_s27 + $0x44] sm:$0xf] }
 0x3a5   : > { %v2162_v35 = vpop.f32.mrf.mxu2  ;;  %v2176_v36 = vpop.f32.mrf.mxu3 }
 0x3ad   : > { %v2164_v47 = vpop.f32.mrf.mxu2  ;;  %v2178_v48 = vpop.f32.mrf.mxu3 }
 0x3af   : > { %v2054_v39 = vpop.f32.mrf.mxu0  ;;  %v2068_v40 = vpop.f32.mrf.mxu1 }
 0x3b0   : > { %v2163_v58 = vadd.f32 %v2162_v35, %v2054_v39  ;;  %v2177_v62 = vadd.f32 %v2176_v36, %v2068_v40  ;;  %v6518_v35 = vld [vmem:[%s7743_s27 + $0x344] sm:$0xf]  ;;  %v5369_v39 = vld [vmem:[%s7743_s27 + $0x100] sm:$0xf] }
 0x3b1   : > { %v5515_v36 = vld [vmem:[%s7743_s27 + $0x360] sm:$0xf0]  ;;  %v6484_v40 = vld [vmem:[%s7743_s27 + $0x11c] sm:$0xf0] }
 0x3b2   : > { %v2187_v41 = vadd.f32 %v2183_v37, %v2163_v58  ;;  %v2188_v42 = vadd.f32 %v2184_v38, %v2177_v62  ;;  %v5497_v58 = vld [vmem:[%s7743_s27 + $0x300] sm:$0xf]  ;;  %v2205_v62 = vadd.f32 %v8124_v2, %v2204_v24 }
 0x3b4   : > { %v8109_v44 = vadd.f32 %v6885_v43, %v2187_v41  ;;  %v8112_v46 = vadd.f32 %v6886_v45, %v2188_v42  ;;  %v5518_v41 = vor.u32 %v6518_v35, %v5515_v36  ;;  %v6516_v42 = vld [vmem:[%s7743_s27 + $0x31c] sm:$0xf0]  ;;  %v6482_v43 = vld [vmem:[%s7743_s27 + $0x104] sm:$0xf] }
 0x3b5   : > { %v5371_v45 = vld [vmem:[%s7743_s27 + $0x120] sm:$0xf0] }
 0x3b6   : > { %v2195_v49 = vadd.f32 %v8112_v46, %v8109_v44  ;;  %2712 = vmatpush.bf16.msra.mxu3 %v5518_v41 }
 0x3b7   : > { %v2056_v50 = vpop.f32.mrf.mxu0  ;;  %v2070_v51 = vpop.f32.mrf.mxu1 }
 0x3b8   : > { %v2165_v52 = vadd.f32 %v2164_v47, %v2056_v50  ;;  %v2179_v53 = vadd.f32 %v2178_v48, %v2070_v51  ;;  %2196 = vadd.xlane.f32.xlu2 %v2195_v49  ;;  %v6514_v47 = vld [vmem:[%s7743_s27 + $0x304] sm:$0xf]  ;;  %v5370_v49 = vor.u32 %v6484_v40, %v5369_v39  ;;  %v5498_v50 = vor.u32 %v6516_v42, %v5497_v58  ;;  %v5305_v40 = vld [vmem:[%s7743_s27] sm:$0xf] }
 0x3b9   : > { %v5499_v48 = vld [vmem:[%s7743_s27 + $0x320] sm:$0xf0]  ;;  %v5374_v51 = vor.u32 %v6482_v43, %v5371_v45  ;;  %v6468_v58 = vld [vmem:[%s7743_s27 + $0x1c] sm:$0xf0] }
 0x3ba   : > { %v2189_v54 = vadd.f32 %v2183_v37, %v2165_v52  ;;  %v2190_v55 = vadd.f32 %v2184_v38, %v2179_v53  ;;  %v5514_v37 = vor.u32 %v6520_v31, %v5513_v30  ;;  %v5390_v38 = vor.u32 %v6486_v32, %v5387_v34  ;;  %v5353_v52 = vld [vmem:[%s7743_s27 + $0xc0] sm:$0xf]  ;;  %2671 = vmatpush.bf16.msra.mxu0 %v5370_v49  ;;  %v5323_v34 = vld [vmem:[%s7743_s27 + $0x60] sm:$0xf0] }
 0x3bb   : > { %v6480_v53 = vld [vmem:[%s7743_s27 + $0xdc] sm:$0xf0]  ;;  %v5322_v31 = vor.u32 %v6472_v29, %v5321_v28  ;;  %v5326_v36 = vor.u32 %v6470_v33, %v5323_v34  ;;  %v5306_v41 = vor.u32 %v6468_v58, %v5305_v40  ;;  %v6466_v43 = vld [vmem:[%s7743_s27 + $0x4] sm:$0xf]  ;;  %v5377_v29 = vld [vmem:[%s7743_s27 + $0x108] sm:$0xf] }
 0x3bc   : > { %v8117_v57 = vadd.f32 %v6887_v56, %v2189_v54  ;;  %v8120_v60 = vadd.f32 %v6888_v59, %v2190_v55  ;;  %2684 = vmatpush.bf16.msra.mxu1 %v5514_v37  ;;  %2698 = vmatpush.bf16.msra.mxu2 %v5390_v38  ;;  %v5481_v54 = vld [vmem:[%s7743_s27 + $0x2c0] sm:$0xf]  ;;  %v8166_v55 = vsel %vm2206_vm2, %v8124_v2, %v2205_v62  ;;  %v6502_v37 = vld [vmem:[%s7743_s27 + $0x244] sm:$0xf]  ;;  %v6517_v33 = vld [vmem:[%s7743_s27 + $0x324] sm:$0xf0] }
 0x3bd   : > { %v5502_v56 = vor.u32 %v6514_v47, %v5499_v48  ;;  %v6512_v59 = vld [vmem:[%s7743_s27 + $0x2dc] sm:$0xf0]  ;;  %v5354_v9 = vor.u32 %v6480_v53, %v5353_v52  ;;  %v5451_v38 = vld [vmem:[%s7743_s27 + $0x260] sm:$0xf0]  ;;  %v6497_v53 = vld [vmem:[%s7743_s27 + $0x1e4] sm:$0xf0] }
 0x3be   : > { %v2198_v61 = vadd.f32 %v8120_v60, %v8117_v57  ;;  %v5482_v10 = vor.u32 %v6512_v59, %v5481_v54  ;;  %v5449_v30 = vld [vmem:[%s7743_s27 + $0x240] sm:$0xf]  ;;  %v5454_v39 = vor.u32 %v6502_v37, %v5451_v38  ;;  %v5307_v45 = vld [vmem:[%s7743_s27 + $0x20] sm:$0xf0]  ;;  %v5553_v54 = vld [vmem:[%s7743_s27 + $0x3c8] sm:$0xf] }
 0x3bf   : > { %2713 = vmatpush.bf16.msra.mxu3 %v5502_v56  ;;  %2672 = vmatpush.bf16.msra.mxu0 %v5354_v9  ;;  %v6504_v32 = vld [vmem:[%s7743_s27 + $0x25c] sm:$0xf0]  ;;  %v5310_v48 = vor.u32 %v6466_v43, %v5307_v45  ;;  %v6498_v49 = vld [vmem:[%s7743_s27 + $0x204] sm:$0xf]  ;;  %v6529_v56 = vld [vmem:[%s7743_s27 + $0x3e4] sm:$0xf0] }
 0x3c0   : > { %2199 = vadd.xlane.f32.xlu0 %v2198_v61  ;;  %v6478_v61 = vld [vmem:[%s7743_s27 + $0xc4] sm:$0xf]  ;;  %2685 = vmatpush.bf16.msra.mxu1 %v5498_v50  ;;  %v5450_v35 = vor.u32 %v6504_v32, %v5449_v30  ;;  %v5433_v62 = vld [vmem:[%s7743_s27 + $0x200] sm:$0xf]  ;;  %v5555_v9 = vld [vmem:[%s7743_s27 + $0x3e8] sm:$0xf0] }
 0x3c1   : > { %2699 = vmatpush.bf16.msra.mxu2 %v5374_v51  ;;  %v5358_v11 = vor.u32 %v6478_v61, %v5355_v63  ;;  %v6500_v42 = vld [vmem:[%s7743_s27 + $0x21c] sm:$0xf0]  ;;  %v5435_v50 = vld [vmem:[%s7743_s27 + $0x220] sm:$0xf0]  ;;  %v5425_v51 = vld [vmem:[%s7743_s27 + $0x1c8] sm:$0xf]  ;;  %v5554_v61 = vor.u32 %v6529_v56, %v5553_v54 }
 0x3c2   : > { %v5434_v47 = vor.u32 %v6500_v42, %v5433_v62  ;;  %v5438_v52 = vor.u32 %v6498_v49, %v5435_v50  ;;  %v5426_v59 = vor.u32 %v6497_v53, %v5425_v51  ;;  %v6495_v63 = vld [vmem:[%s7743_s27 + $0x1cc] sm:$0xf]  ;;  %v6485_v30 = vld [vmem:[%s7743_s27 + $0x124] sm:$0xf0] }
 0x3c3   : > { %2714 = vmatpush.bf16.msra.mxu3 %v5486_v12  ;;  %v5378_v32 = vor.u32 %v6485_v30, %v5377_v29  ;;  %v6483_v34 = vld [vmem:[%s7743_s27 + $0x10c] sm:$0xf]  ;;  %v5361_v58 = vld [vmem:[%s7743_s27 + $0xc8] sm:$0xf] }
 0x3c4   : > { %2686 = vmatpush.bf16.msra.mxu1 %v5482_v10  ;;  %v6493_v10 = vld [vmem:[%s7743_s27 + $0x1a4] sm:$0xf0]  ;;  %v6515_v38 = vld [vmem:[%s7743_s27 + $0x30c] sm:$0xf] }
 0x3c5   : > { %2700 = vmatpush.bf16.msra.mxu2 %v5358_v11  ;;  %v5558_v11 = vor.u32 %v6527_v5, %v5555_v9  ;;  %v6481_v62 = vld [vmem:[%s7743_s27 + $0xe4] sm:$0xf0]  ;;  %v6479_v45 = vld [vmem:[%s7743_s27 + $0xcc] sm:$0xf] }
 0x3c6   : > { %v5362_v42 = vor.u32 %v6481_v62, %v5361_v58  ;;  %v6513_v43 = vld [vmem:[%s7743_s27 + $0x2e4] sm:$0xf0]  ;;  %v6511_v50 = vld [vmem:[%s7743_s27 + $0x2cc] sm:$0xf] }
 0x3c7   : > { %2715 = vmatpush.bf16.msra.mxu3 %v5470_v27  ;;  %v5523_v27 = vld [vmem:[%s7743_s27 + $0x368] sm:$0xf0]  ;;  %v5345_v53 = vld [vmem:[%s7743_s27 + $0x88] sm:$0xf] }
 0x3c8   : > { %2687 = vmatpush.bf16.msra.mxu1 %v5466_v4  ;;  %v5395_v4 = vld [vmem:[%s7743_s27 + $0x168] sm:$0xf0]  ;;  %v5526_v28 = vor.u32 %v6519_v26, %v5523_v27  ;;  %v6477_v54 = vld [vmem:[%s7743_s27 + $0xa4] sm:$0xf0] }
 0x3c9   : > { %v5491_v51 = vld [vmem:[%s7743_s27 + $0x2e8] sm:$0xf0]  ;;  %v5473_v56 = vld [vmem:[%s7743_s27 + $0x288] sm:$0xf] }
 0x3ca   : > { %v6507_v9 = vld [vmem:[%s7743_s27 + $0x28c] sm:$0xf] }
 0x3cb   : > { %2716 = vmatpush.bf16.msra.mxu3 %v5454_v39  ;;  %v5507_v39 = vld [vmem:[%s7743_s27 + $0x328] sm:$0xf0] }
 0x3cc   : > { %2688 = vmatpush.bf16.msra.mxu1 %v5450_v35  ;;  %v5379_v35 = vld [vmem:[%s7743_s27 + $0x128] sm:$0xf0]  ;;  %v5510_v40 = vor.u32 %v6515_v38, %v5507_v39 }
 0x3cd   : > { %v5382_v37 = vor.u32 %v6483_v34, %v5379_v35  ;;  %v6467_v26 = vld [vmem:[%s7743_s27 + $0xc] sm:$0xf] }
 0x3ce   : > { %v5315_v27 = vld [vmem:[%s7743_s27 + $0x28] sm:$0xf0] }
 0x3cf   : > { %2717 = vmatpush.bf16.msra.mxu3 %v5438_v52  ;;  %v5494_v52 = vor.u32 %v6511_v50, %v5491_v51  ;;  %v5318_v29 = vor.u32 %v6467_v26, %v5315_v27  ;;  %v6499_v30 = vld [vmem:[%s7743_s27 + $0x20c] sm:$0xf]  ;;  %v2262_v51 = vld [vmem:[%s8946_s13] sm:$0x3]  ;;  %v5787_v26 = vld [vmem:[%s7743_s27 + $0x3b0] sm:$0xf0] }
 0x3d0   : > { %2689 = vmatpush.bf16.msra.mxu1 %v5434_v47  ;;  %v5363_v47 = vld [vmem:[%s7743_s27 + $0xe8] sm:$0xf0] }
 0x3d1   : > { %v5366_v49 = vor.u32 %v6479_v45, %v5363_v47 }
 0x3d3   : > { %2766 = vmatpush.bf16.msrb.mxu3 %v5558_v11 }
 0x3d4   : > { %2738 = vmatpush.bf16.msrb.mxu1 %v5554_v61  ;;  %v6509_v61 = vld [vmem:[%s7743_s27 + $0x2a4] sm:$0xf0] }
 0x3d5   : > { %v5474_v5 = vor.u32 %v6509_v61, %v5473_v56  ;;  %v2264_v56 = vperm.slane %v2262_v51, 0 }
 0x42b   : > { %v2197_v8 = vpop.xlane.xlu2 %2196 }
 0x42c   : > { %v2208_v0 = vmul.f32 %v8166_v55, %v2197_v8  ;;  %v5430_v8 = vor.u32 %v6495_v63, %v5427_v3  ;;  %v6475_v63 = vld [vmem:[%s7743_s27 + $0x8c] sm:$0xf] }
 0x42d   : > { %v5347_v3 = vld [vmem:[%s7743_s27 + $0xa8] sm:$0xf0] }
 0x42e   : > { %v8175_v2 = vsub.f32 %v8109_v44, %v2208_v0  ;;  %v8178_v13 = vsub.f32 %v8112_v46, %v2208_v0  ;;  %v5409_v0 = vld [vmem:[%s7743_s27 + $0x188] sm:$0xf] }
 0x42f   : > { %v5410_v12 = vor.u32 %v6493_v10, %v5409_v0  ;;  %v5475_v0 = vld [vmem:[%s7743_s27 + $0x2a8] sm:$0xf0] }
 0x430   : > { %v2214_v14 = vmul.f32 %v8175_v2, %v8175_v2  ;;  %v2215_v1 = vmul.f32 %v8178_v13, %v8178_v13  ;;  %v5478_v10 = vor.u32 %v6507_v9, %v5475_v0  ;;  %v6624_v0 = vld [vmem:[%s7743_s27 + $0x1ec] sm:$0xf0] }
 0x432   : > { %v2218_v44 = vadd.f32 %v2215_v1, %v2214_v14  ;;  %v5537_v14 = vld [vmem:[%s7743_s27 + $0x388] sm:$0xf] }
 0x433   : > { %v2200_v15 = vpop.xlane.xlu0 %2199  ;;  %v6525_v1 = vld [vmem:[%s7743_s27 + $0x3a4] sm:$0xf0] }
 0x434   : > { %v2209_v46 = vmul.f32 %v8166_v55, %v2200_v15  ;;  %2219 = vadd.xlane.f32.xlu1 %v2218_v44  ;;  %v6491_v44 = vld [vmem:[%s7743_s27 + $0x18c] sm:$0xf]  ;;  %v5538_v15 = vor.u32 %v6525_v1, %v5537_v14  ;;  %v6473_v14 = vld [vmem:[%s7743_s27 + $0x64] sm:$0xf0] }
 0x435   : > { %v5457_v1 = vld [vmem:[%s7743_s27 + $0x248] sm:$0xf] }
 0x436   : > { %v8186_v6 = vsub.f32 %v8117_v57, %v2209_v46  ;;  %v8189_v16 = vsub.f32 %v8120_v60, %v2209_v46  ;;  %v5338_v57 = vor.u32 %v6476_v20, %v5337_v19  ;;  %v5339_v60 = vld [vmem:[%s7743_s27 + $0xa0] sm:$0xf0]  ;;  %v5411_v46 = vld [vmem:[%s7743_s27 + $0x1a8] sm:$0xf0]  ;;  %v5393_v20 = vld [vmem:[%s7743_s27 + $0x148] sm:$0xf]  ;;  %2739 = vmatpush.bf16.msrb.mxu1 %v5538_v15 }
 0x437   : > { %v5342_v24 = vor.u32 %v6474_v23, %v5339_v60  ;;  %v5394_v22 = vor.u32 %v6489_v21, %v5393_v20  ;;  %v6521_v23 = vld [vmem:[%s7743_s27 + $0x364] sm:$0xf0]  ;;  %v6487_v60 = vld [vmem:[%s7743_s27 + $0x14c] sm:$0xf] }
 0x438   : > { %v2216_v7 = vmul.f32 %v8186_v6, %v8186_v6  ;;  %v2217_v17 = vmul.f32 %v8189_v16, %v8189_v16  ;;  %2673 = vmatpush.bf16.msra.mxu0 %v5338_v57  ;;  %v5521_v57 = vld [vmem:[%s7743_s27 + $0x348] sm:$0xf]  ;;  %v5398_v25 = vor.u32 %v6487_v60, %v5395_v4  ;;  %v6503_v20 = vld [vmem:[%s7743_s27 + $0x24c] sm:$0xf] }
 0x439   : > { %2701 = vmatpush.bf16.msra.mxu2 %v5342_v24  ;;  %v5522_v24 = vor.u32 %v6521_v23, %v5521_v57  ;;  %v5459_v21 = vld [vmem:[%s7743_s27 + $0x268] sm:$0xf0]  ;;  %v5313_v23 = vld [vmem:[%s7743_s27 + $0x8] sm:$0xf] }
 0x43a   : > { %v2221_v18 = vadd.f32 %v2217_v17, %v2216_v7  ;;  %v6523_v7 = vld [vmem:[%s7743_s27 + $0x38c] sm:$0xf]  ;;  %v6469_v60 = vld [vmem:[%s7743_s27 + $0x24] sm:$0xf0] }
 0x43b   : > { %v5539_v17 = vld [vmem:[%s7743_s27 + $0x3a8] sm:$0xf0]  ;;  %2740 = vmatpush.bf16.msrb.mxu1 %v5522_v24  ;;  %v5441_v4 = vld [vmem:[%s7743_s27 + $0x208] sm:$0xf]  ;;  %v5314_v24 = vor.u32 %v6469_v60, %v5313_v23  ;;  %v5785_v23 = vld [vmem:[%s7743_s27 + $0x390] sm:$0xf] }
 0x43c   : > { %2222 = vadd.xlane.f32.xlu2 %v2221_v18  ;;  %2674 = vmatpush.bf16.msra.mxu0 %v5322_v31  ;;  %v5414_v18 = vor.u32 %v6491_v44, %v5411_v46  ;;  %v5542_v19 = vor.u32 %v6523_v7, %v5539_v17  ;;  %v5505_v31 = vld [vmem:[%s7743_s27 + $0x308] sm:$0xf]  ;;  %v6471_v7 = vld [vmem:[%s7743_s27 + $0x4c] sm:$0xf]  ;;  %v6652_v60 = vld [vmem:[%s7743_s27 + $0x3ac] sm:$0xf0] }
 0x43d   : > { %2702 = vmatpush.bf16.msra.mxu2 %v5326_v36  ;;  %v5506_v36 = vor.u32 %v6517_v33, %v5505_v31  ;;  %v6505_v46 = vld [vmem:[%s7743_s27 + $0x264] sm:$0xf0]  ;;  %v5331_v17 = vld [vmem:[%s7743_s27 + $0x68] sm:$0xf0] }
 0x43e   : > { %2767 = vmatpush.bf16.msrb.mxu3 %v5542_v19  ;;  %v5334_v19 = vor.u32 %v6471_v7, %v5331_v17  ;;  %v5443_v31 = vld [vmem:[%s7743_s27 + $0x228] sm:$0xf0] }
 0x43f   : > { %2741 = vmatpush.bf16.msrb.mxu1 %v5506_v36 }
 0x440   : > { %2675 = vmatpush.bf16.msra.mxu0 %v5306_v41  ;;  %v5489_v41 = vld [vmem:[%s7743_s27 + $0x2c8] sm:$0xf] }
 0x441   : > { %2703 = vmatpush.bf16.msra.mxu2 %v5310_v48  ;;  %v5490_v48 = vor.u32 %v6513_v43, %v5489_v41  ;;  %v2252_v43 = vld [vmem:[%s8945_s12] sm:$0x3] }
 0x442   : > { %2768 = vmatpush.bf16.msrb.mxu3 %v5526_v28  ;;  %v2255_v50 = vperm.slane %v2252_v43, 1 }
 0x443   : > { %2742 = vmatpush.bf16.msrb.mxu1 %v5490_v48 }
 0x444   : > { %2724 = vmatpush.bf16.msrb.mxu0 %v5426_v59  ;;  %v5346_v59 = vor.u32 %v6477_v54, %v5345_v53 }
 0x445   : > { %2752 = vmatpush.bf16.msrb.mxu2 %v5430_v8  ;;  %v5350_v8 = vor.u32 %v6475_v63, %v5347_v3 }
 0x446   : > { %2769 = vmatpush.bf16.msrb.mxu3 %v5510_v40 }
 0x447   : > { %2743 = vmatpush.bf16.msrb.mxu1 %v5474_v5 }
 0x448   : > { %2725 = vmatpush.bf16.msrb.mxu0 %v5410_v12  ;;  %v5329_v12 = vld [vmem:[%s7743_s27 + $0x48] sm:$0xf] }
 0x449   : > { %2753 = vmatpush.bf16.msrb.mxu2 %v5414_v18  ;;  %v5330_v15 = vor.u32 %v6473_v14, %v5329_v12  ;;  %v5458_v18 = vor.u32 %v6505_v46, %v5457_v1  ;;  %v6622_v12 = vld [vmem:[%s7743_s27 + $0x1d4] sm:$0xf] }
 0x44a   : > { %2770 = vmatpush.bf16.msrb.mxu3 %v5494_v52  ;;  %v5803_v46 = vld [vmem:[%s7743_s27 + $0x3f0] sm:$0xf0] }
 0x44b   : > { %2744 = vmatpush.bf16.msrb.mxu1 %v5458_v18 }
 0x44c   : > { %2726 = vmatpush.bf16.msrb.mxu0 %v5394_v22  ;;  %v5462_v22 = vor.u32 %v6503_v20, %v5459_v21  ;;  %v5657_v20 = vld [vmem:[%s7743_s27 + $0x190] sm:$0xf] }
 0x44d   : > { %2754 = vmatpush.bf16.msrb.mxu2 %v5398_v25  ;;  %v6501_v25 = vld [vmem:[%s7743_s27 + $0x224] sm:$0xf0]  ;;  %v6620_v21 = vld [vmem:[%s7743_s27 + $0x1ac] sm:$0xf0] }
 0x44e   : > { %2771 = vmatpush.bf16.msrb.mxu3 %v5478_v10  ;;  %v5442_v28 = vor.u32 %v6501_v25, %v5441_v4  ;;  %v5801_v10 = vld [vmem:[%s7743_s27 + $0x3d0] sm:$0xf]  ;;  %v6618_v4 = vld [vmem:[%s7743_s27 + $0x194] sm:$0xf]  ;;  %v5658_v27 = vor.u32 %v6620_v21, %v5657_v20 }
 0x44f   : > { %v6650_v25 = vld [vmem:[%s7743_s27 + $0x394] sm:$0xf] }
 0x450   : > { %2727 = vmatpush.bf16.msrb.mxu0 %v5378_v32  ;;  %v5446_v32 = vor.u32 %v6499_v30, %v5443_v31  ;;  %2745 = vmatpush.bf16.msrb.mxu1 %v5442_v28  ;;  %v5786_v28 = vor.u32 %v6652_v60, %v5785_v23  ;;  %v6616_v30 = vld [vmem:[%s7743_s27 + $0x16c] sm:$0xf0]  ;;  %v5723_v20 = vld [vmem:[%s7743_s27 + $0x2b0] sm:$0xf0] }
 0x451   : > { %2755 = vmatpush.bf16.msrb.mxu2 %v5382_v37  ;;  %v6600_v23 = vld [vmem:[%s7743_s27 + $0x6c] sm:$0xf0] }
 0x452   : > { %2772 = vmatpush.bf16.msrb.mxu3 %v5462_v22 }
 0x454   : > { %2728 = vmatpush.bf16.msrb.mxu0 %v5362_v42 }
 0x455   : > { %2756 = vmatpush.bf16.msrb.mxu2 %v5366_v49  ;;  %v2254_v49 = vperm.slane %v2252_v43, 0  ;;  %v5753_v43 = vld [vmem:[%s7743_s27 + $0x310] sm:$0xf] }
 0x456   : > { %2773 = vmatpush.bf16.msrb.mxu3 %v5446_v32  ;;  %v5790_v32 = vor.u32 %v6650_v25, %v5787_v26  ;;  %v6632_v25 = vld [vmem:[%s7743_s27 + $0x26c] sm:$0xf0]  ;;  %v6598_v26 = vld [vmem:[%s7743_s27 + $0x54] sm:$0xf] }
 0x458   : > { %2729 = vmatpush.bf16.msrb.mxu0 %v5346_v59  ;;  %v2265_v59 = vperm.slane %v2262_v51, 1 }
 0x459   : > { %2757 = vmatpush.bf16.msrb.mxu2 %v5350_v8 }
 0x45c   : > { %2730 = vmatpush.bf16.msrb.mxu0 %v5330_v15  ;;  %v6654_v15 = vld [vmem:[%s7743_s27 + $0x3d4] sm:$0xf] }
 0x45d   : > { %2758 = vmatpush.bf16.msrb.mxu2 %v5334_v19  ;;  %v5806_v22 = vor.u32 %v6654_v15, %v5803_v46  ;;  %v6636_v15 = vld [vmem:[%s7743_s27 + $0x2ac] sm:$0xf0]  ;;  %v6602_v46 = vld [vmem:[%s7743_s27 + $0x94] sm:$0xf] }
 0x460   : > { %2731 = vmatpush.bf16.msrb.mxu0 %v5314_v24  ;;  %v5659_v24 = vld [vmem:[%s7743_s27 + $0x1b0] sm:$0xf0] }
 0x461   : > { %2759 = vmatpush.bf16.msrb.mxu2 %v5318_v29  ;;  %v5641_v29 = vld [vmem:[%s7743_s27 + $0x150] sm:$0xf]  ;;  %v5662_v31 = vor.u32 %v6618_v4, %v5659_v24 }
 0x462   : > { %v5705_v24 = vld [vmem:[%s7743_s27 + $0x250] sm:$0xf] }
 0x4a7   : > { %v2220_v11 = vpop.xlane.xlu1 %2219 }
 0x4a8   : > { %v2224_v44 = vmul.f32 %v2220_v11, %v8166_v55  ;;  %v6656_v11 = vld [vmem:[%s7743_s27 + $0x3ec] sm:$0xf0] }
 0x4a9   : > { %v5802_v19 = vor.u32 %v6656_v11, %v5801_v10  ;;  %v6604_v10 = vld [vmem:[%s7743_s27 + $0xac] sm:$0xf0] }
 0x4aa   : > { %v2226_v57 = vadd.f32 1e-05, %v2224_v44 }
 0x4ac   : > { %6877 = vrsqrt.f32 %v2226_v57  ;;  %vm2234_vm4 = vweird.f32 %v2226_v57 }
 0x4af   : > { %v2223_v33 = vpop.xlane.xlu2 %2222 }
 0x4b0   : > { %v2225_v34 = vmul.f32 %v2223_v33, %v8166_v55  ;;  %v5769_v33 = vld [vmem:[%s7743_s27 + $0x350] sm:$0xf] }
 0x4b2   : > { %v6878_v35 = vpop.eup %6877  ;;  %v2227_v36 = vadd.f32 1e-05, %v2225_v34  ;;  %v6648_v34 = vld [vmem:[%s7743_s27 + $0x36c] sm:$0xf0] }
 0x4b3   : > { %v2229_v37 = vmul.f32 %v6878_v35, %v2226_v57  ;;  %vm2235_vm3 = vweird.f32 %v6878_v35 }
 0x4b4   : > { %6879 = vrsqrt.f32 %v2227_v36  ;;  %vm2236_vm5 = vmor %vm2234_vm4, %vm2235_vm3  ;;  %vm2244_vm7 = vweird.f32 %v2227_v36 }
 0x4b5   : > { %v2230_v38 = vmul.f32 %v6878_v35, %v2229_v37  ;;  %v6646_v37 = vld [vmem:[%s7743_s27 + $0x354] sm:$0xf] }
 0x4b7   : > { %v2231_v39 = vmul.f32 0.5, %v2230_v38  ;;  %v5771_v38 = vld [vmem:[%s7743_s27 + $0x370] sm:$0xf0] }
 0x4b9   : > { %v2232_v40 = vsub.f32 1.5, %v2231_v39  ;;  %v5642_v39 = vor.u32 %v6616_v30, %v5641_v29  ;;  %v5707_v29 = vld [vmem:[%s7743_s27 + $0x270] sm:$0xf0]  ;;  %v5561_v30 = vld [vmem:[%s7743_s27 + $0x10] sm:$0xf] }
 0x4ba   : > { %v6880_v58 = vpop.eup %6879 }
 0x4bb   : > { %v2233_v62 = vmul.f32 %v6878_v35, %v2232_v40  ;;  %v2239_v41 = vmul.f32 %v6880_v58, %v2227_v36  ;;  %vm2245_vm6 = vweird.f32 %v6880_v58  ;;  %v5643_v36 = vld [vmem:[%s7743_s27 + $0x170] sm:$0xf0]  ;;  %v5770_v40 = vor.u32 %v6648_v34, %v5769_v33  ;;  %v6596_v33 = vld [vmem:[%s7743_s27 + $0x2c] sm:$0xf0] }
 0x4bc   : > { %vm2246_vm8 = vmor %vm2244_vm7, %vm2245_vm6  ;;  %v5689_v34 = vld [vmem:[%s7743_s27 + $0x210] sm:$0xf] }
 0x4bd   : > { %v2240_v42 = vmul.f32 %v6880_v58, %v2239_v41  ;;  %v2237_v45 = vsel %vm2236_vm5, %v6878_v35, %v2233_v62  ;;  %v6614_v35 = vld [vmem:[%s7743_s27 + $0x154] sm:$0xf]  ;;  %v6612_v62 = vld [vmem:[%s7743_s27 + $0x12c] sm:$0xf0] }
 0x4be   : > { %v2248_v52 = vmul.f32 %v2237_v45, %v8175_v2  ;;  %v2249_v53 = vmul.f32 %v2237_v45, %v8178_v13  ;;  %v5673_v13 = vld [vmem:[%s7743_s27 + $0x1d0] sm:$0xf]  ;;  %v5646_v41 = vor.u32 %v6614_v35, %v5643_v36 }
 0x4bf   : > { %v2241_v47 = vmul.f32 0.5, %v2240_v42  ;;  %v5674_v18 = vor.u32 %v6624_v0, %v5673_v13  ;;  %v5774_v42 = vor.u32 %v6646_v37, %v5771_v38  ;;  %v6644_v45 = vld [vmem:[%s7743_s27 + $0x32c] sm:$0xf0]  ;;  %v6594_v38 = vld [vmem:[%s7743_s27 + $0x14] sm:$0xf] }
 0x4c0   : > { %v2258_v63 = vmul.f32 %v2254_v49, %v2248_v52  ;;  %v2259_v3 = vmul.f32 %v2255_v50, %v2249_v53  ;;  %v5754_v52 = vor.u32 %v6644_v45, %v5753_v43  ;;  %v5609_v53 = vld [vmem:[%s7743_s27 + $0xd0] sm:$0xf]  ;;  %v6657_v43 = vld [vmem:[%s7743_s27 + $0x3f4] sm:$0xf0]  ;;  %v6623_v45 = vld [vmem:[%s7743_s27 + $0x1dc] sm:$0xf] }
 0x4c1   : > { %v2242_v48 = vsub.f32 1.5, %v2241_v47  ;;  %v6610_v47 = vld [vmem:[%s7743_s27 + $0x114] sm:$0xf]  ;;  %v5593_v0 = vld [vmem:[%s7743_s27 + $0x90] sm:$0xf] }
 0x4c2   : > { %v8298_v14 = vadd.f32 %v2264_v56, %v2258_v63  ;;  %v8300_v1 = vadd.f32 %v2265_v59, %v2259_v3  ;;  %v6640_v63 = vld [vmem:[%s7743_s27 + $0x2ec] sm:$0xf0]  ;;  %v6606_v3 = vld [vmem:[%s7743_s27 + $0xd4] sm:$0xf]  ;;  %v5594_v21 = vor.u32 %v6604_v10, %v5593_v0  ;;  %v5795_v0 = vld [vmem:[%s7743_s27 + $0x3b8] sm:$0xf0] }
 0x4c3   : > { %v2243_v54 = vmul.f32 %v6880_v58, %v2242_v48  ;;  %v5627_v48 = vld [vmem:[%s7743_s27 + $0x130] sm:$0xf0]  ;;  %v6628_v35 = vld [vmem:[%s7743_s27 + $0x22c] sm:$0xf0] }
 0x4c5   : > { %v2247_v61 = vsel %vm2246_vm8, %v6880_v58, %v2243_v54  ;;  %v5625_v58 = vld [vmem:[%s7743_s27 + $0x110] sm:$0xf] }
 0x4c6   : > { %v2250_v5 = vmul.f32 %v2247_v61, %v8186_v6  ;;  %v2251_v2 = vmul.f32 %v2247_v61, %v8189_v16  ;;  %v5675_v16 = vld [vmem:[%s7743_s27 + $0x1f0] sm:$0xf0]  ;;  %v5626_v51 = vor.u32 %v6612_v62, %v5625_v58  ;;  %v6608_v54 = vld [vmem:[%s7743_s27 + $0xec] sm:$0xf0]  ;;  %v5681_v62 = vld [vmem:[%s7743_s27 + $0x1d8] sm:$0xf] }
 0x4c7   : > { %v5678_v57 = vor.u32 %v6622_v12, %v5675_v16  ;;  %v5737_v61 = vld [vmem:[%s7743_s27 + $0x2d0] sm:$0xf]  ;;  %v5691_v58 = vld [vmem:[%s7743_s27 + $0x230] sm:$0xf0] }
 0x4c8   : > { %v2260_v8 = vmul.f32 %v2254_v49, %v2250_v5  ;;  %v2261_v9 = vmul.f32 %v2255_v50, %v2251_v2  ;;  %v6642_v49 = vld [vmem:[%s7743_s27 + $0x314] sm:$0xf]  ;;  %v5738_v13 = vor.u32 %v6640_v63, %v5737_v61  ;;  %v5721_v16 = vld [vmem:[%s7743_s27 + $0x290] sm:$0xf]  ;;  %v6621_v61 = vld [vmem:[%s7743_s27 + $0x1b4] sm:$0xf0] }
 0x4c9   : > { %v5755_v50 = vld [vmem:[%s7743_s27 + $0x330] sm:$0xf0] }
 0x4ca   : > { %v8302_v44 = vadd.f32 %v2264_v56, %v2260_v8  ;;  %v8304_v6 = vadd.f32 %v2265_v59, %v2261_v9  ;;  %v5630_v56 = vor.u32 %v6610_v47, %v5627_v48  ;;  %v5758_v59 = vor.u32 %v6642_v49, %v5755_v50  ;;  %v5611_v5 = vld [vmem:[%s7743_s27 + $0xf0] sm:$0xf0]  ;;  %v5683_v49 = vld [vmem:[%s7743_s27 + $0x1f8] sm:$0xf0] }
 0x4cb   : > { %v6638_v2 = vld [vmem:[%s7743_s27 + $0x2d4] sm:$0xf]  ;;  %v5610_v9 = vor.u32 %v6608_v54, %v5609_v53  ;;  %v5614_v11 = vor.u32 %v6606_v3, %v5611_v5  ;;  %v5562_v47 = vor.u32 %v6596_v33, %v5561_v30  ;;  %v5690_v48 = vor.u32 %v6628_v35, %v5689_v34  ;;  %v6655_v50 = vld [vmem:[%s7743_s27 + $0x3dc] sm:$0xf]  ;;  %v5793_v5 = vld [vmem:[%s7743_s27 + $0x398] sm:$0xf] }
 0x4cc   : > { %v8311_v7 = vpack.c.bf16 %v8302_v44, %v8298_v14  ;;  %v8315_v17 = vpack.c.bf16 %v8304_v6, %v8300_v1  ;;  %v5739_v8 = vld [vmem:[%s7743_s27 + $0x2f0] sm:$0xf0]  ;;  %v5686_v63 = vor.u32 %v6623_v45, %v5683_v49  ;;  %v5635_v30 = vld [vmem:[%s7743_s27 + $0x138] sm:$0xf0]  ;;  %v5617_v35 = vld [vmem:[%s7743_s27 + $0xd8] sm:$0xf] }
 0x4cd   : > { %v5742_v12 = vor.u32 %v6638_v2, %v5739_v8  ;;  %v6653_v2 = vld [vmem:[%s7743_s27 + $0x3b4] sm:$0xf0]  ;;  %v6619_v8 = vld [vmem:[%s7743_s27 + $0x19c] sm:$0xf] }
 0x4ce   : > { %2676 = vmatmul.bf16.vlgmr.msra.gmra.mxu0 %v8311_v7  ;;  %2690 = vmatmul.bf16.vlgmr.msra.gmra.mxu1 %v8315_v17 }
 0x4cf   : > { %2704 = vmatmul.bf16.vlgmr.msra.gmra.mxu2 %v8311_v7  ;;  %2718 = vmatmul.bf16.vlgmr.msra.gmra.mxu3 %v8315_v17 }
 0x4d0   : > { %3250 = vmatpush.bf16.msra.mxu0 %v5674_v18  ;;  %3264 = vmatpush.bf16.msra.mxu1 %v5802_v19  ;;  %v5595_v18 = vld [vmem:[%s7743_s27 + $0xb0] sm:$0xf0] }
 0x4d1   : > { %3278 = vmatpush.bf16.msra.mxu2 %v5678_v57  ;;  %3292 = vmatpush.bf16.msra.mxu3 %v5806_v22  ;;  %v6634_v19 = vld [vmem:[%s7743_s27 + $0x294] sm:$0xf]  ;;  %v5722_v57 = vor.u32 %v6636_v15, %v5721_v16  ;;  %v5577_v22 = vld [vmem:[%s7743_s27 + $0x50] sm:$0xf]  ;;  %v5598_v60 = vor.u32 %v6602_v46, %v5595_v18  ;;  %v6617_v16 = vld [vmem:[%s7743_s27 + $0x174] sm:$0xf0] }
 0x4d2   : > { %v5726_v4 = vor.u32 %v6634_v19, %v5723_v20  ;;  %v5777_v18 = vld [vmem:[%s7743_s27 + $0x358] sm:$0xf]  ;;  %v6615_v20 = vld [vmem:[%s7743_s27 + $0x15c] sm:$0xf] }
 0x4d3   : > { %v6649_v19 = vld [vmem:[%s7743_s27 + $0x374] sm:$0xf0] }
 0x4d4   : > { %3251 = vmatpush.bf16.msra.mxu0 %v5658_v27  ;;  %3265 = vmatpush.bf16.msra.mxu1 %v5786_v28  ;;  %v5579_v27 = vld [vmem:[%s7743_s27 + $0x70] sm:$0xf0] }
 0x4d5   : > { %3279 = vmatpush.bf16.msra.mxu2 %v5662_v31  ;;  %3293 = vmatpush.bf16.msra.mxu3 %v5790_v32  ;;  %v6630_v28 = vld [vmem:[%s7743_s27 + $0x254] sm:$0xf]  ;;  %v5578_v31 = vor.u32 %v6600_v23, %v5577_v22  ;;  %v5706_v32 = vor.u32 %v6632_v25, %v5705_v24  ;;  %v5582_v36 = vor.u32 %v6598_v26, %v5579_v27  ;;  %v5779_v22 = vld [vmem:[%s7743_s27 + $0x378] sm:$0xf0]  ;;  %v6613_v24 = vld [vmem:[%s7743_s27 + $0x134] sm:$0xf0] }
 0x4d6   : > { %v5710_v37 = vor.u32 %v6630_v28, %v5707_v29  ;;  %v5761_v27 = vld [vmem:[%s7743_s27 + $0x318] sm:$0xf]  ;;  %v6611_v29 = vld [vmem:[%s7743_s27 + $0x11c] sm:$0xf] }
 0x4d7   : > { %v6645_v28 = vld [vmem:[%s7743_s27 + $0x334] sm:$0xf0] }
 0x4d8   : > { %3252 = vmatpush.bf16.msra.mxu0 %v5642_v39  ;;  %3266 = vmatpush.bf16.msra.mxu1 %v5770_v40  ;;  %v5563_v39 = vld [vmem:[%s7743_s27 + $0x30] sm:$0xf0]  ;;  %v5762_v34 = vor.u32 %v6645_v28, %v5761_v27  ;;  %v6689_v27 = vld [vmem:[%s7752_s6 + $0x2f4] sm:$0xf0] }
 0x4d9   : > { %3280 = vmatpush.bf16.msra.mxu2 %v5646_v41  ;;  %3294 = vmatpush.bf16.msra.mxu3 %v5774_v42  ;;  %v6626_v40 = vld [vmem:[%s7743_s27 + $0x214] sm:$0xf]  ;;  %v6625_v41 = vld [vmem:[%s7743_s27 + $0x1f4] sm:$0xf0] }
 0x4da   : > { %v5809_v42 = vld [vmem:[%s7743_s27 + $0x3d8] sm:$0xf]  ;;  %v5694_v53 = vor.u32 %v6626_v40, %v5691_v58  ;;  %v5682_v54 = vor.u32 %v6625_v41, %v5681_v62  ;;  %v6607_v58 = vld [vmem:[%s7743_s27 + $0xdc] sm:$0xf] }
 0x4db   : > { %v6641_v40 = vld [vmem:[%s7743_s27 + $0x2f4] sm:$0xf0]  ;;  %v5619_v62 = vld [vmem:[%s7743_s27 + $0xf8] sm:$0xf0] }
 0x4dc   : > { %3253 = vmatpush.bf16.msra.mxu0 %v5626_v51  ;;  %3267 = vmatpush.bf16.msra.mxu1 %v5754_v52  ;;  %v5811_v51 = vld [vmem:[%s7743_s27 + $0x3f8] sm:$0xf0]  ;;  %v5566_v52 = vor.u32 %v6594_v38, %v5563_v39  ;;  %v5745_v39 = vld [vmem:[%s7743_s27 + $0x2d8] sm:$0xf]  ;;  %v5622_v49 = vor.u32 %v6607_v58, %v5619_v62 }
 0x4dd   : > { %3281 = vmatpush.bf16.msra.mxu2 %v5630_v56  ;;  %3295 = vmatpush.bf16.msra.mxu3 %v5758_v59  ;;  %v5810_v56 = vor.u32 %v6657_v43, %v5809_v42  ;;  %v5665_v59 = vld [vmem:[%s7743_s27 + $0x198] sm:$0xf]  ;;  %v5814_v3 = vor.u32 %v6655_v50, %v5811_v51  ;;  %v6639_v41 = vld [vmem:[%s7743_s27 + $0x2dc] sm:$0xf]  ;;  %v5746_v45 = vor.u32 %v6641_v40, %v5745_v39  ;;  %v5929_v40 = vld [vmem:[%s7752_s6 + $0x2e0] sm:$0xf] }
 0x4de   : > { %2732 = vmatmul.bf16.vlgmr.msrb.gmra.mxu0 %v8311_v7  ;;  %2746 = vmatmul.bf16.vlgmr.msrb.gmra.mxu1 %v8315_v17  ;;  %v5666_v10 = vor.u32 %v6621_v61, %v5665_v59  ;;  %v5747_v42 = vld [vmem:[%s7743_s27 + $0x2f8] sm:$0xf0]  ;;  %v5729_v51 = vld [vmem:[%s7743_s27 + $0x298] sm:$0xf] }
 0x4df   : > { %2760 = vmatmul.bf16.vlgmr.msrb.gmra.mxu2 %v8311_v7  ;;  %2774 = vmatmul.bf16.vlgmr.msrb.gmra.mxu3 %v8315_v17  ;;  %v5750_v50 = vor.u32 %v6639_v41, %v5747_v42  ;;  %v5731_v59 = vld [vmem:[%s7743_s27 + $0x2b8] sm:$0xf0]  ;;  %v6687_v58 = vld [vmem:[%s7752_s6 + $0x2e4] sm:$0xf0]  ;;  %v5849_v41 = vld [vmem:[%s7752_s6 + $0x240] sm:$0xf] }
 0x4e0   : > { %3254 = vmatpush.bf16.msra.mxu0 %v5610_v9  ;;  %3268 = vmatpush.bf16.msra.mxu1 %v5738_v13  ;;  %v5667_v9 = vld [vmem:[%s7743_s27 + $0x1b8] sm:$0xf0]  ;;  %v5930_v62 = vor.u32 %v6687_v58, %v5929_v40  ;;  %v6667_v42 = vld [vmem:[%s7752_s6 + $0x244] sm:$0xf0]  ;;  %v6668_v40 = vld [vmem:[%s7752_s6 + $0x254] sm:$0xf] }
 0x4e1   : > { %3282 = vmatpush.bf16.msra.mxu2 %v5614_v11  ;;  %3296 = vmatpush.bf16.msra.mxu3 %v5742_v12  ;;  %v6651_v13 = vld [vmem:[%s7743_s27 + $0x39c] sm:$0xf]  ;;  %v5794_v11 = vor.u32 %v6653_v2, %v5793_v5  ;;  %v5649_v12 = vld [vmem:[%s7743_s27 + $0x158] sm:$0xf]  ;;  %v5670_v15 = vor.u32 %v6619_v8, %v5667_v9  ;;  %v5859_v58 = vld [vmem:[%s7752_s6 + $0x258] sm:$0xf0] }
 0x4e2   : > { %v5798_v46 = vor.u32 %v6651_v13, %v5795_v0  ;;  %v5650_v23 = vor.u32 %v6617_v16, %v5649_v12  ;;  %v6601_v5 = vld [vmem:[%s7743_s27 + $0x74] sm:$0xf0]  ;;  %v6599_v0 = vld [vmem:[%s7743_s27 + $0x5c] sm:$0xf] }
 0x4e3   : > { %v5713_v9 = vld [vmem:[%s7743_s27 + $0x258] sm:$0xf]  ;;  %v5715_v12 = vld [vmem:[%s7743_s27 + $0x278] sm:$0xf0] }
 0x4e4   : > { %3255 = vmatpush.bf16.msra.mxu0 %v5594_v21  ;;  %3269 = vmatpush.bf16.msra.mxu1 %v5722_v57  ;;  %v5651_v21 = vld [vmem:[%s7743_s27 + $0x178] sm:$0xf0]  ;;  %v6633_v13 = vld [vmem:[%s7743_s27 + $0x274] sm:$0xf0] }
 0x4e5   : > { %3283 = vmatpush.bf16.msra.mxu2 %v5598_v60  ;;  %3297 = vmatpush.bf16.msra.mxu3 %v5726_v4  ;;  %v6647_v57 = vld [vmem:[%s7743_s27 + $0x35c] sm:$0xf]  ;;  %v5778_v60 = vor.u32 %v6649_v19, %v5777_v18  ;;  %v5633_v4 = vld [vmem:[%s7743_s27 + $0x118] sm:$0xf]  ;;  %v5654_v25 = vor.u32 %v6615_v20, %v5651_v21 }
 0x4e6   : > { %v5782_v26 = vor.u32 %v6647_v57, %v5779_v22  ;;  %v5634_v33 = vor.u32 %v6613_v24, %v5633_v4  ;;  %v6597_v18 = vld [vmem:[%s7743_s27 + $0x34] sm:$0xf0]  ;;  %v6595_v22 = vld [vmem:[%s7743_s27 + $0x1c] sm:$0xf]  ;;  %v5873_v24 = vld [vmem:[%s7752_s6 + $0x270] sm:$0xf] }
 0x4e7   : > { %v5697_v19 = vld [vmem:[%s7743_s27 + $0x218] sm:$0xf]  ;;  %v5699_v4 = vld [vmem:[%s7743_s27 + $0x238] sm:$0xf0] }
 0x4e8   : > { %3256 = vmatpush.bf16.msra.mxu0 %v5578_v31  ;;  %3270 = vmatpush.bf16.msra.mxu1 %v5706_v32  ;;  %v6643_v31 = vld [vmem:[%s7743_s27 + $0x31c] sm:$0xf]  ;;  %v6629_v57 = vld [vmem:[%s7743_s27 + $0x234] sm:$0xf0] }
 0x4e9   : > { %3284 = vmatpush.bf16.msra.mxu2 %v5582_v36  ;;  %3298 = vmatpush.bf16.msra.mxu3 %v5710_v37  ;;  %v5763_v32 = vld [vmem:[%s7743_s27 + $0x338] sm:$0xf0]  ;;  %v6609_v36 = vld [vmem:[%s7743_s27 + $0xf4] sm:$0xf0]  ;;  %v5638_v37 = vor.u32 %v6611_v29, %v5635_v30  ;;  %v5698_v29 = vor.u32 %v6629_v57, %v5697_v19 }
 0x4ea   : > { %v5766_v38 = vor.u32 %v6643_v31, %v5763_v32  ;;  %v5618_v43 = vor.u32 %v6609_v36, %v5617_v35  ;;  %v6671_v35 = vld [vmem:[%s7752_s6 + $0x264] sm:$0xf0] }
 0x4ec   : > { %3257 = vmatpush.bf16.msra.mxu0 %v5562_v47  ;;  %3271 = vmatpush.bf16.msra.mxu1 %v5690_v48  ;;  %v5601_v47 = vld [vmem:[%s7743_s27 + $0x98] sm:$0xf] }
 0x4ed   : > { %3285 = vmatpush.bf16.msra.mxu2 %v5566_v52  ;;  %3299 = vmatpush.bf16.msra.mxu3 %v5694_v53  ;;  %v6605_v48 = vld [vmem:[%s7743_s27 + $0xb4] sm:$0xf0]  ;;  %v6603_v53 = vld [vmem:[%s7743_s27 + $0x9c] sm:$0xf] }
 0x4ee   : > { %v6637_v52 = vld [vmem:[%s7743_s27 + $0x2b4] sm:$0xf0]  ;;  %v5602_v61 = vor.u32 %v6605_v48, %v5601_v47  ;;  %v5841_v47 = vld [vmem:[%s7752_s6 + $0x230] sm:$0xf]  ;;  %v6665_v48 = vld [vmem:[%s7752_s6 + $0x234] sm:$0xf0] }
 0x4ef   : > { %3258 = vmatmul.bf16.vlgmr.msra.gmra.mxu0 %v8311_v7  ;;  %3272 = vmatmul.bf16.vlgmr.msra.gmra.mxu1 %v8315_v17 }
 0x4f0   : > { %3306 = vmatpush.bf16.msrb.mxu0 %v5682_v54  ;;  %3320 = vmatpush.bf16.msrb.mxu1 %v5810_v56  ;;  %v5603_v54 = vld [vmem:[%s7743_s27 + $0xb8] sm:$0xf0] }
 0x4f1   : > { %3334 = vmatpush.bf16.msrb.mxu2 %v5686_v63  ;;  %3348 = vmatpush.bf16.msrb.mxu3 %v5814_v3  ;;  %v6635_v56 = vld [vmem:[%s7743_s27 + $0x29c] sm:$0xf]  ;;  %v5730_v63 = vor.u32 %v6637_v52, %v5729_v51  ;;  %v5585_v3 = vld [vmem:[%s7743_s27 + $0x58] sm:$0xf]  ;;  %v5606_v2 = vor.u32 %v6603_v53, %v5603_v54  ;;  %v5833_v53 = vld [vmem:[%s7752_s6 + $0x220] sm:$0xf] }
 0x4f2   : > { %3286 = vmatmul.bf16.vlgmr.msra.gmra.mxu2 %v8311_v7  ;;  %3300 = vmatmul.bf16.vlgmr.msra.gmra.mxu3 %v8315_v17  ;;  %v5734_v8 = vor.u32 %v6635_v56, %v5731_v59  ;;  %v5586_v16 = vor.u32 %v6601_v5, %v5585_v3  ;;  %v6683_v51 = vld [vmem:[%s7752_s6 + $0x2c4] sm:$0xf0]  ;;  %v5905_v59 = vld [vmem:[%s7752_s6 + $0x2b0] sm:$0xf]  ;;  %v6661_v5 = vld [vmem:[%s7752_s6 + $0x214] sm:$0xf0] }
 0x4f3   : > { %v6663_v54 = vld [vmem:[%s7752_s6 + $0x224] sm:$0xf0]  ;;  %v5825_v3 = vld [vmem:[%s7752_s6 + $0x210] sm:$0xf] }
 0x4f4   : > { %3307 = vmatpush.bf16.msrb.mxu0 %v5666_v10  ;;  %3321 = vmatpush.bf16.msrb.mxu1 %v5794_v11  ;;  %v5587_v10 = vld [vmem:[%s7743_s27 + $0x78] sm:$0xf0]  ;;  %v5834_v56 = vor.u32 %v6663_v54, %v5833_v53  ;;  %v6666_v53 = vld [vmem:[%s7752_s6 + $0x244] sm:$0xf] }
 0x4f5   : > { %3335 = vmatpush.bf16.msrb.mxu2 %v5670_v15  ;;  %3349 = vmatpush.bf16.msrb.mxu3 %v5798_v46  ;;  %v6631_v11 = vld [vmem:[%s7743_s27 + $0x25c] sm:$0xf]  ;;  %v5714_v15 = vor.u32 %v6633_v13, %v5713_v9  ;;  %v5569_v46 = vld [vmem:[%s7743_s27 + $0x18] sm:$0xf]  ;;  %v5590_v20 = vor.u32 %v6599_v0, %v5587_v10  ;;  %v5817_v0 = vld [vmem:[%s7752_s6 + $0x200] sm:$0xf] }
 0x4f6   : > { %v5718_v21 = vor.u32 %v6631_v11, %v5715_v12  ;;  %v5570_v28 = vor.u32 %v6597_v18, %v5569_v46  ;;  %v6679_v9 = vld [vmem:[%s7752_s6 + $0x2a4] sm:$0xf0]  ;;  %v6001_v11 = vld [vmem:[%s7752_s6 + $0x370] sm:$0xf]  ;;  %v5875_v46 = vld [vmem:[%s7752_s6 + $0x278] sm:$0xf0] }
 0x4f7   : > { %v6659_v10 = vld [vmem:[%s7752_s6 + $0x204] sm:$0xf0]  ;;  %v5851_v54 = vld [vmem:[%s7752_s6 + $0x248] sm:$0xf0] }
 0x4f8   : > { %3308 = vmatpush.bf16.msrb.mxu0 %v5650_v23  ;;  %3322 = vmatpush.bf16.msrb.mxu1 %v5778_v60  ;;  %v5571_v23 = vld [vmem:[%s7743_s27 + $0x38] sm:$0xf0]  ;;  %v5818_v12 = vor.u32 %v6659_v10, %v5817_v0  ;;  %v6697_v0 = vld [vmem:[%s7752_s6 + $0x334] sm:$0xf0] }
 0x4f9   : > { %3336 = vmatpush.bf16.msrb.mxu2 %v5654_v25  ;;  %3350 = vmatpush.bf16.msrb.mxu3 %v5782_v26  ;;  %v6627_v60 = vld [vmem:[%s7743_s27 + $0x21c] sm:$0xf]  ;;  %v6673_v25 = vld [vmem:[%s7752_s6 + $0x274] sm:$0xf0]  ;;  %v5937_v26 = vld [vmem:[%s7752_s6 + $0x2f0] sm:$0xf]  ;;  %v5574_v30 = vor.u32 %v6595_v22, %v5571_v23 }
 0x4fa   : > { %v5702_v31 = vor.u32 %v6627_v60, %v5699_v4  ;;  %v5874_v32 = vor.u32 %v6673_v25, %v5873_v24  ;;  %v5993_v22 = vld [vmem:[%s7752_s6 + $0x360] sm:$0xf]  ;;  %v6703_v23 = vld [vmem:[%s7752_s6 + $0x364] sm:$0xf0]  ;;  %v8490_v60 = vld [vmem:[%s7749_s24] sm:$0xf] }
 0x4fb   : > { %v5994_v4 = vor.u32 %v6703_v23, %v5993_v22  ;;  %v6670_v24 = vld [vmem:[%s7752_s6 + $0x264] sm:$0xf]  ;;  %v5867_v25 = vld [vmem:[%s7752_s6 + $0x268] sm:$0xf0] }
 0x4fc   : > { %3309 = vmatpush.bf16.msrb.mxu0 %v5634_v33  ;;  %3323 = vmatpush.bf16.msrb.mxu1 %v5762_v34  ;;  %v5938_v33 = vor.u32 %v6689_v27, %v5937_v26  ;;  %v5865_v34 = vld [vmem:[%s7752_s6 + $0x260] sm:$0xf]  ;;  %v5870_v26 = vor.u32 %v6670_v24, %v5867_v25 }
 0x4fd   : > { %3337 = vmatpush.bf16.msrb.mxu2 %v5638_v37  ;;  %3351 = vmatpush.bf16.msrb.mxu3 %v5766_v38  ;;  %v5866_v36 = vor.u32 %v6671_v35, %v5865_v34  ;;  %v5857_v37 = vld [vmem:[%s7752_s6 + $0x250] sm:$0xf]  ;;  %v6669_v38 = vld [vmem:[%s7752_s6 + $0x254] sm:$0xf0]  ;;  %v5881_v27 = vld [vmem:[%s7752_s6 + $0x280] sm:$0xf] }
 0x4fe   : > { %v5858_v39 = vor.u32 %v6669_v38, %v5857_v37  ;;  %v6701_v37 = vld [vmem:[%s7752_s6 + $0x354] sm:$0xf0]  ;;  %v2340_v38 = vperm.slane %v8490_v60, 0  ;;  %v5961_v25 = vld [vmem:[%s7752_s6 + $0x320] sm:$0xf] }
 0x500   : > { %3310 = vmatpush.bf16.msrb.mxu0 %v5618_v43  ;;  %3324 = vmatpush.bf16.msrb.mxu1 %v5746_v45  ;;  %v5850_v43 = vor.u32 %v6667_v42, %v5849_v41  ;;  %v5921_v45 = vld [vmem:[%s7752_s6 + $0x2d0] sm:$0xf]  ;;  %v6057_v41 = vld [vmem:[%s7752_s6 + $0x3e0] sm:$0xf]  ;;  %v6719_v42 = vld [vmem:[%s7752_s6 + $0x3e4] sm:$0xf0] }
 0x501   : > { %3338 = vmatpush.bf16.msrb.mxu2 %v5622_v49  ;;  %3352 = vmatpush.bf16.msrb.mxu3 %v5750_v50  ;;  %v5842_v49 = vor.u32 %v6665_v48, %v5841_v47  ;;  %v5913_v50 = vld [vmem:[%s7752_s6 + $0x2c0] sm:$0xf] }
 0x502   : > { %v5914_v52 = vor.u32 %v6683_v51, %v5913_v50  ;;  %v6699_v50 = vld [vmem:[%s7752_s6 + $0x344] sm:$0xf0] }
 0x504   : > { %3311 = vmatpush.bf16.msrb.mxu0 %v5602_v61  ;;  %3325 = vmatpush.bf16.msrb.mxu1 %v5730_v63  ;;  %v6681_v61 = vld [vmem:[%s7752_s6 + $0x2b4] sm:$0xf0] }
 0x505   : > { %3339 = vmatpush.bf16.msrb.mxu2 %v5606_v2  ;;  %3353 = vmatpush.bf16.msrb.mxu3 %v5734_v8  ;;  %v5906_v63 = vor.u32 %v6681_v61, %v5905_v59  ;;  %v5826_v2 = vor.u32 %v6661_v5, %v5825_v3  ;;  %v5897_v8 = vld [vmem:[%s7752_s6 + $0x2a0] sm:$0xf]  ;;  %v6049_v59 = vld [vmem:[%s7752_s6 + $0x3d0] sm:$0xf]  ;;  %v6717_v61 = vld [vmem:[%s7752_s6 + $0x3d4] sm:$0xf0] }
 0x506   : > { %v5898_v13 = vor.u32 %v6679_v9, %v5897_v8  ;;  %v6050_v3 = vor.u32 %v6717_v61, %v6049_v59  ;;  %v6684_v5 = vld [vmem:[%s7752_s6 + $0x2d4] sm:$0xf]  ;;  %v2341_v8 = vperm.slane %v8490_v60, 1 }
 0x508   : > { %3312 = vmatpush.bf16.msrb.mxu0 %v5586_v16  ;;  %3326 = vmatpush.bf16.msrb.mxu1 %v5714_v15  ;;  %v6705_v16 = vld [vmem:[%s7752_s6 + $0x374] sm:$0xf0]  ;;  %v6672_v15 = vld [vmem:[%s7752_s6 + $0x274] sm:$0xf] }
 0x509   : > { %3340 = vmatpush.bf16.msrb.mxu2 %v5590_v20  ;;  %3354 = vmatpush.bf16.msrb.mxu3 %v5718_v21  ;;  %v6002_v18 = vor.u32 %v6705_v16, %v6001_v11  ;;  %v5878_v19 = vor.u32 %v6672_v15, %v5875_v46  ;;  %v5889_v20 = vld [vmem:[%s7752_s6 + $0x290] sm:$0xf]  ;;  %v6677_v21 = vld [vmem:[%s7752_s6 + $0x294] sm:$0xf0]  ;;  %v6664_v11 = vld [vmem:[%s7752_s6 + $0x234] sm:$0xf] }
 0x50a   : > { %v5890_v57 = vor.u32 %v6677_v21, %v5889_v20  ;;  %v6041_v15 = vld [vmem:[%s7752_s6 + $0x3c0] sm:$0xf]  ;;  %v6715_v46 = vld [vmem:[%s7752_s6 + $0x3c4] sm:$0xf0]  ;;  %v6682_v21 = vld [vmem:[%s7752_s6 + $0x2c4] sm:$0xf] }
 0x50b   : > { %v6042_v20 = vor.u32 %v6715_v46, %v6041_v15  ;;  %v6709_v15 = vld [vmem:[%s7752_s6 + $0x394] sm:$0xf0] }
 0x50c   : > { %3313 = vmatpush.bf16.msrb.mxu0 %v5570_v28  ;;  %3327 = vmatpush.bf16.msrb.mxu1 %v5698_v29  ;;  %v6675_v28 = vld [vmem:[%s7752_s6 + $0x284] sm:$0xf0]  ;;  %v6065_v29 = vld [vmem:[%s7752_s6 + $0x3f0] sm:$0xf] }
 0x50d   : > { %3341 = vmatpush.bf16.msrb.mxu2 %v5574_v30  ;;  %3355 = vmatpush.bf16.msrb.mxu3 %v5702_v31  ;;  %v5882_v30 = vor.u32 %v6675_v28, %v5881_v27  ;;  %v6721_v31 = vld [vmem:[%s7752_s6 + $0x3f4] sm:$0xf0] }
 0x50e   : > { %v6066_v34 = vor.u32 %v6721_v31, %v6065_v29  ;;  %v6662_v29 = vld [vmem:[%s7752_s6 + $0x224] sm:$0xf] }
 0x50f   : > { %3314 = vmatmul.bf16.vlgmr.msrb.gmra.mxu0 %v8311_v7  ;;  %3328 = vmatmul.bf16.vlgmr.msrb.gmra.mxu1 %v8315_v17 }
 0x510   : > { %3758 = vmatpush.bf16.msra.mxu0 %v5874_v32  ;;  %3772 = vmatpush.bf16.msra.mxu1 %v5938_v33  ;;  %v6688_v32 = vld [vmem:[%s7752_s6 + $0x2f4] sm:$0xf]  ;;  %v5939_v33 = vld [vmem:[%s7752_s6 + $0x2f8] sm:$0xf0] }
 0x511   : > { %3342 = vmatmul.bf16.vlgmr.msrb.gmra.mxu2 %v8311_v7  ;;  %3356 = vmatmul.bf16.vlgmr.msrb.gmra.mxu3 %v8315_v17  ;;  %v6685_v7 = vld [vmem:[%s7752_s6 + $0x2d4] sm:$0xf0]  ;;  %v5942_v35 = vor.u32 %v6688_v32, %v5939_v33  ;;  %v6033_v33 = vld [vmem:[%s7752_s6 + $0x3b0] sm:$0xf] }
 0x512   : > { %v5922_v17 = vor.u32 %v6685_v7, %v5921_v45  ;;  %3786 = vmatpush.bf16.msra.mxu2 %v6002_v18  ;;  %3800 = vmatpush.bf16.msra.mxu3 %v6066_v34  ;;  %v6686_v45 = vld [vmem:[%s7752_s6 + $0x2e4] sm:$0xf]  ;;  %v5931_v7 = vld [vmem:[%s7752_s6 + $0x2e8] sm:$0xf0]  ;;  %v6713_v34 = vld [vmem:[%s7752_s6 + $0x3b4] sm:$0xf0] }
 0x513   : > { %v5934_v48 = vor.u32 %v6686_v45, %v5931_v7  ;;  %v6660_v45 = vld [vmem:[%s7752_s6 + $0x214] sm:$0xf]  ;;  %v5827_v7 = vld [vmem:[%s7752_s6 + $0x218] sm:$0xf0] }
 0x514   : > { %3759 = vmatpush.bf16.msra.mxu0 %v5866_v36  ;;  %3773 = vmatpush.bf16.msra.mxu1 %v5930_v62  ;;  %v5985_v36 = vld [vmem:[%s7752_s6 + $0x350] sm:$0xf]  ;;  %v5862_v62 = vor.u32 %v6668_v40, %v5859_v58 }
 0x515   : > { %v5953_v58 = vld [vmem:[%s7752_s6 + $0x310] sm:$0xf] }
 0x516   : > { %3787 = vmatpush.bf16.msra.mxu2 %v5994_v4 }
 0x518   : > { %3760 = vmatpush.bf16.msra.mxu0 %v5858_v39  ;;  %3774 = vmatpush.bf16.msra.mxu1 %v5922_v17  ;;  %v5986_v39 = vor.u32 %v6701_v37, %v5985_v36  ;;  %v6034_v36 = vor.u32 %v6713_v34, %v6033_v33  ;;  %v6680_v37 = vld [vmem:[%s7752_s6 + $0x2b4] sm:$0xf]  ;;  %v6674_v33 = vld [vmem:[%s7752_s6 + $0x284] sm:$0xf]  ;;  %v5883_v34 = vld [vmem:[%s7752_s6 + $0x288] sm:$0xf0] }
 0x51a   : > { %3788 = vmatpush.bf16.msra.mxu2 %v5986_v39  ;;  %v5907_v39 = vld [vmem:[%s7752_s6 + $0x2b8] sm:$0xf0] }
 0x51b   : > { %v5910_v40 = vor.u32 %v6680_v37, %v5907_v39  ;;  %v5886_v39 = vor.u32 %v6674_v33, %v5883_v34 }
 0x51c   : > { %3761 = vmatpush.bf16.msra.mxu0 %v5850_v43  ;;  %3775 = vmatpush.bf16.msra.mxu1 %v5914_v52  ;;  %v6058_v43 = vor.u32 %v6719_v42, %v6057_v41 }
 0x51e   : > { %3801 = vmatpush.bf16.msra.mxu3 %v6058_v43 }
 0x520   : > { %3762 = vmatpush.bf16.msra.mxu0 %v5842_v49  ;;  %3776 = vmatpush.bf16.msra.mxu1 %v5906_v63  ;;  %v5977_v49 = vld [vmem:[%s7752_s6 + $0x340] sm:$0xf] }
 0x521   : > { %v5978_v52 = vor.u32 %v6699_v50, %v5977_v49 }
 0x522   : > { %3802 = vmatpush.bf16.msra.mxu3 %v6050_v3  ;;  %v5945_v3 = vld [vmem:[%s7752_s6 + $0x300] sm:$0xf] }
 0x523   : > { %3789 = vmatpush.bf16.msra.mxu2 %v5978_v52 }
 0x524   : > { %3763 = vmatpush.bf16.msra.mxu0 %v5834_v56  ;;  %3777 = vmatpush.bf16.msra.mxu1 %v5898_v13  ;;  %v5854_v56 = vor.u32 %v6666_v53, %v5851_v54  ;;  %v5969_v13 = vld [vmem:[%s7752_s6 + $0x330] sm:$0xf]  ;;  %v6678_v53 = vld [vmem:[%s7752_s6 + $0x2a4] sm:$0xf]  ;;  %v5899_v54 = vld [vmem:[%s7752_s6 + $0x2a8] sm:$0xf0] }
 0x525   : > { %v5970_v10 = vor.u32 %v6697_v0, %v5969_v13  ;;  %v6658_v13 = vld [vmem:[%s7752_s6 + $0x204] sm:$0xf]  ;;  %v5819_v0 = vld [vmem:[%s7752_s6 + $0x208] sm:$0xf0] }
 0x526   : > { %3803 = vmatpush.bf16.msra.mxu3 %v6042_v20  ;;  %v6676_v20 = vld [vmem:[%s7752_s6 + $0x294] sm:$0xf] }
 0x527   : > { %3790 = vmatpush.bf16.msra.mxu2 %v5970_v10  ;;  %v6704_v10 = vld [vmem:[%s7752_s6 + $0x374] sm:$0xf] }
 0x528   : > { %3764 = vmatpush.bf16.msra.mxu0 %v5826_v2  ;;  %3778 = vmatpush.bf16.msra.mxu1 %v5890_v57  ;;  %v5923_v2 = vld [vmem:[%s7752_s6 + $0x2d8] sm:$0xf0]  ;;  %v5915_v57 = vld [vmem:[%s7752_s6 + $0x2c8] sm:$0xf0] }
 0x529   : > { %v5926_v9 = vor.u32 %v6684_v5, %v5923_v2  ;;  %v5918_v24 = vor.u32 %v6682_v21, %v5915_v57  ;;  %v6691_v5 = vld [vmem:[%s7752_s6 + $0x304] sm:$0xf0] }
 0x52a   : > { %3804 = vmatpush.bf16.msra.mxu3 %v6034_v36 }
 0x52c   : > { %3765 = vmatpush.bf16.msra.mxu0 %v5818_v12  ;;  %3779 = vmatpush.bf16.msra.mxu1 %v5882_v30  ;;  %v5843_v12 = vld [vmem:[%s7752_s6 + $0x238] sm:$0xf0]  ;;  %v5835_v30 = vld [vmem:[%s7752_s6 + $0x228] sm:$0xf0] }
 0x52d   : > { %v5846_v16 = vor.u32 %v6664_v11, %v5843_v12  ;;  %v5838_v32 = vor.u32 %v6662_v29, %v5835_v30  ;;  %v6003_v12 = vld [vmem:[%s7752_s6 + $0x378] sm:$0xf0]  ;;  %v6707_v29 = vld [vmem:[%s7752_s6 + $0x384] sm:$0xf0] }
 0x530   : > { %3814 = vmatpush.bf16.msrb.mxu0 %v5878_v19  ;;  %3828 = vmatpush.bf16.msrb.mxu1 %v5942_v35 }
 0x534   : > { %3815 = vmatpush.bf16.msrb.mxu0 %v5870_v26  ;;  %3829 = vmatpush.bf16.msrb.mxu1 %v5934_v48  ;;  %v6695_v26 = vld [vmem:[%s7752_s6 + $0x324] sm:$0xf0] }
 0x535   : > { %v5962_v28 = vor.u32 %v6695_v26, %v5961_v25  ;;  %v6711_v48 = vld [vmem:[%s7752_s6 + $0x3a4] sm:$0xf0]  ;;  %v5995_v25 = vld [vmem:[%s7752_s6 + $0x368] sm:$0xf0] }
 0x537   : > { %3791 = vmatpush.bf16.msra.mxu2 %v5962_v28  ;;  %v6009_v28 = vld [vmem:[%s7752_s6 + $0x380] sm:$0xf] }
 0x538   : > { %3816 = vmatpush.bf16.msrb.mxu0 %v5862_v62  ;;  %3830 = vmatpush.bf16.msrb.mxu1 %v5926_v9  ;;  %v6693_v62 = vld [vmem:[%s7752_s6 + $0x314] sm:$0xf0]  ;;  %v5946_v9 = vor.u32 %v6691_v5, %v5945_v3  ;;  %v8588_v5 = vld [vmem:[%s7749_s24 + $0x4] sm:$0xf]  ;;  %s8949_s24 = sld [smem:[#allocation35_spill]] }
 0x539   : > { %v5954_v43 = vor.u32 %v6693_v62, %v5953_v58  ;;  %v6067_v58 = vld [vmem:[%s7752_s6 + $0x3f8] sm:$0xf0] }
 0x53b   : > { %3792 = vmatpush.bf16.msra.mxu2 %v5954_v43  ;;  %v5987_v43 = vld [vmem:[%s7752_s6 + $0x358] sm:$0xf0] }
 0x53c   : > { %3817 = vmatpush.bf16.msrb.mxu0 %v5854_v56  ;;  %3831 = vmatpush.bf16.msrb.mxu1 %v5918_v24  ;;  %v6702_v24 = vld [vmem:[%s7752_s6 + $0x364] sm:$0xf] }
 0x53f   : > { %3793 = vmatpush.bf16.msra.mxu2 %v5946_v9  ;;  %v6696_v9 = vld [vmem:[%s7752_s6 + $0x334] sm:$0xf] }
 0x540   : > { %3818 = vmatpush.bf16.msrb.mxu0 %v5846_v16  ;;  %3832 = vmatpush.bf16.msrb.mxu1 %v5910_v40  ;;  %v6017_v16 = vld [vmem:[%s7752_s6 + $0x390] sm:$0xf]  ;;  %v6720_v40 = vld [vmem:[%s7752_s6 + $0x3f4] sm:$0xf] }
 0x544   : > { %3819 = vmatpush.bf16.msrb.mxu0 %v5838_v32  ;;  %v6010_v32 = vor.u32 %v6707_v29, %v6009_v28  ;;  %v6692_v29 = vld [vmem:[%s7752_s6 + $0x314] sm:$0xf] }
 0x54b   : > { %v2677_v17 = vpop.f32.mrf.mxu0  ;;  %v2691_v47 = vpop.f32.mrf.mxu1 }
 0x54c   : > { %v2678_v51 = vadd.f32 %v2677_v17, %v2340_v38  ;;  %v5830_v17 = vor.u32 %v6660_v45, %v5827_v7 }
 0x54e   : > { %v2692_v63 = vadd.f32 %v2691_v47, %v2678_v51  ;;  %v6025_v47 = vld [vmem:[%s7752_s6 + $0x3a0] sm:$0xf]  ;;  %3820 = vmatpush.bf16.msrb.mxu0 %v5830_v17 }
 0x54f   : > { %v6026_v52 = vor.u32 %v6711_v48, %v6025_v47  ;;  %v6718_v47 = vld [vmem:[%s7752_s6 + $0x3e4] sm:$0xf]  ;;  %v6059_v48 = vld [vmem:[%s7752_s6 + $0x3e8] sm:$0xf0] }
 0x550   : > { %v2780_v41 = vmax.f32 %v2692_v63, 0.0  ;;  %v5902_v63 = vor.u32 %v6678_v53, %v5899_v54 }
 0x551   : > { %3805 = vmatpush.bf16.msra.mxu3 %v6026_v52  ;;  %v5979_v52 = vld [vmem:[%s7752_s6 + $0x348] sm:$0xf0] }
 0x552   : > { %v2705_v18 = vpop.f32.mrf.mxu2  ;;  %v2719_v19 = vpop.f32.mrf.mxu3  ;;  %3833 = vmatpush.bf16.msrb.mxu1 %v5902_v63  ;;  %v6051_v63 = vld [vmem:[%s7752_s6 + $0x3d8] sm:$0xf0] }
 0x553   : > { %v2706_v22 = vadd.f32 %v2705_v18, %v2341_v8  ;;  %v2679_v23 = vpop.f32.mrf.mxu0  ;;  %v2693_v4 = vpop.f32.mrf.mxu1  ;;  %v6006_v18 = vor.u32 %v6704_v10, %v6003_v12  ;;  %v2922_v12 = vperm.slane %v8588_v5, 0 }
 0x554   : > { %v2680_v27 = vadd.f32 %v2679_v23, %v2340_v38  ;;  %v2342_v38 = vperm.slane %v8490_v60, 2  ;;  %v5891_v23 = vld [vmem:[%s7752_s6 + $0x298] sm:$0xf0] }
 0x555   : > { %v8532_v31 = vadd.f32 %v2719_v19, %v2706_v22  ;;  %v6018_v19 = vor.u32 %v6709_v15, %v6017_v16  ;;  %v2343_v22 = vperm.slane %v8490_v60, 3  ;;  %3842 = vmatpush.bf16.msrb.mxu2 %v6006_v18  ;;  %v6714_v16 = vld [vmem:[%s7752_s6 + $0x3c4] sm:$0xf]  ;;  %v6043_v15 = vld [vmem:[%s7752_s6 + $0x3c8] sm:$0xf0] }
 0x556   : > { %v2694_v35 = vadd.f32 %v2693_v4, %v2680_v27  ;;  %v5894_v4 = vor.u32 %v6676_v20, %v5891_v23  ;;  %v5998_v27 = vor.u32 %v6702_v24, %v5995_v25  ;;  %v6694_v20 = vld [vmem:[%s7752_s6 + $0x324] sm:$0xf]  ;;  %v6035_v24 = vld [vmem:[%s7752_s6 + $0x3b8] sm:$0xf0] }
 0x557   : > { %v2781_v21 = vmax.f32 %v8532_v31, 0.0  ;;  %3806 = vmatpush.bf16.msra.mxu3 %v6018_v19  ;;  %v6046_v19 = vor.u32 %v6714_v16, %v6043_v15 }
 0x558   : > { %v2784_v42 = vmax.f32 %v2694_v35, 0.0  ;;  %3834 = vmatpush.bf16.msrb.mxu1 %v5894_v4  ;;  %v6712_v4 = vld [vmem:[%s7752_s6 + $0x3b4] sm:$0xf] }
 0x559   : > { %3843 = vmatpush.bf16.msrb.mxu2 %v5998_v27  ;;  %v6038_v25 = vor.u32 %v6712_v4, %v6035_v24 }
 0x55a   : > { %v8545_v49 = vpack.c.bf16 %v2784_v42, %v2780_v41  ;;  %v2707_v50 = vpop.f32.mrf.mxu2  ;;  %v2721_v51 = vpop.f32.mrf.mxu3  ;;  %v6070_v41 = vor.u32 %v6720_v40, %v6067_v58  ;;  %v6700_v42 = vld [vmem:[%s7752_s6 + $0x354] sm:$0xf]  ;;  %v6129_v40 = vld [vmem:[%s7752_s6 + $0x70] sm:$0xf] }
 0x55b   : > { %v2708_v56 = vadd.f32 %v2707_v50, %v2341_v8  ;;  %v2733_v59 = vpop.f32.mrf.mxu0  ;;  %v2747_v61 = vpop.f32.mrf.mxu1  ;;  %v5822_v8 = vor.u32 %v6658_v13, %v5819_v0  ;;  %3807 = vmatpush.bf16.msra.mxu3 %v6010_v32  ;;  %v5990_v7 = vor.u32 %v6700_v42, %v5987_v43  ;;  %v6062_v50 = vor.u32 %v6718_v47, %v6059_v48  ;;  %v5971_v13 = vld [vmem:[%s7752_s6 + $0x338] sm:$0xf0]  ;;  %v6690_v42 = vld [vmem:[%s7752_s6 + $0x304] sm:$0xf]  ;;  %v5947_v43 = vld [vmem:[%s7752_s6 + $0x308] sm:$0xf0] }
 0x55c   : > { %v2734_v2 = vadd.f32 %v2733_v59, %v2342_v38  ;;  %3835 = vmatpush.bf16.msrb.mxu1 %v5886_v39 }
 0x55d   : > { %v2722_v11 = vadd.f32 %v2721_v51, %v2708_v56  ;;  %3821 = vmatpush.bf16.msrb.mxu0 %v5822_v8  ;;  %3844 = vmatpush.bf16.msrb.mxu2 %v5990_v7  ;;  %v6698_v51 = vld [vmem:[%s7752_s6 + $0x344] sm:$0xf]  ;;  %v5974_v8 = vor.u32 %v6696_v9, %v5971_v13  ;;  %v5950_v7 = vor.u32 %v6690_v42, %v5947_v43  ;;  %v6553_v42 = vld [vmem:[%s7752_s6 + $0xb4] sm:$0xf0]  ;;  %v6081_v43 = vld [vmem:[%s7752_s6 + $0x10] sm:$0xf] }
 0x55e   : > { %v2748_v46 = vadd.f32 %v2747_v61, %v2734_v2  ;;  %v5982_v53 = vor.u32 %v6698_v51, %v5979_v52  ;;  %v6716_v61 = vld [vmem:[%s7752_s6 + $0x3d4] sm:$0xf]  ;;  %v6121_v52 = vld [vmem:[%s7752_s6 + $0x60] sm:$0xf] }
 0x55f   : > { %v2785_v57 = vmax.f32 %v2722_v11, 0.0  ;;  %3856 = vmatpush.bf16.msrb.mxu3 %v6070_v41  ;;  %v6054_v2 = vor.u32 %v6716_v61, %v6051_v63  ;;  %v6545_v41 = vld [vmem:[%s7752_s6 + $0x74] sm:$0xf0] }
 0x560   : > { %v2782_v60 = vmax.f32 %v2748_v46, 0.0  ;;  %v6130_v48 = vor.u32 %v6545_v41, %v6129_v40  ;;  %v6161_v41 = vld [vmem:[%s7752_s6 + $0xb0] sm:$0xf] }
 0x561   : > { %v8567_v26 = vpack.c.bf16 %v2785_v57, %v2781_v21  ;;  %3845 = vmatpush.bf16.msrb.mxu2 %v5982_v53  ;;  %v5963_v21 = vld [vmem:[%s7752_s6 + $0x328] sm:$0xf0]  ;;  %v6543_v53 = vld [vmem:[%s7752_s6 + $0x64] sm:$0xf0] }
 0x562   : > { %v2761_v30 = vpop.f32.mrf.mxu2  ;;  %v2775_v31 = vpop.f32.mrf.mxu3  ;;  %v6122_v13 = vor.u32 %v6543_v53, %v6121_v52  ;;  %v6153_v52 = vld [vmem:[%s7752_s6 + $0xa0] sm:$0xf]  ;;  %v6551_v53 = vld [vmem:[%s7752_s6 + $0xa4] sm:$0xf0] }
 0x563   : > { %v2762_v35 = vadd.f32 %v2761_v30, %v2343_v22  ;;  %v2735_v36 = vpop.f32.mrf.mxu0  ;;  %v2749_v37 = vpop.f32.mrf.mxu1  ;;  %3857 = vmatpush.bf16.msrb.mxu3 %v6062_v50  ;;  %v5955_v30 = vld [vmem:[%s7752_s6 + $0x318] sm:$0xf0]  ;;  %v6708_v50 = vld [vmem:[%s7752_s6 + $0x394] sm:$0xf] }
 0x564   : > { %v2736_v62 = vadd.f32 %v2735_v36, %v2342_v38  ;;  %v5958_v33 = vor.u32 %v6692_v29, %v5955_v30  ;;  %v6710_v36 = vld [vmem:[%s7752_s6 + $0x3a4] sm:$0xf]  ;;  %v6537_v29 = vld [vmem:[%s7752_s6 + $0x34] sm:$0xf0] }
 0x565   : > { %v2776_v45 = vadd.f32 %v2775_v31, %v2762_v35  ;;  %3846 = vmatpush.bf16.msrb.mxu2 %v5974_v8  ;;  %v2923_v31 = vperm.slane %v8588_v5, 1  ;;  %v6113_v8 = vld [vmem:[%s7752_s6 + $0x50] sm:$0xf] }
 0x566   : > { %v2750_v17 = vadd.f32 %v2749_v37, %v2736_v62  ;;  %v6027_v37 = vld [vmem:[%s7752_s6 + $0x3a8] sm:$0xf0] }
 0x567   : > { %3858 = vmatpush.bf16.msrb.mxu3 %v6054_v2  ;;  %v2783_v46 = vmax.f32 %v2776_v45, 0.0  ;;  %v6030_v58 = vor.u32 %v6710_v36, %v6027_v37  ;;  %v6011_v2 = vld [vmem:[%s7752_s6 + $0x388] sm:$0xf0]  ;;  %v6555_v36 = vld [vmem:[%s7752_s6 + $0xc4] sm:$0xf0] }
 0x568   : > { %v2786_v38 = vmax.f32 %v2750_v17, 0.0  ;;  %v6089_v37 = vld [vmem:[%s7752_s6 + $0x20] sm:$0xf] }
 0x56a   : > { %v8583_v54 = vpack.c.bf16 %v2786_v38, %v2782_v60  ;;  %v2763_v56 = vpop.f32.mrf.mxu2  ;;  %v2777_v59 = vpop.f32.mrf.mxu3  ;;  %v6019_v60 = vld [vmem:[%s7752_s6 + $0x398] sm:$0xf0] }
 0x56b   : > { %v2764_v3 = vadd.f32 %v2763_v56, %v2343_v22  ;;  %v5966_v22 = vor.u32 %v6694_v20, %v5963_v21  ;;  %3859 = vmatpush.bf16.msrb.mxu3 %v6046_v19  ;;  %v6022_v56 = vor.u32 %v6708_v50, %v6019_v60  ;;  %v6185_v20 = vld [vmem:[%s7752_s6 + $0xe0] sm:$0xf]  ;;  %v6559_v21 = vld [vmem:[%s7752_s6 + $0xe4] sm:$0xf0]  ;;  %v6162_v50 = vor.u32 %v6553_v42, %v6161_v41 }
 0x56c   : > { %v3259_v10 = vpop.f32.mrf.mxu0  ;;  %v3273_v11 = vpop.f32.mrf.mxu1  ;;  %v6186_v4 = vor.u32 %v6559_v21, %v6185_v20  ;;  %v6575_v21 = vld [vmem:[%s7752_s6 + $0x164] sm:$0xf0] }
 0x56d   : > { %v2778_v0 = vadd.f32 %v2777_v59, %v2764_v3  ;;  %v3260_v23 = vadd.f32 %v3259_v10, %v2922_v12  ;;  %3847 = vmatpush.bf16.msrb.mxu2 %v5966_v22  ;;  %v6706_v3 = vld [vmem:[%s7752_s6 + $0x384] sm:$0xf]  ;;  %v6561_v10 = vld [vmem:[%s7752_s6 + $0xf4] sm:$0xf0]  ;;  %v6105_v22 = vld [vmem:[%s7752_s6 + $0x40] sm:$0xf] }
 0x56f   : > { %v2787_v18 = vmax.f32 %v2778_v0, 0.0  ;;  %v3274_v34 = vadd.f32 %v3273_v11, %v3260_v23  ;;  %3860 = vmatpush.bf16.msrb.mxu3 %v6038_v25  ;;  %v6193_v0 = vld [vmem:[%s7752_s6 + $0xf0] sm:$0xf]  ;;  %v6014_v11 = vor.u32 %v6706_v3, %v6011_v2  ;;  %v6539_v23 = vld [vmem:[%s7752_s6 + $0x44] sm:$0xf0] }
 0x570   : > { %v6106_v24 = vor.u32 %v6539_v23, %v6105_v22  ;;  %v6177_v25 = vld [vmem:[%s7752_s6 + $0xd0] sm:$0xf]  ;;  %v6544_v2 = vld [vmem:[%s7752_s6 + $0x74] sm:$0xf]  ;;  %v6542_v22 = vld [vmem:[%s7752_s6 + $0x64] sm:$0xf] }
 0x571   : > { %v8597_v57 = vpack.c.bf16 %v2787_v18, %v2783_v46  ;;  %3848 = vmatpush.bf16.msrb.mxu2 %v5958_v33  ;;  %v3362_v17 = vmax.f32 %v3274_v34, 0.0  ;;  %v6194_v46 = vor.u32 %v6561_v10, %v6193_v0  ;;  %v2924_v33 = vperm.slane %v8588_v5, 2  ;;  %v6123_v23 = vld [vmem:[%s7752_s6 + $0x68] sm:$0xf0] }
 0x572   : > { %v6154_v0 = vor.u32 %v6551_v53, %v6153_v52  ;;  %v6571_v52 = vld [vmem:[%s7752_s6 + $0x144] sm:$0xf0]  ;;  %v6538_v53 = vld [vmem:[%s7752_s6 + $0x44] sm:$0xf] }
 0x573   : > { %3861 = vmatpush.bf16.msrb.mxu3 %v6030_v58 }
 0x574   : > { %v3261_v32 = vpop.f32.mrf.mxu0  ;;  %v3275_v39 = vpop.f32.mrf.mxu1 }
 0x575   : > { %v3287_v27 = vpop.f32.mrf.mxu2  ;;  %v3301_v28 = vpop.f32.mrf.mxu3  ;;  %v3262_v35 = vadd.f32 %v3261_v32, %v2922_v12  ;;  %3849 = vmatpush.bf16.msrb.mxu2 %v5950_v7  ;;  %v6541_v12 = vld [vmem:[%s7752_s6 + $0x54] sm:$0xf0] }
 0x576   : > { %v3288_v45 = vadd.f32 %v3287_v27, %v2923_v31  ;;  %v6114_v19 = vor.u32 %v6541_v12, %v6113_v8  ;;  %v6557_v27 = vld [vmem:[%s7752_s6 + $0xd4] sm:$0xf0]  ;;  %v6145_v12 = vld [vmem:[%s7752_s6 + $0x90] sm:$0xf] }
 0x577   : > { %v3276_v62 = vadd.f32 %v3275_v39, %v3262_v35  ;;  %3862 = vmatpush.bf16.msrb.mxu3 %v6022_v56  ;;  %v6178_v32 = vor.u32 %v6557_v27, %v6177_v25  ;;  %v6169_v35 = vld [vmem:[%s7752_s6 + $0xc0] sm:$0xf]  ;;  %v6535_v39 = vld [vmem:[%s7752_s6 + $0x24] sm:$0xf0] }
 0x578   : > { %v3302_v59 = vadd.f32 %v3301_v28, %v3288_v45  ;;  %v6097_v28 = vld [vmem:[%s7752_s6 + $0x30] sm:$0xf]  ;;  %v6170_v40 = vor.u32 %v6555_v36, %v6169_v35  ;;  %v6533_v45 = vld [vmem:[%s7752_s6 + $0x14] sm:$0xf0]  ;;  %v6137_v27 = vld [vmem:[%s7752_s6 + $0x80] sm:$0xf] }
 0x579   : > { %v3366_v47 = vmax.f32 %v3276_v62, 0.0  ;;  %v6098_v34 = vor.u32 %v6537_v29, %v6097_v28  ;;  %v6090_v62 = vor.u32 %v6535_v39, %v6089_v37  ;;  %v6547_v29 = vld [vmem:[%s7752_s6 + $0x84] sm:$0xf0]  ;;  %v6560_v35 = vld [vmem:[%s7752_s6 + $0xf4] sm:$0xf] }
 0x57a   : > { %v3363_v16 = vmax.f32 %v3302_v59, 0.0  ;;  %v6073_v59 = vld [vmem:[%s7752_s6] sm:$0xf]  ;;  %v6195_v36 = vld [vmem:[%s7752_s6 + $0xf8] sm:$0xf0]  ;;  %v6138_v42 = vor.u32 %v6547_v29, %v6137_v27 }
 0x57b   : > { %v3370_v38 = vpack.c.bf16 %v3366_v47, %v3362_v17  ;;  %3863 = vmatpush.bf16.msrb.mxu3 %v6014_v11  ;;  %v2925_v47 = vperm.slane %v8588_v5, 3  ;;  %v6577_v5 = vld [vmem:[%s7752_s6 + $0x174] sm:$0xf0]  ;;  %v6241_v37 = vld [vmem:[%s7752_s6 + $0x150] sm:$0xf] }
 0x57c   : > { %v6573_v39 = vld [vmem:[%s7752_s6 + $0x154] sm:$0xf0]  ;;  %v6289_v29 = vld [vmem:[%s7752_s6 + $0x1b0] sm:$0xf] }
 0x57d   : > { %v3289_v51 = vpop.f32.mrf.mxu2  ;;  %v3303_v63 = vpop.f32.mrf.mxu3  ;;  %3766 = vmatmul.bf16.vlgmr.msra.gmra.mxu0 %v3370_v38 }
 0x57e   : > { %v3290_v61 = vadd.f32 %v3289_v51, %v2923_v31  ;;  %4190 = vmatpush.bf16.msra.mxu0 %v6130_v48  ;;  %v6082_v51 = vor.u32 %v6533_v45, %v6081_v43  ;;  %v6198_v45 = vor.u32 %v6560_v35, %v6195_v36  ;;  %v6532_v35 = vld [vmem:[%s7752_s6 + $0x14] sm:$0xf]  ;;  %v6083_v36 = vld [vmem:[%s7752_s6 + $0x18] sm:$0xf0] }
 0x580   : > { %v3304_v9 = vadd.f32 %v3303_v63, %v3290_v61  ;;  %v6531_v61 = vld [vmem:[%s7752_s6 + $0x4] sm:$0xf0]  ;;  %v6257_v63 = vld [vmem:[%s7752_s6 + $0x170] sm:$0xf] }
 0x581   : > { %v6074_v8 = vor.u32 %v6531_v61, %v6073_v59 }
 0x582   : > { %v3367_v15 = vmax.f32 %v3304_v9, 0.0  ;;  %4191 = vmatpush.bf16.msra.mxu0 %v6122_v13  ;;  %v6131_v9 = vld [vmem:[%s7752_s6 + $0x78] sm:$0xf0] }
 0x584   : > { %v3371_v18 = vpack.c.bf16 %v3367_v15, %v3363_v16  ;;  %v6549_v16 = vld [vmem:[%s7752_s6 + $0x94] sm:$0xf0]  ;;  %v6258_v15 = vor.u32 %v6577_v5, %v6257_v63  ;;  %v6305_v63 = vld [vmem:[%s7752_s6 + $0x1d0] sm:$0xf] }
 0x585   : > { %v6146_v25 = vor.u32 %v6549_v16, %v6145_v12 }
 0x586   : > { %3780 = vmatmul.bf16.vlgmr.msra.gmra.mxu1 %v3371_v18  ;;  %4192 = vmatpush.bf16.msra.mxu0 %v6114_v19 }
 0x587   : > { %4204 = vmatpush.bf16.msra.mxu1 %v6194_v46  ;;  %v6134_v46 = vor.u32 %v6544_v2, %v6131_v9  ;;  %v6589_v2 = vld [vmem:[%s7752_s6 + $0x1d4] sm:$0xf0]  ;;  %v6556_v9 = vld [vmem:[%s7752_s6 + $0xd4] sm:$0xf] }
 0x588   : > { %v6306_v12 = vor.u32 %v6589_v2, %v6305_v63 }
 0x58a   : > { %4193 = vmatpush.bf16.msra.mxu0 %v6106_v24 }
 0x58b   : > { %4205 = vmatpush.bf16.msra.mxu1 %v6186_v4 }
 0x58c   : > { %v3315_v30 = vpop.f32.mrf.mxu0  ;;  %v3329_v31 = vpop.f32.mrf.mxu1 }
 0x58d   : > { %3822 = vmatmul.bf16.vlgmr.msrb.gmra.mxu0 %v3370_v38  ;;  %v3316_v58 = vadd.f32 %v3315_v30, %v2924_v33  ;;  %v6321_v30 = vld [vmem:[%s7752_s6 + $0x1f0] sm:$0xf] }
 0x58e   : > { %4194 = vmatpush.bf16.msra.mxu0 %v6098_v34  ;;  %v6126_v34 = vor.u32 %v6542_v22, %v6123_v23  ;;  %v6534_v23 = vld [vmem:[%s7752_s6 + $0x24] sm:$0xf] }
 0x58f   : > { %4206 = vmatpush.bf16.msra.mxu1 %v6178_v32  ;;  %v3330_v60 = vadd.f32 %v3329_v31, %v3316_v58  ;;  %v6593_v31 = vld [vmem:[%s7752_s6 + $0x1f4] sm:$0xf0]  ;;  %v6115_v58 = vld [vmem:[%s7752_s6 + $0x58] sm:$0xf0] }
 0x590   : > { %v6322_v43 = vor.u32 %v6593_v31, %v6321_v30  ;;  %v6585_v31 = vld [vmem:[%s7752_s6 + $0x1b4] sm:$0xf0] }
 0x591   : > { %v3364_v10 = vmax.f32 %v3330_v60, 0.0  ;;  %v6558_v60 = vld [vmem:[%s7752_s6 + $0xe4] sm:$0xf] }
 0x592   : > { %4195 = vmatpush.bf16.msra.mxu0 %v6090_v62 }
 0x593   : > { %4207 = vmatpush.bf16.msra.mxu1 %v6170_v40  ;;  %v6540_v40 = vld [vmem:[%s7752_s6 + $0x54] sm:$0xf] }
 0x594   : > { %v3343_v7 = vpop.f32.mrf.mxu2  ;;  %v3357_v17 = vpop.f32.mrf.mxu3 }
 0x595   : > { %v3317_v48 = vpop.f32.mrf.mxu0  ;;  %v3331_v56 = vpop.f32.mrf.mxu1  ;;  %v3344_v13 = vadd.f32 %v3343_v7, %v2925_v47  ;;  %v6313_v7 = vld [vmem:[%s7752_s6 + $0x1e0] sm:$0xf] }
 0x596   : > { %v3318_v38 = vadd.f32 %v3317_v48, %v2924_v33  ;;  %3836 = vmatmul.bf16.vlgmr.msrb.gmra.mxu1 %v3371_v18  ;;  %4196 = vmatpush.bf16.msra.mxu0 %v6082_v51  ;;  %v6249_v18 = vld [vmem:[%s7752_s6 + $0x160] sm:$0xf]  ;;  %v6242_v48 = vor.u32 %v6573_v39, %v6241_v37  ;;  %v6209_v37 = vld [vmem:[%s7752_s6 + $0x110] sm:$0xf]  ;;  %v6565_v39 = vld [vmem:[%s7752_s6 + $0x114] sm:$0xf0] }
 0x597   : > { %4208 = vmatpush.bf16.msra.mxu1 %v6162_v50  ;;  %v3358_v4 = vadd.f32 %v3357_v17, %v3344_v13  ;;  %v6250_v33 = vor.u32 %v6575_v21, %v6249_v18  ;;  %v6591_v17 = vld [vmem:[%s7752_s6 + $0x1e4] sm:$0xf0]  ;;  %v6118_v50 = vor.u32 %v6540_v40, %v6115_v58  ;;  %v6233_v51 = vld [vmem:[%s7752_s6 + $0x140] sm:$0xf]  ;;  %v6179_v13 = vld [vmem:[%s7752_s6 + $0xd8] sm:$0xf0] }
 0x598   : > { %v3332_v3 = vadd.f32 %v3331_v56, %v3318_v38  ;;  %v6187_v38 = vld [vmem:[%s7752_s6 + $0xe8] sm:$0xf0]  ;;  %v6314_v59 = vor.u32 %v6591_v17, %v6313_v7  ;;  %v6182_v16 = vor.u32 %v6556_v9, %v6179_v13  ;;  %v6587_v18 = vld [vmem:[%s7752_s6 + $0x1c4] sm:$0xf0]  ;;  %v6281_v58 = vld [vmem:[%s7752_s6 + $0x1a0] sm:$0xf] }
 0x599   : > { %v3365_v62 = vmax.f32 %v3358_v4, 0.0  ;;  %v6107_v56 = vld [vmem:[%s7752_s6 + $0x48] sm:$0xf0]  ;;  %v6190_v61 = vor.u32 %v6558_v60, %v6187_v38  ;;  %v6530_v7 = vld [vmem:[%s7752_s6 + $0x4] sm:$0xf] }
 0x59a   : > { %v3368_v11 = vmax.f32 %v3332_v3, 0.0  ;;  %4197 = vmatpush.bf16.msra.mxu0 %v6074_v8  ;;  %v6234_v3 = vor.u32 %v6571_v52, %v6233_v51  ;;  %v6110_v5 = vor.u32 %v6538_v53, %v6107_v56  ;;  %v6569_v8 = vld [vmem:[%s7752_s6 + $0x134] sm:$0xf0]  ;;  %v6171_v21 = vld [vmem:[%s7752_s6 + $0xc8] sm:$0xf0] }
 0x59b   : > { %4209 = vmatpush.bf16.msra.mxu1 %v6154_v0  ;;  %v6536_v0 = vld [vmem:[%s7752_s6 + $0x34] sm:$0xf]  ;;  %v6091_v4 = vld [vmem:[%s7752_s6 + $0x28] sm:$0xf0]  ;;  %v6259_v52 = vld [vmem:[%s7752_s6 + $0x178] sm:$0xf0] }
 0x59c   : > { %v8649_v19 = vpack.c.bf16 %v3368_v11, %v3364_v10  ;;  %v3345_v20 = vpop.f32.mrf.mxu2  ;;  %v3359_v28 = vpop.f32.mrf.mxu3  ;;  %v6099_v10 = vld [vmem:[%s7752_s6 + $0x38] sm:$0xf0]  ;;  %v6225_v11 = vld [vmem:[%s7752_s6 + $0x130] sm:$0xf]  ;;  %v6094_v30 = vor.u32 %v6534_v23, %v6091_v4  ;;  %v6075_v17 = vld [vmem:[%s7752_s6 + $0x8] sm:$0xf0] }
 0x59d   : > { %v3346_v24 = vadd.f32 %v3345_v20, %v2925_v47  ;;  %4198 = vmatmul.bf16.vlgmr.msra.gmra.mxu0 %v8545_v49  ;;  %v6554_v20 = vld [vmem:[%s7752_s6 + $0xc4] sm:$0xf]  ;;  %v6226_v22 = vor.u32 %v6569_v8, %v6225_v11  ;;  %v6576_v51 = vld [vmem:[%s7752_s6 + $0x174] sm:$0xf]  ;;  %v6273_v53 = vld [vmem:[%s7752_s6 + $0x190] sm:$0xf]  ;;  %v6078_v56 = vor.u32 %v6530_v7, %v6075_v17 }
 0x59e   : > { %3794 = vmatmul.bf16.vlgmr.msra.gmra.mxu2 %v8649_v19  ;;  %4246 = vmatpush.bf16.msrb.mxu0 %v6134_v46  ;;  %v6102_v46 = vor.u32 %v6536_v0, %v6099_v10  ;;  %v6574_v9 = vld [vmem:[%s7752_s6 + $0x164] sm:$0xf]  ;;  %v6251_v13 = vld [vmem:[%s7752_s6 + $0x168] sm:$0xf0]  ;;  %v6265_v0 = vld [vmem:[%s7752_s6 + $0x180] sm:$0xf] }
 0x59f   : > { %v3360_v32 = vadd.f32 %v3359_v28, %v3346_v24  ;;  %4218 = vmatpush.bf16.msra.mxu2 %v6258_v15  ;;  %4210 = vmatpush.bf16.msra.mxu1 %v6146_v25  ;;  %v6297_v15 = vld [vmem:[%s7752_s6 + $0x1c0] sm:$0xf]  ;;  %v6567_v25 = vld [vmem:[%s7752_s6 + $0x124] sm:$0xf0]  ;;  %v6174_v28 = vor.u32 %v6554_v20, %v6171_v21  ;;  %v6546_v11 = vld [vmem:[%s7752_s6 + $0x84] sm:$0xf] }
 0x5a0   : > { %v6217_v24 = vld [vmem:[%s7752_s6 + $0x120] sm:$0xf]  ;;  %v6298_v27 = vor.u32 %v6587_v18, %v6297_v15  ;;  %v6579_v10 = vld [vmem:[%s7752_s6 + $0x184] sm:$0xf0]  ;;  %v6139_v8 = vld [vmem:[%s7752_s6 + $0x88] sm:$0xf0]  ;;  %v6254_v15 = vor.u32 %v6574_v9, %v6251_v13 }
 0x5a1   : > { %v3369_v41 = vmax.f32 %v3360_v32, 0.0  ;;  %v6552_v32 = vld [vmem:[%s7752_s6 + $0xb4] sm:$0xf]  ;;  %v6142_v18 = vor.u32 %v6546_v11, %v6139_v8  ;;  %v6243_v21 = vld [vmem:[%s7752_s6 + $0x158] sm:$0xf0] }
 0x5a2   : > { %4247 = vmatpush.bf16.msrb.mxu0 %v6126_v34  ;;  %v6218_v34 = vor.u32 %v6567_v25, %v6217_v24  ;;  %v6572_v20 = vld [vmem:[%s7752_s6 + $0x154] sm:$0xf]  ;;  %v6590_v23 = vld [vmem:[%s7752_s6 + $0x1e4] sm:$0xf]  ;;  %v6315_v4 = vld [vmem:[%s7752_s6 + $0x1e8] sm:$0xf0] }
 0x5a3   : > { %v8668_v47 = vpack.c.bf16 %v3369_v41, %v3365_v62  ;;  %4219 = vmatpush.bf16.msra.mxu2 %v6250_v33  ;;  %4211 = vmatpush.bf16.msra.mxu1 %v6138_v42  ;;  %v6163_v33 = vld [vmem:[%s7752_s6 + $0xb8] sm:$0xf0]  ;;  %v6086_v62 = vor.u32 %v6532_v35, %v6083_v36  ;;  %v6583_v41 = vld [vmem:[%s7752_s6 + $0x1a4] sm:$0xf0]  ;;  %v6550_v42 = vld [vmem:[%s7752_s6 + $0xa4] sm:$0xf]  ;;  %v6246_v24 = vor.u32 %v6572_v20, %v6243_v21 }
 0x5a4   : > { %v6166_v40 = vor.u32 %v6552_v32, %v6163_v33  ;;  %v6282_v60 = vor.u32 %v6583_v41, %v6281_v58  ;;  %v6570_v25 = vld [vmem:[%s7752_s6 + $0x144] sm:$0xf]  ;;  %v6227_v32 = vld [vmem:[%s7752_s6 + $0x138] sm:$0xf0]  ;;  %v6299_v35 = vld [vmem:[%s7752_s6 + $0x1c8] sm:$0xf0] }
 0x5a5   : > { %3808 = vmatmul.bf16.vlgmr.msra.gmra.mxu3 %v8668_v47  ;;  %v6211_v41 = vld [vmem:[%s7752_s6 + $0x118] sm:$0xf0]  ;;  %v6562_v17 = vld [vmem:[%s7752_s6 + $0x104] sm:$0xf] }
 0x5a6   : > { %4232 = vmatpush.bf16.msra.mxu3 %v6322_v43  ;;  %4248 = vmatpush.bf16.msrb.mxu0 %v6118_v50  ;;  %v6155_v43 = vld [vmem:[%s7752_s6 + $0xa8] sm:$0xf0]  ;;  %v6563_v50 = vld [vmem:[%s7752_s6 + $0x104] sm:$0xf0] }
 0x5a7   : > { %4260 = vmatpush.bf16.msrb.mxu1 %v6198_v45  ;;  %4220 = vmatpush.bf16.msra.mxu2 %v6242_v48  ;;  %v6210_v45 = vor.u32 %v6565_v39, %v6209_v37  ;;  %v6201_v48 = vld [vmem:[%s7752_s6 + $0x100] sm:$0xf]  ;;  %v6158_v38 = vor.u32 %v6550_v42, %v6155_v43  ;;  %v6566_v37 = vld [vmem:[%s7752_s6 + $0x124] sm:$0xf]  ;;  %v6219_v39 = vld [vmem:[%s7752_s6 + $0x128] sm:$0xf0] }
 0x5a8   : > { %4212 = vmatmul.bf16.vlgmr.msra.gmra.mxu1 %v8567_v26  ;;  %v6202_v63 = vor.u32 %v6563_v50, %v6201_v48  ;;  %v6222_v58 = vor.u32 %v6566_v37, %v6219_v39  ;;  %v6582_v43 = vld [vmem:[%s7752_s6 + $0x1a4] sm:$0xf]  ;;  %v6203_v48 = vld [vmem:[%s7752_s6 + $0x108] sm:$0xf0]  ;;  %v4302_v37 = vld [vmem:[%s938_s17] sm:$0x3] }
 0x5aa   : > { %4233 = vmatpush.bf16.msra.mxu3 %v6314_v59  ;;  %4249 = vmatpush.bf16.msrb.mxu0 %v6110_v5  ;;  %v6581_v59 = vld [vmem:[%s7752_s6 + $0x194] sm:$0xf0] }
 0x5ab   : > { %4261 = vmatpush.bf16.msrb.mxu1 %v6190_v61  ;;  %4221 = vmatpush.bf16.msra.mxu2 %v6234_v3  ;;  %v6548_v61 = vld [vmem:[%s7752_s6 + $0x94] sm:$0xf]  ;;  %v6262_v3 = vor.u32 %v6576_v51, %v6259_v52  ;;  %v6274_v5 = vor.u32 %v6581_v59, %v6273_v53  ;;  %v6206_v51 = vor.u32 %v6562_v17, %v6203_v48  ;;  %v6578_v53 = vld [vmem:[%s7752_s6 + $0x184] sm:$0xf] }
 0x5ae   : > { %4234 = vmatpush.bf16.msra.mxu3 %v6306_v12  ;;  %3850 = vmatmul.bf16.vlgmr.msrb.gmra.mxu2 %v8649_v19  ;;  %v6290_v19 = vor.u32 %v6585_v31, %v6289_v29  ;;  %v6592_v12 = vld [vmem:[%s7752_s6 + $0x1f4] sm:$0xf] }
 0x5af   : > { %4262 = vmatpush.bf16.msrb.mxu1 %v6182_v16  ;;  %4250 = vmatpush.bf16.msrb.mxu0 %v6102_v46  ;;  %v6323_v16 = vld [vmem:[%s7752_s6 + $0x1f8] sm:$0xf0]  ;;  %v6266_v46 = vor.u32 %v6579_v10, %v6265_v0  ;;  %v6588_v29 = vld [vmem:[%s7752_s6 + $0x1d4] sm:$0xf] }
 0x5b0   : > { %4222 = vmatpush.bf16.msra.mxu2 %v6226_v22  ;;  %v6326_v22 = vor.u32 %v6592_v12, %v6323_v16  ;;  %v6568_v31 = vld [vmem:[%s7752_s6 + $0x134] sm:$0xf] }
 0x5b1   : > { %v6230_v36 = vor.u32 %v6568_v31, %v6227_v32 }
 0x5b2   : > { %4235 = vmatpush.bf16.msra.mxu3 %v6298_v27  ;;  %v6235_v27 = vld [vmem:[%s7752_s6 + $0x148] sm:$0xf0] }
 0x5b3   : > { %4263 = vmatpush.bf16.msrb.mxu1 %v6174_v28  ;;  %4251 = vmatpush.bf16.msrb.mxu0 %v6094_v30  ;;  %v6318_v28 = vor.u32 %v6590_v23, %v6315_v4  ;;  %v6307_v30 = vld [vmem:[%s7752_s6 + $0x1d8] sm:$0xf0] }
 0x5b4   : > { %4223 = vmatpush.bf16.msra.mxu2 %v6218_v34  ;;  %v6310_v33 = vor.u32 %v6588_v29, %v6307_v30  ;;  %v6586_v34 = vld [vmem:[%s7752_s6 + $0x1c4] sm:$0xf] }
 0x5b5   : > { %3864 = vmatmul.bf16.vlgmr.msrb.gmra.mxu3 %v8668_v47  ;;  %v6147_v47 = vld [vmem:[%s7752_s6 + $0x98] sm:$0xf0] }
 0x5b6   : > { %4236 = vmatpush.bf16.msra.mxu3 %v6290_v19  ;;  %v6150_v2 = vor.u32 %v6548_v61, %v6147_v47  ;;  %v6302_v19 = vor.u32 %v6586_v34, %v6299_v35 }
 0x5b7   : > { %4264 = vmatpush.bf16.msrb.mxu1 %v6166_v40  ;;  %4252 = vmatpush.bf16.msrb.mxu0 %v6086_v62  ;;  %v6584_v40 = vld [vmem:[%s7752_s6 + $0x1b4] sm:$0xf] }
 0x5b8   : > { %4224 = vmatpush.bf16.msra.mxu2 %v6210_v45  ;;  %v6564_v62 = vld [vmem:[%s7752_s6 + $0x114] sm:$0xf]  ;;  %v6283_v45 = vld [vmem:[%s7752_s6 + $0x1a8] sm:$0xf0] }
 0x5b9   : > { %v6214_v7 = vor.u32 %v6564_v62, %v6211_v41  ;;  %v6286_v50 = vor.u32 %v6582_v43, %v6283_v45 }
 0x5ba   : > { %4237 = vmatpush.bf16.msra.mxu3 %v6282_v60  ;;  %v6580_v60 = vld [vmem:[%s7752_s6 + $0x194] sm:$0xf] }
 0x5bb   : > { %4265 = vmatpush.bf16.msrb.mxu1 %v6158_v38  ;;  %4253 = vmatpush.bf16.msrb.mxu0 %v6078_v56  ;;  %v6275_v38 = vld [vmem:[%s7752_s6 + $0x198] sm:$0xf0]  ;;  %v6267_v56 = vld [vmem:[%s7752_s6 + $0x188] sm:$0xf0] }
 0x5bc   : > { %4225 = vmatpush.bf16.msra.mxu2 %v6202_v63  ;;  %v6278_v52 = vor.u32 %v6580_v60, %v6275_v38  ;;  %v6270_v59 = vor.u32 %v6578_v53, %v6267_v56 }
 0x5be   : > { %4238 = vmatpush.bf16.msra.mxu3 %v6274_v5  ;;  %4254 = vmatmul.bf16.vlgmr.msrb.gmra.mxu0 %v8545_v49  ;;  %v6238_v49 = vor.u32 %v6570_v25, %v6235_v27 }
 0x5bf   : > { %4266 = vmatpush.bf16.msrb.mxu1 %v6150_v2  ;;  %4226 = vmatmul.bf16.vlgmr.msra.gmra.mxu2 %v8583_v54 }
 0x5c0   : > { %4274 = vmatpush.bf16.msrb.mxu2 %v6262_v3 }
 0x5c2   : > { %4239 = vmatpush.bf16.msra.mxu3 %v6266_v46 }
 0x5c3   : > { %4267 = vmatpush.bf16.msrb.mxu1 %v6142_v18 }
 0x5c4   : > { %4275 = vmatpush.bf16.msrb.mxu2 %v6254_v15 }
 0x5c5   : > { %4240 = vmatmul.bf16.vlgmr.msra.gmra.mxu3 %v8597_v57 }
 0x5c6   : > { %4288 = vmatpush.bf16.msrb.mxu3 %v6326_v22  ;;  %4268 = vmatmul.bf16.vlgmr.msrb.gmra.mxu1 %v8567_v26  ;;  %v6291_v26 = vld [vmem:[%s7752_s6 + $0x1b8] sm:$0xf0]  ;;  %s8950_s6 = sld [smem:[#allocation59_spill]] }
 0x5c7   : > { %v6294_v42 = vor.u32 %v6584_v40, %v6291_v26 }
 0x5c8   : > { %4276 = vmatpush.bf16.msrb.mxu2 %v6246_v24 }
 0x5ca   : > { %4289 = vmatpush.bf16.msrb.mxu3 %v6318_v28 }
 0x5cc   : > { %4277 = vmatpush.bf16.msrb.mxu2 %v6238_v49  ;;  %s7217_s15 = scalar_lea.hbm %s8950_s6, 64 }
 0x5ce   : > { %4290 = vmatpush.bf16.msrb.mxu3 %v6310_v33 }
 0x5d0   : > { %4278 = vmatpush.bf16.msrb.mxu2 %v6230_v36 }
 0x5d2   : > { %4291 = vmatpush.bf16.msrb.mxu3 %v6302_v19 }
 0x5d4   : > { %4279 = vmatpush.bf16.msrb.mxu2 %v6222_v58 }
 0x5d6   : > { %4292 = vmatpush.bf16.msrb.mxu3 %v6294_v42  ;;  %v4304_v42 = vperm.slane %v4302_v37, 0 }
 0x5d8   : > { %4280 = vmatpush.bf16.msrb.mxu2 %v6214_v7  ;;  %v4305_v7 = vperm.slane %v4302_v37, 1  ;;  %v4376_v37 = vld [vmem:[%s942_s2] sm:$0x3]  ;;  %s6723_s2 = sshll.u32 %s8949_s24, 5 }
 0x5d9   : > { %s4403_s3 = scalar_lea.hbm %s8950_s6, %s6723_s2 }
 0x5da   : > { %4293 = vmatpush.bf16.msrb.mxu3 %v6286_v50  ;;  %s4406_s1 = sshll.u32 %s4403_s3, 4  ;;  %s4407_s1 = int_to_ptr.hbm [resolvable:$true] %s4406_s1 }
 0x5db   : > { %s7211_s19 = sshra.s32 %s4407_s1, 4  ;;  %s7212_s19 = int_to_ptr.hbm [resolvable:$true] %s7211_s19 }
 0x5dc   : > { %4281 = vmatpush.bf16.msrb.mxu2 %v6206_v51  ;;  %s7213_s8 = scalar_lea.hbm %s7212_s19, 32  ;;  %p7218_p0 = scmp.lt.s32.totalorder %s7212_s19, %s8950_s6 }
 0x5dd   : > { %p7214_p11 = scmp.ne.s32.totalorder %s7212_s19, %s7213_s8  ;;  %p7219_p5 = scmp.lt.s32.totalorder %s7217_s15, %s7213_s8 }
 0x5de   : > { %4294 = vmatpush.bf16.msrb.mxu3 %v6278_v52 }
 0x5df   : > { %4282 = vmatmul.bf16.vlgmr.msrb.gmra.mxu2 %v8583_v54  ;;  %p7215_p12 = pnand %p7214_p11, %p7554_p4  ;;  %p7220_p8 = por %p7219_p5, %p7218_p0 }
 0x5e1   : > { %p7216_p13 = pneg %p7215_p12 }
 0x5e2   : > { %4295 = vmatpush.bf16.msrb.mxu3 %v6270_v59 }
 0x5e3   : > { %p7221_p2 = pnand %p7220_p8, %p7216_p13 }
 0x5e5   : > { %4296 = vmatmul.bf16.vlgmr.msrb.gmra.mxu3 %v8597_v57 }
 0x5fa   : > { %v3767_v61 = vpop.f32.mrf.mxu0 }
 0x602   : > { %v3769_v3 = vpop.f32.mrf.mxu0 }
 0x603   : > { %v3781_v47 = vpop.f32.mrf.mxu1 }
 0x604   : > { %v3782_v57 = vadd.f32 %v3781_v47, %v3767_v61 }
 0x60a   : > { %v3823_v13 = vpop.f32.mrf.mxu0 }
 0x60b   : > { %v3783_v2 = vpop.f32.mrf.mxu1 }
 0x60c   : > { %v3784_v27 = vadd.f32 %v3783_v2, %v3769_v3 }
 0x612   : > { %v3825_v8 = vpop.f32.mrf.mxu0 }
 0x613   : > { %v3837_v10 = vpop.f32.mrf.mxu1 }
 0x614   : > { %v3838_v28 = vadd.f32 %v3837_v10, %v3823_v13 }
 0x61a   : > { %v4199_v46 = vpop.f32.mrf.mxu0 }
 0x61b   : > { %v3839_v16 = vpop.f32.mrf.mxu1 }
 0x61c   : > { %v3840_v26 = vadd.f32 %v3839_v16, %v3825_v8 }
 0x621   : > { %v3795_v63 = vpop.f32.mrf.mxu2 }
 0x622   : > { %v4201_v21 = vpop.f32.mrf.mxu0  ;;  %v3796_v23 = vadd.f32 %v3795_v63, %v3782_v57 }
 0x625   : > { %v4213_v18 = vpop.f32.mrf.mxu1 }
 0x628   : > { %v3809_v5 = vpop.f32.mrf.mxu3 }
 0x629   : > { %v3797_v9 = vpop.f32.mrf.mxu2  ;;  %v3810_v24 = vadd.f32 %v3809_v5, %v3796_v23 }
 0x62a   : > { %v3798_v49 = vadd.f32 %v3797_v9, %v3784_v27 }
 0x62b   : > { %v4200_v29 = vadd.f32 %v4199_v46, %v3810_v24 }
 0x62d   : > { %v4215_v4 = vpop.f32.mrf.mxu1  ;;  %v4214_v36 = vadd.f32 %v4213_v18, %v4200_v29 }
 0x630   : > { %v3811_v0 = vpop.f32.mrf.mxu3 }
 0x631   : > { %v3851_v11 = vpop.f32.mrf.mxu2  ;;  %v3812_v34 = vadd.f32 %v3811_v0, %v3798_v49 }
 0x632   : > { %v3852_v31 = vadd.f32 %v3851_v11, %v3838_v28 }
 0x633   : > { %v4202_v58 = vadd.f32 %v4201_v21, %v3812_v34  ;;  %v4366_v34 = vld [vmem:[%s821_s4] sm:$0x3] }
 0x635   : > { %v4216_v38 = vadd.f32 %v4215_v4, %v4202_v58 }
 0x638   : > { %v3865_v12 = vpop.f32.mrf.mxu3 }
 0x639   : > { %v3853_v15 = vpop.f32.mrf.mxu2  ;;  %v3866_v35 = vadd.f32 %v3865_v12, %v3852_v31 }
 0x63a   : > { %v3854_v43 = vadd.f32 %v3853_v15, %v3840_v26 }
 0x63b   : > { %v4255_v30 = vpop.f32.mrf.mxu0 }
 0x63c   : > { %v4256_v19 = vadd.f32 %v4255_v30, %v3866_v35 }
 0x640   : > { %v3867_v54 = vpop.f32.mrf.mxu3 }
 0x641   : > { %v3868_v50 = vadd.f32 %v3867_v54, %v3854_v43 }
 0x642   : > { %v4227_v20 = vpop.f32.mrf.mxu2 }
 0x643   : > { %v4269_v32 = vpop.f32.mrf.mxu1  ;;  %v4228_v40 = vadd.f32 %v4227_v20, %v4214_v36  ;;  %v4257_v17 = vpop.f32.mrf.mxu0 }
 0x644   : > { %v4270_v62 = vadd.f32 %v4269_v32, %v4256_v19  ;;  %v4258_v53 = vadd.f32 %v4257_v17, %v3868_v50  ;;  %v4368_v19 = vperm.slane %v4366_v34, 0 }
 0x648   : > { %v4241_v22 = vpop.f32.mrf.mxu3 }
 0x649   : > { %v4242_v41 = vadd.f32 %v4241_v22, %v4228_v40  ;;  %v4369_v40 = vperm.slane %v4366_v34, 1 }
 0x64a   : > { %v4229_v25 = vpop.f32.mrf.mxu2 }
 0x64b   : > { %v4308_v60 = vadd.f32 %v4304_v42, %v4242_v41  ;;  %v4271_v52 = vpop.f32.mrf.mxu1  ;;  %v4230_v56 = vadd.f32 %v4229_v25, %v4216_v38  ;;  %v4379_v41 = vperm.slane %v4376_v37, 1 }
 0x64c   : > { %v4272_v47 = vadd.f32 %v4271_v52, %v4258_v53 }
 0x64d   : > { %v4312_v3 = vadd.f32 %v4308_v60, %v8298_v14 }
 0x650   : > { %v4243_v33 = vpop.f32.mrf.mxu3 }
 0x651   : > { %v4244_v63 = vadd.f32 %v4243_v33, %v4230_v56 }
 0x653   : > { %v4310_v0 = vadd.f32 %v4304_v42, %v4244_v63 }
 0x655   : > { %v4314_v8 = vadd.f32 %v4310_v0, %v8302_v44 }
 0x662   : > { %v4283_v39 = vpop.f32.mrf.mxu2 }
 0x663   : > { %v4284_v45 = vadd.f32 %v4283_v39, %v4270_v62  ;;  %v4378_v62 = vperm.slane %v4376_v37, 0 }
 0x668   : > { %v4297_v48 = vpop.f32.mrf.mxu3 }
 0x669   : > { %v4298_v51 = vadd.f32 %v4297_v48, %v4284_v45 }
 0x66a   : > { %v4285_v61 = vpop.f32.mrf.mxu2 }
 0x66b   : > { %v4309_v59 = vadd.f32 %v4305_v7, %v4298_v51  ;;  %v4286_v2 = vadd.f32 %v4285_v61, %v4272_v47 }
 0x66d   : > { %v4313_v5 = vadd.f32 %v4309_v59, %v8300_v1 }
 0x66f   : > { %v4316_v9 = vadd.f32 %v4313_v5, %v4312_v3 }
 0x670   : > { %v4299_v13 = vpop.f32.mrf.mxu3 }
 0x671   : > { %v4300_v10 = vadd.f32 %v4299_v13, %v4286_v2  ;;  %4317 = vadd.xlane.f32.xlu0 %v4316_v9 }
 0x673   : > { %v4311_v11 = vadd.f32 %v4305_v7, %v4300_v10 }
 0x675   : > { %v4315_v12 = vadd.f32 %v4311_v11, %v8304_v6 }
 0x677   : > { %v4319_v16 = vadd.f32 %v4315_v12, %v4314_v8 }
 0x679   : > { %4320 = vadd.xlane.f32.xlu1 %v4319_v16 }
 0x6e4   : > { %v4318_v15 = vpop.xlane.xlu0 %4317 }
 0x6e5   : > { %v4322_v46 = vmul.f32 %v4318_v15, %v8166_v55 }
 0x6e7   : > { %v4324_v54 = vsub.f32 %v4312_v3, %v4322_v46  ;;  %v4325_v14 = vsub.f32 %v4313_v5, %v4322_v46 }
 0x6e9   : > { %v4328_v18 = vmul.f32 %v4324_v54, %v4324_v54  ;;  %v4329_v1 = vmul.f32 %v4325_v14, %v4325_v14 }
 0x6eb   : > { %v4332_v20 = vadd.f32 %v4329_v1, %v4328_v18 }
 0x6ec   : > { %v4321_v57 = vpop.xlane.xlu1 %4320 }
 0x6ed   : > { %v4323_v21 = vmul.f32 %v4321_v57, %v8166_v55  ;;  %4333 = vadd.xlane.f32.xlu2 %v4332_v20 }
 0x6ef   : > { %v4326_v22 = vsub.f32 %v4314_v8, %v4323_v21  ;;  %v4327_v23 = vsub.f32 %v4315_v12, %v4323_v21 }
 0x6f1   : > { %v4330_v4 = vmul.f32 %v4326_v22, %v4326_v22  ;;  %v4331_v44 = vmul.f32 %v4327_v23, %v4327_v23 }
 0x6f3   : > { %v4335_v6 = vadd.f32 %v4331_v44, %v4330_v4 }
 0x6f5   : > { %4336 = vadd.xlane.f32.xlu0 %v4335_v6 }
 0x760   : > { %v4334_v24 = vpop.xlane.xlu2 %4333 }
 0x761   : > { %v4338_v25 = vmul.f32 %v4334_v24, %v8166_v55 }
 0x763   : > { %v4340_v27 = vadd.f32 1e-05, %v4338_v25 }
 0x765   : > { %6881 = vrsqrt.f32 %v4340_v27  ;;  %vm4348_vm10 = vweird.f32 %v4340_v27 }
 0x768   : > { %v4337_v28 = vpop.xlane.xlu0 %4336 }
 0x769   : > { %v4339_v29 = vmul.f32 %v4337_v28, %v8166_v55 }
 0x76b   : > { %v6882_v30 = vpop.eup %6881  ;;  %v4341_v49 = vadd.f32 1e-05, %v4339_v29 }
 0x76c   : > { %v4343_v31 = vmul.f32 %v6882_v30, %v4340_v27  ;;  %vm4349_vm9 = vweird.f32 %v6882_v30 }
 0x76d   : > { %6883 = vrsqrt.f32 %v4341_v49  ;;  %vm4350_vm11 = vmor %vm4348_vm10, %vm4349_vm9  ;;  %vm4358_vm13 = vweird.f32 %v4341_v49 }
 0x76e   : > { %v4344_v32 = vmul.f32 %v6882_v30, %v4343_v31 }
 0x770   : > { %v4345_v33 = vmul.f32 0.5, %v4344_v32 }
 0x772   : > { %v4346_v35 = vsub.f32 1.5, %v4345_v33 }
 0x773   : > { %v6884_v36 = vpop.eup %6883 }
 0x774   : > { %v4347_v39 = vmul.f32 %v6882_v30, %v4346_v35  ;;  %v4353_v55 = vmul.f32 %v6884_v36, %v4341_v49  ;;  %vm4359_vm12 = vweird.f32 %v6884_v36 }
 0x775   : > { %vm4360_vm14 = vmor %vm4358_vm13, %vm4359_vm12 }
 0x776   : > { %v4351_v26 = vsel %vm4350_vm11, %v6882_v30, %v4347_v39  ;;  %v4354_v58 = vmul.f32 %v6884_v36, %v4353_v55 }
 0x777   : > { %v4362_v42 = vmul.f32 %v4351_v26, %v4324_v54  ;;  %v4363_v43 = vmul.f32 %v4351_v26, %v4325_v14 }
 0x778   : > { %v4355_v45 = vmul.f32 0.5, %v4354_v58 }
 0x779   : > { %v4372_v7 = vmul.f32 %v4368_v19, %v4362_v42  ;;  %v4373_v17 = vmul.f32 %v4369_v40, %v4363_v43 }
 0x77a   : > { %v4356_v48 = vsub.f32 1.5, %v4355_v45 }
 0x77b   : > { %v4382_v50 = vadd.f32 %v4378_v62, %v4372_v7  ;;  %v4383_v60 = vadd.f32 %v4379_v41, %v4373_v17 }
 0x77c   : > { %v4357_v38 = vmul.f32 %v6884_v36, %v4356_v48 }
 0x77d   : > { %4386 = vst [vmem:[%s7777_s10] sm:$0xff] %v4382_v50 }
 0x77e   : > { %4387 = vst [vmem:[%s7777_s10 + $0x8] sm:$0xff] %v4383_v60  ;;  %v4361_v51 = vsel %vm4360_vm14, %v6884_v36, %v4357_v38 }
 0x77f   : > { %v4364_v52 = vmul.f32 %v4361_v51, %v4326_v22  ;;  %v4365_v53 = vmul.f32 %v4361_v51, %v4327_v23 }
 0x781   : > { %v4374_v56 = vmul.f32 %v4368_v19, %v4364_v52  ;;  %v4375_v59 = vmul.f32 %v4369_v40, %v4365_v53 }
 0x783   : > { %v4384_v61 = vadd.f32 %v4378_v62, %v4374_v56  ;;  %v4385_v47 = vadd.f32 %v4379_v41, %v4375_v59 }
 0x785   : > { %4388 = vst [vmem:[%s7777_s10 + $0x10] sm:$0xff] %v4384_v61 }
 0x786   : > { %4389 = vst [vmem:[%s7777_s10 + $0x18] sm:$0xff] %v4385_v47 }
 0x787   : > { %7224 = shalt.err (!%p7221_p2)
}
 0x788   : > { %s7355_s10 = smov 256   ;;  %s7356_s9 = smov 16  }
 0x789   : > { %6752 = dma.vmem_to_hbm [thread:$0]  (%p7554_p4), %s4405_s29, 512, %s4407_s1, %s4391_s20, %s7355_s10, %s7355_s10, %s7356_s9  }
 0x78a PF: > { %s8952_s16 = sld [smem:[#allocation31_spill]]  ;;  %p6758_p1 = scmp.ge.s32.totalorder %s7343_s23, 2 }
 0x78c   : > { %p6755_p3 = pnand %p6758_p1, %p7561_p10 }
 0x78e   : > { %p6756_p6 = pneg %p6755_p3 }
 0x790   : > { %s4421_s13 = sand.u32 1, %s8952_s16  }
 0x791   : > { %s4422_s30 = scalar_lea.sflag [#allocation4], %s4421_s13 }
 0x792   : > { %7298 = dma.done.wait (%p6756_p6), %s4422_s30, 512  }
 0x793   : > { %7300 = vsyncadd (%p6756_p6), %s4422_s30, 4294966784  ;;  %s45_s23 = sadd.s32 1, %s7343_s23   ;;  %s8954_s29 = sld [smem:[#allocation29_spill]] }
 0x794   : > { %p42_p7 = scmp.ge.s32.totalorder %s45_s23, 6   ;;  %s8955_s30 = sld [smem:[#allocation30_spill]] }
 0x795   : > { %s8956_s15 = sld [smem:[#allocation40_spill]]  ;;  %s8962_s19 = smov %s7335_s21 }
 0x796   : > { %s8957_s16 = sld [smem:[#allocation32_spill]]  ;;  %s8963_s20 = smov %s7339_s22 }
 0x797   : > { %s8958_s17 = sld [smem:[#allocation33_spill]] }
 0x798   : > { %s8959_s18 = sld [smem:[#allocation41_spill]] }
 0x799   : > { %s8960_s28 = sld [smem:[#allocation37_spill]] }
 0x79a   : > { %s8961_s14 = sld [smem:[#allocation38_spill]] }
 0x79c   :  { %44 = sbr.rel (!%p42_p7) target bundleno = 35 (0x23), region = 254 }
 0x79f   : > { %s8964_s21 = smov %s8960_s28 }
 0x7a0   : > { %s8965_s22 = smov %s8961_s14 }
 0x7a1   :  { %4428 = vsyncpa [#allocation3], 1 }
 0x7a2   :  { %4430 = vsyncpa [#allocation3 + $0x1], 1 }
 0x7a3   :  { %4431 = vsyncpa [#allocation6], 1 }
 0x7a4   :  { %4433 = vsyncpa [#allocation6 + $0x1], 1 }
 0x7a5   :  { %4434 = vsyncpa [#allocation9], 1 }
 0x7a6   :  { %4436 = vsyncpa [#allocation9 + $0x1], 1 }
 0x7a7   :  { %4437 = vsyncpa [#allocation12], 1 }
 0x7a8   :  { %4439 = vsyncpa [#allocation12 + $0x1], 1 }
 0x7a9   :  { %4440 = vsyncpa [#allocation15], 1 }
 0x7aa   :  { %4442 = vsyncpa [#allocation15 + $0x1], 1 }
 0x7ab   :  { %4443 = vsyncpa [#allocation18], 1 }
 0x7ac   :  { %4445 = vsyncpa [#allocation18 + $0x1], 1 }
 0x7ad   :  { %4446 = vsyncpa [#allocation4], 1 }
 0x7ae   :  { %4448 = vsyncpa [#allocation4 + $0x1], 1 }

</bundles_post_ra>
